<compile_context>
chip_gen: v6e
topology: v6e:2x2x1
jax: 0.10.0
libtpu: 0.0.40
codegen_flags: <defaults>
</compile_context>

<pallas_src>
import jax
import jax.numpy as jnp
import numpy as np
from jax import lax
from jax.experimental import pallas as pl
from jax.experimental.pallas import tpu as pltpu

TB = 8  # batch tile per grid step


# ----------------------------------------------------------------------------
# One conv(3x3, pad=1) + 2x2/2 max-pool + ReLU stage, lane-major layout.
# ----------------------------------------------------------------------------
def _stage(xp_ref, hp_ref, x, bdw_ref, bias_ref, *, H, Cin, Cout):
    """x: (TB, H, W*Cin) lane-major activation (lane = w*Cin + ci).

    xp_ref : (TB, H+2, W*Cin) scratch; rows 0 / H+1 are the zero halo.
    hp_ref : (TB, H, (W//2)*Cout) scratch for the W-pooled conv output.
    bdw_ref: (3, W*Cin, W*Cout) block-diagonal conv weights (one per kh);
             output lane order is (w parity, w//2, cout).
    bias   : (1, W*Cout)
    returns: (TB, H//2, (W//2)*Cout) pooled + ReLU'd activation, lane-major.
    """
    tb = x.shape[0]
    li = x.shape[2]            # W * Cin
    W = li // Cin
    half = (W // 2) * Cout     # == 128 at every stage

    # Zero only the two halo rows; the left/right halo is folded into bdw.
    zrow = jnp.zeros((tb, 1, li), jnp.float32)
    xp_ref[:, 0:1, :] = zrow
    xp_ref[:, H + 1:H + 2, :] = zrow
    xp_ref[:, 1:H + 1, :] = x

    # Conv: one MXU matmul per kernel row; kw offsets live in the weights.
    acc = bias_ref[...]
    for kh in range(3):
        win = xp_ref[:, kh:kh + H, :].reshape(tb * H, li)
        acc = acc + jnp.dot(win, bdw_ref[kh], preferred_element_type=jnp.float32)

    # W-pool: output lanes are (parity, w//2, cout) -> max of the two halves.
    wp = jnp.maximum(acc[:, :half], acc[:, half:]).reshape(tb, H, half)
    hp_ref[...] = wp

    # H-pool via stride-2 sublane reads, with the ReLU fused in.
    ev = hp_ref[:, pl.ds(0, H // 2, 2), :]
    od = hp_ref[:, pl.ds(1, H // 2, 2), :]
    return jnp.maximum(jnp.maximum(ev, od), 0.0)


def convnet_kernel(x_ref,
                   bdw1_ref, cb1_ref, bdw2_ref, cb2_ref, bdw3_ref, cb3_ref,
                   fw1_ref, fb1_ref, fw2_ref, fb2_ref,
                   out_ref,
                   xp1, hp1, xp2, hp2, xp3, hp3):
    a1 = _stage(xp1, hp1, x_ref[...], bdw1_ref, cb1_ref, H=32, Cin=3, Cout=8)
    a2 = _stage(xp2, hp2, a1, bdw2_ref, cb2_ref, H=16, Cin=8, Cout=16)
    a3 = _stage(xp3, hp3, a2, bdw3_ref, cb3_ref, H=8, Cin=16, Cout=32)

    # a3: (TB, 4, 128) with lane = w*32 + c ; fc1 weights pre-permuted to match.
    h = fb1_ref[...]
    for r in range(4):
        h = h + jnp.dot(a3[:, r, :], fw1_ref[r], preferred_element_type=jnp.float32)
    h = jnp.maximum(h, 0.0)                                           # (TB, 128)

    logits = (jnp.dot(h, fw2_ref[...], preferred_element_type=jnp.float32)
              + fb2_ref[...])                                         # (TB, 128)
    # Classes are padded 10 -> 128 lanes; mask the pad before the log-softmax.
    col = lax.broadcasted_iota(jnp.int32, logits.shape, 1)
    logits = jnp.where(col < 10, logits, jnp.float32(-1e30))
    m = jnp.max(logits, axis=-1, keepdims=True)
    lse = m + jnp.log(jnp.sum(jnp.exp(logits - m), axis=-1, keepdims=True))
    out_ref[...] = logits - lse


# ----------------------------------------------------------------------------
# Host-side (NOT jitted) one-time weight re-layout.
# ----------------------------------------------------------------------------
def _conv_block_diag(conv_w, conv_b, W):
    """OIHW conv weights -> 3 block-diagonal matrices (one per kernel row kh).

    bdw[kh][(w_in)*Cin + ci, p*half + j*Cout + co] = conv_w[co, ci, kh, kw]
    for output column w = 2j + p and input column w_in = w + kw - 1 (taps that
    fall outside [0, W) are simply omitted == implicit zero padding).
    """
    conv_w = np.asarray(conv_w, np.float32)
    conv_b = np.asarray(conv_b, np.float32)
    Cout, Cin = conv_w.shape[0], conv_w.shape[1]
    half = (W // 2) * Cout
    bdw = np.zeros((3, W * Cin, W * Cout), np.float32)
    bias = np.zeros((1, W * Cout), np.float32)
    for w in range(W):
        j, p = divmod(w, 2)
        c0 = p * half + j * Cout
        bias[0, c0:c0 + Cout] = conv_b
        for kh in range(3):
            for kw in range(3):
                wi = w + kw - 1
                if 0 <= wi < W:
                    bdw[kh, wi * Cin:(wi + 1) * Cin, c0:c0 + Cout] = \
                        conv_w[:, :, kh, kw].T
    return bdw, bias


def prep_params(p):
    bdw1, cb1 = _conv_block_diag(p["conv1_w"], p["conv1_b"], 32)
    bdw2, cb2 = _conv_block_diag(p["conv2_w"], p["conv2_b"], 16)
    bdw3, cb3 = _conv_block_diag(p["conv3_w"], p["conv3_b"], 8)
    # fc1: PyTorch flatten order is (c, h, w); kernel features are
    # rows = h, lanes = w*32 + c.  Pre-permute to (h, 128, 120), pad -> 128.
    f1 = np.asarray(p["fc1_w"], np.float32).reshape(120, 32, 4, 4)
    f1 = f1.transpose(2, 3, 1, 0).reshape(4, 128, 120)
    fw1 = np.pad(f1, ((0, 0), (0, 0), (0, 8)))                    # (4, 128, 128)
    fb1 = np.pad(np.asarray(p["fc1_b"], np.float32), (0, 8)).reshape(1, 128)
    fw2 = np.pad(np.asarray(p["fc2_w"], np.float32).T, ((0, 8), (0, 118)))
    fb2 = np.pad(np.asarray(p["fc2_b"], np.float32), (0, 118)).reshape(1, 128)
    return tuple(jnp.asarray(a) for a in
                 (bdw1, cb1, bdw2, cb2, bdw3, cb3, fw1, fb1, fw2, fb2))


# ----------------------------------------------------------------------------
# Jitted wrapper: single pallas_call over batch tiles.
# ----------------------------------------------------------------------------
@jax.jit
def forward(x_nchw, prepped):
    B = x_nchw.shape[0]
    # NCHW -> lane-major (B, H, W*C): one small XLA copy; gives contiguous,
    # lane-dense DMA rows and ~32x smaller input VMEM than channel-minor NHWC.
    x = jnp.transpose(x_nchw.astype(jnp.float32), (0, 2, 3, 1)).reshape(B, 32, 96)
    Bpad = ((B + TB - 1) // TB) * TB
    if Bpad != B:                    # padded tail rows are computed and sliced off
        x = jnp.pad(x, ((0, Bpad - B), (0, 0), (0, 0)))
    (bdw1, cb1, bdw2, cb2, bdw3, cb3, fw1, fb1, fw2, fb2) = prepped

    out = pl.pallas_call(
        convnet_kernel,
        out_shape=jax.ShapeDtypeStruct((Bpad, 128), jnp.float32),
        grid=(Bpad // TB,),
        in_specs=[
            pl.BlockSpec((TB, 32, 96), lambda b: (b, 0, 0)),
            pl.BlockSpec((3, 96, 256), lambda b: (0, 0, 0)),
            pl.BlockSpec((1, 256), lambda b: (0, 0)),
            pl.BlockSpec((3, 128, 256), lambda b: (0, 0, 0)),
            pl.BlockSpec((1, 256), lambda b: (0, 0)),
            pl.BlockSpec((3, 128, 256), lambda b: (0, 0, 0)),
            pl.BlockSpec((1, 256), lambda b: (0, 0)),
            pl.BlockSpec((4, 128, 128), lambda b: (0, 0, 0)),
            pl.BlockSpec((1, 128), lambda b: (0, 0)),
            pl.BlockSpec((128, 128), lambda b: (0, 0)),
            pl.BlockSpec((1, 128), lambda b: (0, 0)),
        ],
        out_specs=pl.BlockSpec((TB, 128), lambda b: (b, 0)),
        scratch_shapes=[
            pltpu.VMEM((TB, 34, 96), jnp.float32),    # padded input, stage 1
            pltpu.VMEM((TB, 32, 128), jnp.float32),   # W-pooled conv1
            pltpu.VMEM((TB, 18, 128), jnp.float32),   # padded input, stage 2
            pltpu.VMEM((TB, 16, 128), jnp.float32),   # W-pooled conv2
            pltpu.VMEM((TB, 10, 128), jnp.float32),   # padded input, stage 3
            pltpu.VMEM((TB, 8, 128), jnp.float32),    # W-pooled conv3
        ],
        compiler_params=pltpu.CompilerParams(
            dimension_semantics=("parallel",)),
    )(x, bdw1, cb1, bdw2, cb2, bdw3, cb3, fw1, fb1, fw2, fb2)
    return out[:B, :10]


# ----------------------------------------------------------------------------
# Deterministic synthetic parameters (PyTorch shapes) + pure-JAX reference
# ----------------------------------------------------------------------------
def init_params(key):
    ks = jax.random.split(key, 10)

    def u(k, shape, fan_in):
        bound = 1.0 / np.sqrt(fan_in)
        return jax.random.uniform(k, shape, jnp.float32, -bound, bound)

    return {
        "conv1_w": u(ks[0], (8, 3, 3, 3), 3 * 9),    "conv1_b": u(ks[1], (8,), 3 * 9),
        "conv2_w": u(ks[2], (16, 8, 3, 3), 8 * 9),   "conv2_b": u(ks[3], (16,), 8 * 9),
        "conv3_w": u(ks[4], (32, 16, 3, 3), 16 * 9), "conv3_b": u(ks[5], (32,), 16 * 9),
        "fc1_w": u(ks[6], (120, 512), 512),          "fc1_b": u(ks[7], (120,), 512),
        "fc2_w": u(ks[8], (10, 120), 120),           "fc2_b": u(ks[9], (10,), 120),
    }


def reference_forward(x, p):
    def conv(x, w, b):
        y = lax.conv_general_dilated(x, w, (1, 1), [(1, 1), (1, 1)],
                                     dimension_numbers=("NCHW", "OIHW", "NCHW"))
        return y + b[None, :, None, None]

    def pool_relu(x):
        y = lax.reduce_window(x, -jnp.inf, lax.max, (1, 1, 2, 2), (1, 1, 2, 2), "VALID")
        return jnp.maximum(y, 0.0)

    x = pool_relu(conv(x, p["conv1_w"], p["conv1_b"]))
    x = pool_relu(conv(x, p["conv2_w"], p["conv2_b"]))
    x = pool_relu(conv(x, p["conv3_w"], p["conv3_b"]))
    x = x.reshape(x.shape[0], -1)
    x = jnp.maximum(x @ p["fc1_w"].T + p["fc1_b"], 0.0)
    x = x @ p["fc2_w"].T + p["fc2_b"]
    return jax.nn.log_softmax(x, axis=1)


if __name__ == "__main__":
    key = jax.random.PRNGKey(0)
    kx, kp = jax.random.split(key)
    # Module implies 3x32x32 inputs (32 -> 16 -> 8 -> 4 after the three pools).
    # B=16 with TB=8 gives 2 grid steps (both v7x TensorCores busy).
    B = 16
    x = jax.random.normal(kx, (B, 3, 32, 32), jnp.float32)
    params = init_params(kp)

    prepped = prep_params(params)          # one-time host-side weight re-layout
    out = forward(x, prepped)
    out = jax.block_until_ready(out)

    ref = reference_forward(x, params)
    assert out.shape == (B, 10)
    np.testing.assert_allclose(np.asarray(out), np.asarray(ref), rtol=1e-4, atol=1e-4)
    print("KERNEL_OK")
</pallas_src>

<mosaic_0001>
module attributes {stable_mosaic.version = 11 : i64} {
  func.func @convnet_kernel(%arg0: i32, %arg1: memref<8x32x96xf32, #tpu.memory_space<vmem>>, %arg2: memref<3x96x256xf32, #tpu.memory_space<vmem>>, %arg3: memref<1x256xf32, #tpu.memory_space<vmem>>, %arg4: memref<3x128x256xf32, #tpu.memory_space<vmem>>, %arg5: memref<1x256xf32, #tpu.memory_space<vmem>>, %arg6: memref<3x128x256xf32, #tpu.memory_space<vmem>>, %arg7: memref<1x256xf32, #tpu.memory_space<vmem>>, %arg8: memref<4x128x128xf32, #tpu.memory_space<vmem>>, %arg9: memref<1x128xf32, #tpu.memory_space<vmem>>, %arg10: memref<128x128xf32, #tpu.memory_space<vmem>>, %arg11: memref<1x128xf32, #tpu.memory_space<vmem>>, %arg12: memref<8x128xf32, #tpu.memory_space<vmem>>, %arg13: memref<8x34x96xf32, #tpu.memory_space<vmem>>, %arg14: memref<8x32x128xf32, #tpu.memory_space<vmem>>, %arg15: memref<8x18x128xf32, #tpu.memory_space<vmem>>, %arg16: memref<8x16x128xf32, #tpu.memory_space<vmem>>, %arg17: memref<8x10x128xf32, #tpu.memory_space<vmem>>, %arg18: memref<8x8x128xf32, #tpu.memory_space<vmem>>) attributes {dimension_semantics = [#tpu.dimension_semantics<parallel>], iteration_bounds = array<i64: 2>, scalar_prefetch = 0 : i64, scratch_operands = 6 : i64, tpu.core_type = #tpu.core_type<tc>, window_params = [{transform_indices = @transform_0, window_bounds = array<i64: 8, 32, 96>}, {pipeline_mode = #tpu.pipeline_mode<synchronous>, transform_indices = @transform_1, window_bounds = array<i64: 3, 96, 256>}, {pipeline_mode = #tpu.pipeline_mode<synchronous>, transform_indices = @transform_2, window_bounds = array<i64: 1, 256>}, {pipeline_mode = #tpu.pipeline_mode<synchronous>, transform_indices = @transform_3, window_bounds = array<i64: 3, 128, 256>}, {pipeline_mode = #tpu.pipeline_mode<synchronous>, transform_indices = @transform_4, window_bounds = array<i64: 1, 256>}, {pipeline_mode = #tpu.pipeline_mode<synchronous>, transform_indices = @transform_5, window_bounds = array<i64: 3, 128, 256>}, {pipeline_mode = #tpu.pipeline_mode<synchronous>, transform_indices = @transform_6, window_bounds = array<i64: 1, 256>}, {pipeline_mode = #tpu.pipeline_mode<synchronous>, transform_indices = @transform_7, window_bounds = array<i64: 4, 128, 128>}, {pipeline_mode = #tpu.pipeline_mode<synchronous>, transform_indices = @transform_8, window_bounds = array<i64: 1, 128>}, {pipeline_mode = #tpu.pipeline_mode<synchronous>, transform_indices = @transform_9, window_bounds = array<i64: 128, 128>}, {pipeline_mode = #tpu.pipeline_mode<synchronous>, transform_indices = @transform_10, window_bounds = array<i64: 1, 128>}, {transform_indices = @transform_11, window_bounds = array<i64: 8, 128>}]} {
    %c0 = arith.constant 0 : index
    %c0_0 = arith.constant 0 : index
    %c0_1 = arith.constant 0 : index
    %0 = vector.load %arg1[%c0, %c0_0, %c0_1] : memref<8x32x96xf32, #tpu.memory_space<vmem>>, vector<8x32x96xf32>
    %cst = arith.constant 0.000000e+00 : f32
    %1 = vector.broadcast %cst : f32 to vector<8x1x96xf32>
    %c0_2 = arith.constant 0 : index
    %c0_3 = arith.constant 0 : index
    %c0_4 = arith.constant 0 : index
    %2 = vector.load %arg13[%c0_2, %c0_3, %c0_4] : memref<8x34x96xf32, #tpu.memory_space<vmem>>, vector<8x1x96xf32>
    tpu.vector_store %arg13[%c0_2, %c0_3, %c0_4], %1 {strides = array<i32>} : memref<8x34x96xf32, #tpu.memory_space<vmem>>, vector<8x1x96xf32>,
    %c0_5 = arith.constant 0 : index
    %c33 = arith.constant 33 : index
    %c0_6 = arith.constant 0 : index
    %3 = vector.load %arg13[%c0_5, %c33, %c0_6] : memref<8x34x96xf32, #tpu.memory_space<vmem>>, vector<8x1x96xf32>
    tpu.vector_store %arg13[%c0_5, %c33, %c0_6], %1 {strides = array<i32>} : memref<8x34x96xf32, #tpu.memory_space<vmem>>, vector<8x1x96xf32>,
    %c0_7 = arith.constant 0 : index
    %c1 = arith.constant 1 : index
    %c0_8 = arith.constant 0 : index
    %4 = vector.load %arg13[%c0_7, %c1, %c0_8] : memref<8x34x96xf32, #tpu.memory_space<vmem>>, vector<8x32x96xf32>
    tpu.vector_store %arg13[%c0_7, %c1, %c0_8], %0 {strides = array<i32>} : memref<8x34x96xf32, #tpu.memory_space<vmem>>, vector<8x32x96xf32>,
    %c0_9 = arith.constant 0 : index
    %c0_10 = arith.constant 0 : index
    %5 = vector.load %arg3[%c0_9, %c0_10] : memref<1x256xf32, #tpu.memory_space<vmem>>, vector<1x256xf32>
    %c0_11 = arith.constant 0 : index
    %c0_12 = arith.constant 0 : index
    %c0_13 = arith.constant 0 : index
    %6 = vector.load %arg13[%c0_11, %c0_12, %c0_13] : memref<8x34x96xf32, #tpu.memory_space<vmem>>, vector<8x32x96xf32>
    %7 = vector.shape_cast %6 : vector<8x32x96xf32> to vector<256x96xf32>
    %c0_14 = arith.constant 0 : index
    %c0_15 = arith.constant 0 : index
    %c0_16 = arith.constant 0 : index
    %8 = vector.load %arg2[%c0_14, %c0_15, %c0_16] : memref<3x96x256xf32, #tpu.memory_space<vmem>>, vector<1x96x256xf32>
    %9 = vector.shape_cast %8 : vector<1x96x256xf32> to vector<96x256xf32>
    %cst_17 = arith.constant dense<0.000000e+00> : vector<256x256xf32>
    %10 = tpu.matmul %7, %9, %cst_17 {dimension_numbers = #tpu.dot_dimension_numbers<[1], [0], [0], [1], [0, 0, 1, 1], [], []>} : vector<256x96xf32>, vector<96x256xf32>, vector<256x256xf32> -> vector<256x256xf32>
    %11 = vector.broadcast %5 : vector<1x256xf32> to vector<256x256xf32>
    %12 = arith.addf %11, %10 : vector<256x256xf32>
    %c0_18 = arith.constant 0 : index
    %c1_19 = arith.constant 1 : index
    %c0_20 = arith.constant 0 : index
    %13 = vector.load %arg13[%c0_18, %c1_19, %c0_20] : memref<8x34x96xf32, #tpu.memory_space<vmem>>, vector<8x32x96xf32>
    %14 = vector.shape_cast %13 : vector<8x32x96xf32> to vector<256x96xf32>
    %c1_21 = arith.constant 1 : index
    %c0_22 = arith.constant 0 : index
    %c0_23 = arith.constant 0 : index
    %15 = vector.load %arg2[%c1_21, %c0_22, %c0_23] : memref<3x96x256xf32, #tpu.memory_space<vmem>>, vector<1x96x256xf32>
    %16 = vector.shape_cast %15 : vector<1x96x256xf32> to vector<96x256xf32>
    %cst_24 = arith.constant dense<0.000000e+00> : vector<256x256xf32>
    %17 = tpu.matmul %14, %16, %cst_24 {dimension_numbers = #tpu.dot_dimension_numbers<[1], [0], [0], [1], [0, 0, 1, 1], [], []>} : vector<256x96xf32>, vector<96x256xf32>, vector<256x256xf32> -> vector<256x256xf32>
    %18 = arith.addf %12, %17 : vector<256x256xf32>
    %c0_25 = arith.constant 0 : index
    %c2 = arith.constant 2 : index
    %c0_26 = arith.constant 0 : index
    %19 = vector.load %arg13[%c0_25, %c2, %c0_26] : memref<8x34x96xf32, #tpu.memory_space<vmem>>, vector<8x32x96xf32>
    %20 = vector.shape_cast %19 : vector<8x32x96xf32> to vector<256x96xf32>
    %c2_27 = arith.constant 2 : index
    %c0_28 = arith.constant 0 : index
    %c0_29 = arith.constant 0 : index
    %21 = vector.load %arg2[%c2_27, %c0_28, %c0_29] : memref<3x96x256xf32, #tpu.memory_space<vmem>>, vector<1x96x256xf32>
    %22 = vector.shape_cast %21 : vector<1x96x256xf32> to vector<96x256xf32>
    %cst_30 = arith.constant dense<0.000000e+00> : vector<256x256xf32>
    %23 = tpu.matmul %20, %22, %cst_30 {dimension_numbers = #tpu.dot_dimension_numbers<[1], [0], [0], [1], [0, 0, 1, 1], [], []>} : vector<256x96xf32>, vector<96x256xf32>, vector<256x256xf32> -> vector<256x256xf32>
    %24 = arith.addf %18, %23 : vector<256x256xf32>
    %25 = vector.extract_strided_slice %24 {offsets = [0, 0], sizes = [256, 128], strides = [1, 1]} : vector<256x256xf32> to vector<256x128xf32>
    %26 = vector.extract_strided_slice %24 {offsets = [0, 128], sizes = [256, 128], strides = [1, 1]} : vector<256x256xf32> to vector<256x128xf32>
    %27 = arith.maximumf %25, %26 : vector<256x128xf32>
    %28 = vector.shape_cast %27 : vector<256x128xf32> to vector<8x32x128xf32>
    %c0_31 = arith.constant 0 : index
    %c0_32 = arith.constant 0 : index
    %c0_33 = arith.constant 0 : index
    %29 = vector.load %arg14[%c0_31, %c0_32, %c0_33] : memref<8x32x128xf32, #tpu.memory_space<vmem>>, vector<8x32x128xf32>
    tpu.vector_store %arg14[%c0_31, %c0_32, %c0_33], %28 {strides = array<i32>} : memref<8x32x128xf32, #tpu.memory_space<vmem>>, vector<8x32x128xf32>,
    %c0_34 = arith.constant 0 : index
    %c0_35 = arith.constant 0 : index
    %c0_36 = arith.constant 0 : index
    %30 = tpu.strided_load %arg14[%c0_34, %c0_35, %c0_36] {strides = array<i32: 1, 2, 1>} : memref<8x32x128xf32, #tpu.memory_space<vmem>>, vector<8x16x128xf32>
    %c0_37 = arith.constant 0 : index
    %c1_38 = arith.constant 1 : index
    %c0_39 = arith.constant 0 : index
    %31 = tpu.strided_load %arg14[%c0_37, %c1_38, %c0_39] {strides = array<i32: 1, 2, 1>} : memref<8x32x128xf32, #tpu.memory_space<vmem>>, vector<8x16x128xf32>
    %32 = arith.maximumf %30, %31 : vector<8x16x128xf32>
    %cst_40 = arith.constant 0.000000e+00 : f32
    %33 = vector.broadcast %cst_40 : f32 to vector<8x16x128xf32>
    %34 = arith.maximumf %32, %33 : vector<8x16x128xf32>
    %cst_41 = arith.constant 0.000000e+00 : f32
    %35 = vector.broadcast %cst_41 : f32 to vector<8x1x128xf32>
    %c0_42 = arith.constant 0 : index
    %c0_43 = arith.constant 0 : index
    %c0_44 = arith.constant 0 : index
    %36 = vector.load %arg15[%c0_42, %c0_43, %c0_44] : memref<8x18x128xf32, #tpu.memory_space<vmem>>, vector<8x1x128xf32>
    tpu.vector_store %arg15[%c0_42, %c0_43, %c0_44], %35 {strides = array<i32>} : memref<8x18x128xf32, #tpu.memory_space<vmem>>, vector<8x1x128xf32>,
    %c0_45 = arith.constant 0 : index
    %c17 = arith.constant 17 : index
    %c0_46 = arith.constant 0 : index
    %37 = vector.load %arg15[%c0_45, %c17, %c0_46] : memref<8x18x128xf32, #tpu.memory_space<vmem>>, vector<8x1x128xf32>
    tpu.vector_store %arg15[%c0_45, %c17, %c0_46], %35 {strides = array<i32>} : memref<8x18x128xf32, #tpu.memory_space<vmem>>, vector<8x1x128xf32>,
    %c0_47 = arith.constant 0 : index
    %c1_48 = arith.constant 1 : index
    %c0_49 = arith.constant 0 : index
    %38 = vector.load %arg15[%c0_47, %c1_48, %c0_49] : memref<8x18x128xf32, #tpu.memory_space<vmem>>, vector<8x16x128xf32>
    tpu.vector_store %arg15[%c0_47, %c1_48, %c0_49], %34 {strides = array<i32>} : memref<8x18x128xf32, #tpu.memory_space<vmem>>, vector<8x16x128xf32>,
    %c0_50 = arith.constant 0 : index
    %c0_51 = arith.constant 0 : index
    %39 = vector.load %arg5[%c0_50, %c0_51] : memref<1x256xf32, #tpu.memory_space<vmem>>, vector<1x256xf32>
    %c0_52 = arith.constant 0 : index
    %c0_53 = arith.constant 0 : index
    %c0_54 = arith.constant 0 : index
    %40 = vector.load %arg15[%c0_52, %c0_53, %c0_54] : memref<8x18x128xf32, #tpu.memory_space<vmem>>, vector<8x16x128xf32>
    %41 = vector.shape_cast %40 : vector<8x16x128xf32> to vector<128x128xf32>
    %c0_55 = arith.constant 0 : index
    %c0_56 = arith.constant 0 : index
    %c0_57 = arith.constant 0 : index
    %42 = vector.load %arg4[%c0_55, %c0_56, %c0_57] : memref<3x128x256xf32, #tpu.memory_space<vmem>>, vector<1x128x256xf32>
    %43 = vector.shape_cast %42 : vector<1x128x256xf32> to vector<128x256xf32>
    %cst_58 = arith.constant dense<0.000000e+00> : vector<128x256xf32>
    %44 = tpu.matmul %41, %43, %cst_58 {dimension_numbers = #tpu.dot_dimension_numbers<[1], [0], [0], [1], [0, 0, 1, 1], [], []>} : vector<128x128xf32>, vector<128x256xf32>, vector<128x256xf32> -> vector<128x256xf32>
    %45 = vector.broadcast %39 : vector<1x256xf32> to vector<128x256xf32>
    %46 = arith.addf %45, %44 : vector<128x256xf32>
    %c0_59 = arith.constant 0 : index
    %c1_60 = arith.constant 1 : index
    %c0_61 = arith.constant 0 : index
    %47 = vector.load %arg15[%c0_59, %c1_60, %c0_61] : memref<8x18x128xf32, #tpu.memory_space<vmem>>, vector<8x16x128xf32>
    %48 = vector.shape_cast %47 : vector<8x16x128xf32> to vector<128x128xf32>
    %c1_62 = arith.constant 1 : index
    %c0_63 = arith.constant 0 : index
    %c0_64 = arith.constant 0 : index
    %49 = vector.load %arg4[%c1_62, %c0_63, %c0_64] : memref<3x128x256xf32, #tpu.memory_space<vmem>>, vector<1x128x256xf32>
    %50 = vector.shape_cast %49 : vector<1x128x256xf32> to vector<128x256xf32>
    %cst_65 = arith.constant dense<0.000000e+00> : vector<128x256xf32>
    %51 = tpu.matmul %48, %50, %cst_65 {dimension_numbers = #tpu.dot_dimension_numbers<[1], [0], [0], [1], [0, 0, 1, 1], [], []>} : vector<128x128xf32>, vector<128x256xf32>, vector<128x256xf32> -> vector<128x256xf32>
    %52 = arith.addf %46, %51 : vector<128x256xf32>
    %c0_66 = arith.constant 0 : index
    %c2_67 = arith.constant 2 : index
    %c0_68 = arith.constant 0 : index
    %53 = vector.load %arg15[%c0_66, %c2_67, %c0_68] : memref<8x18x128xf32, #tpu.memory_space<vmem>>, vector<8x16x128xf32>
    %54 = vector.shape_cast %53 : vector<8x16x128xf32> to vector<128x128xf32>
    %c2_69 = arith.constant 2 : index
    %c0_70 = arith.constant 0 : index
    %c0_71 = arith.constant 0 : index
    %55 = vector.load %arg4[%c2_69, %c0_70, %c0_71] : memref<3x128x256xf32, #tpu.memory_space<vmem>>, vector<1x128x256xf32>
    %56 = vector.shape_cast %55 : vector<1x128x256xf32> to vector<128x256xf32>
    %cst_72 = arith.constant dense<0.000000e+00> : vector<128x256xf32>
    %57 = tpu.matmul %54, %56, %cst_72 {dimension_numbers = #tpu.dot_dimension_numbers<[1], [0], [0], [1], [0, 0, 1, 1], [], []>} : vector<128x128xf32>, vector<128x256xf32>, vector<128x256xf32> -> vector<128x256xf32>
    %58 = arith.addf %52, %57 : vector<128x256xf32>
    %59 = vector.extract_strided_slice %58 {offsets = [0, 0], sizes = [128, 128], strides = [1, 1]} : vector<128x256xf32> to vector<128x128xf32>
    %60 = vector.extract_strided_slice %58 {offsets = [0, 128], sizes = [128, 128], strides = [1, 1]} : vector<128x256xf32> to vector<128x128xf32>
    %61 = arith.maximumf %59, %60 : vector<128x128xf32>
    %62 = vector.shape_cast %61 : vector<128x128xf32> to vector<8x16x128xf32>
    %c0_73 = arith.constant 0 : index
    %c0_74 = arith.constant 0 : index
    %c0_75 = arith.constant 0 : index
    %63 = vector.load %arg16[%c0_73, %c0_74, %c0_75] : memref<8x16x128xf32, #tpu.memory_space<vmem>>, vector<8x16x128xf32>
    tpu.vector_store %arg16[%c0_73, %c0_74, %c0_75], %62 {strides = array<i32>} : memref<8x16x128xf32, #tpu.memory_space<vmem>>, vector<8x16x128xf32>,
    %c0_76 = arith.constant 0 : index
    %c0_77 = arith.constant 0 : index
    %c0_78 = arith.constant 0 : index
    %64 = tpu.strided_load %arg16[%c0_76, %c0_77, %c0_78] {strides = array<i32: 1, 2, 1>} : memref<8x16x128xf32, #tpu.memory_space<vmem>>, vector<8x8x128xf32>
    %c0_79 = arith.constant 0 : index
    %c1_80 = arith.constant 1 : index
    %c0_81 = arith.constant 0 : index
    %65 = tpu.strided_load %arg16[%c0_79, %c1_80, %c0_81] {strides = array<i32: 1, 2, 1>} : memref<8x16x128xf32, #tpu.memory_space<vmem>>, vector<8x8x128xf32>
    %66 = arith.maximumf %64, %65 : vector<8x8x128xf32>
    %cst_82 = arith.constant 0.000000e+00 : f32
    %67 = vector.broadcast %cst_82 : f32 to vector<8x8x128xf32>
    %68 = arith.maximumf %66, %67 : vector<8x8x128xf32>
    %cst_83 = arith.constant 0.000000e+00 : f32
    %69 = vector.broadcast %cst_83 : f32 to vector<8x1x128xf32>
    %c0_84 = arith.constant 0 : index
    %c0_85 = arith.constant 0 : index
    %c0_86 = arith.constant 0 : index
    %70 = vector.load %arg17[%c0_84, %c0_85, %c0_86] : memref<8x10x128xf32, #tpu.memory_space<vmem>>, vector<8x1x128xf32>
    tpu.vector_store %arg17[%c0_84, %c0_85, %c0_86], %69 {strides = array<i32>} : memref<8x10x128xf32, #tpu.memory_space<vmem>>, vector<8x1x128xf32>,
    %c0_87 = arith.constant 0 : index
    %c9 = arith.constant 9 : index
    %c0_88 = arith.constant 0 : index
    %71 = vector.load %arg17[%c0_87, %c9, %c0_88] : memref<8x10x128xf32, #tpu.memory_space<vmem>>, vector<8x1x128xf32>
    tpu.vector_store %arg17[%c0_87, %c9, %c0_88], %69 {strides = array<i32>} : memref<8x10x128xf32, #tpu.memory_space<vmem>>, vector<8x1x128xf32>,
    %c0_89 = arith.constant 0 : index
    %c1_90 = arith.constant 1 : index
    %c0_91 = arith.constant 0 : index
    %72 = vector.load %arg17[%c0_89, %c1_90, %c0_91] : memref<8x10x128xf32, #tpu.memory_space<vmem>>, vector<8x8x128xf32>
    tpu.vector_store %arg17[%c0_89, %c1_90, %c0_91], %68 {strides = array<i32>} : memref<8x10x128xf32, #tpu.memory_space<vmem>>, vector<8x8x128xf32>,
    %c0_92 = arith.constant 0 : index
    %c0_93 = arith.constant 0 : index
    %73 = vector.load %arg7[%c0_92, %c0_93] : memref<1x256xf32, #tpu.memory_space<vmem>>, vector<1x256xf32>
    %c0_94 = arith.constant 0 : index
    %c0_95 = arith.constant 0 : index
    %c0_96 = arith.constant 0 : index
    %74 = vector.load %arg17[%c0_94, %c0_95, %c0_96] : memref<8x10x128xf32, #tpu.memory_space<vmem>>, vector<8x8x128xf32>
    %75 = vector.shape_cast %74 : vector<8x8x128xf32> to vector<64x128xf32>
    %c0_97 = arith.constant 0 : index
    %c0_98 = arith.constant 0 : index
    %c0_99 = arith.constant 0 : index
    %76 = vector.load %arg6[%c0_97, %c0_98, %c0_99] : memref<3x128x256xf32, #tpu.memory_space<vmem>>, vector<1x128x256xf32>
    %77 = vector.shape_cast %76 : vector<1x128x256xf32> to vector<128x256xf32>
    %cst_100 = arith.constant dense<0.000000e+00> : vector<64x256xf32>
    %78 = tpu.matmul %75, %77, %cst_100 {dimension_numbers = #tpu.dot_dimension_numbers<[1], [0], [0], [1], [0, 0, 1, 1], [], []>} : vector<64x128xf32>, vector<128x256xf32>, vector<64x256xf32> -> vector<64x256xf32>
    %79 = vector.broadcast %73 : vector<1x256xf32> to vector<64x256xf32>
    %80 = arith.addf %79, %78 : vector<64x256xf32>
    %c0_101 = arith.constant 0 : index
    %c1_102 = arith.constant 1 : index
    %c0_103 = arith.constant 0 : index
    %81 = vector.load %arg17[%c0_101, %c1_102, %c0_103] : memref<8x10x128xf32, #tpu.memory_space<vmem>>, vector<8x8x128xf32>
    %82 = vector.shape_cast %81 : vector<8x8x128xf32> to vector<64x128xf32>
    %c1_104 = arith.constant 1 : index
    %c0_105 = arith.constant 0 : index
    %c0_106 = arith.constant 0 : index
    %83 = vector.load %arg6[%c1_104, %c0_105, %c0_106] : memref<3x128x256xf32, #tpu.memory_space<vmem>>, vector<1x128x256xf32>
    %84 = vector.shape_cast %83 : vector<1x128x256xf32> to vector<128x256xf32>
    %cst_107 = arith.constant dense<0.000000e+00> : vector<64x256xf32>
    %85 = tpu.matmul %82, %84, %cst_107 {dimension_numbers = #tpu.dot_dimension_numbers<[1], [0], [0], [1], [0, 0, 1, 1], [], []>} : vector<64x128xf32>, vector<128x256xf32>, vector<64x256xf32> -> vector<64x256xf32>
    %86 = arith.addf %80, %85 : vector<64x256xf32>
    %c0_108 = arith.constant 0 : index
    %c2_109 = arith.constant 2 : index
    %c0_110 = arith.constant 0 : index
    %87 = vector.load %arg17[%c0_108, %c2_109, %c0_110] : memref<8x10x128xf32, #tpu.memory_space<vmem>>, vector<8x8x128xf32>
    %88 = vector.shape_cast %87 : vector<8x8x128xf32> to vector<64x128xf32>
    %c2_111 = arith.constant 2 : index
    %c0_112 = arith.constant 0 : index
    %c0_113 = arith.constant 0 : index
    %89 = vector.load %arg6[%c2_111, %c0_112, %c0_113] : memref<3x128x256xf32, #tpu.memory_space<vmem>>, vector<1x128x256xf32>
    %90 = vector.shape_cast %89 : vector<1x128x256xf32> to vector<128x256xf32>
    %cst_114 = arith.constant dense<0.000000e+00> : vector<64x256xf32>
    %91 = tpu.matmul %88, %90, %cst_114 {dimension_numbers = #tpu.dot_dimension_numbers<[1], [0], [0], [1], [0, 0, 1, 1], [], []>} : vector<64x128xf32>, vector<128x256xf32>, vector<64x256xf32> -> vector<64x256xf32>
    %92 = arith.addf %86, %91 : vector<64x256xf32>
    %93 = vector.extract_strided_slice %92 {offsets = [0, 0], sizes = [64, 128], strides = [1, 1]} : vector<64x256xf32> to vector<64x128xf32>
    %94 = vector.extract_strided_slice %92 {offsets = [0, 128], sizes = [64, 128], strides = [1, 1]} : vector<64x256xf32> to vector<64x128xf32>
    %95 = arith.maximumf %93, %94 : vector<64x128xf32>
    %96 = vector.shape_cast %95 : vector<64x128xf32> to vector<8x8x128xf32>
    %c0_115 = arith.constant 0 : index
    %c0_116 = arith.constant 0 : index
    %c0_117 = arith.constant 0 : index
    %97 = vector.load %arg18[%c0_115, %c0_116, %c0_117] : memref<8x8x128xf32, #tpu.memory_space<vmem>>, vector<8x8x128xf32>
    tpu.vector_store %arg18[%c0_115, %c0_116, %c0_117], %96 {strides = array<i32>} : memref<8x8x128xf32, #tpu.memory_space<vmem>>, vector<8x8x128xf32>,
    %c0_118 = arith.constant 0 : index
    %c0_119 = arith.constant 0 : index
    %c0_120 = arith.constant 0 : index
    %98 = tpu.strided_load %arg18[%c0_118, %c0_119, %c0_120] {strides = array<i32: 1, 2, 1>} : memref<8x8x128xf32, #tpu.memory_space<vmem>>, vector<8x4x128xf32>
    %c0_121 = arith.constant 0 : index
    %c1_122 = arith.constant 1 : index
    %c0_123 = arith.constant 0 : index
    %99 = tpu.strided_load %arg18[%c0_121, %c1_122, %c0_123] {strides = array<i32: 1, 2, 1>} : memref<8x8x128xf32, #tpu.memory_space<vmem>>, vector<8x4x128xf32>
    %100 = arith.maximumf %98, %99 : vector<8x4x128xf32>
    %cst_124 = arith.constant 0.000000e+00 : f32
    %101 = vector.broadcast %cst_124 : f32 to vector<8x4x128xf32>
    %102 = arith.maximumf %100, %101 : vector<8x4x128xf32>
    %c0_125 = arith.constant 0 : index
    %c0_126 = arith.constant 0 : index
    %103 = vector.load %arg9[%c0_125, %c0_126] : memref<1x128xf32, #tpu.memory_space<vmem>>, vector<1x128xf32>
    %104 = vector.extract_strided_slice %102 {offsets = [0, 0, 0], sizes = [8, 1, 128], strides = [1, 1, 1]} : vector<8x4x128xf32> to vector<8x1x128xf32>
    %105 = vector.shape_cast %104 : vector<8x1x128xf32> to vector<8x128xf32>
    %c0_127 = arith.constant 0 : index
    %c0_128 = arith.constant 0 : index
    %c0_129 = arith.constant 0 : index
    %106 = vector.load %arg8[%c0_127, %c0_128, %c0_129] : memref<4x128x128xf32, #tpu.memory_space<vmem>>, vector<1x128x128xf32>
    %107 = vector.shape_cast %106 : vector<1x128x128xf32> to vector<128x128xf32>
    %cst_130 = arith.constant dense<0.000000e+00> : vector<8x128xf32>
    %108 = tpu.matmul %105, %107, %cst_130 {dimension_numbers = #tpu.dot_dimension_numbers<[1], [0], [0], [1], [0, 0, 1, 1], [], []>} : vector<8x128xf32>, vector<128x128xf32>, vector<8x128xf32> -> vector<8x128xf32>
    %109 = vector.broadcast %103 : vector<1x128xf32> to vector<8x128xf32>
    %110 = arith.addf %109, %108 : vector<8x128xf32>
    %111 = vector.extract_strided_slice %102 {offsets = [0, 1, 0], sizes = [8, 1, 128], strides = [1, 1, 1]} : vector<8x4x128xf32> to vector<8x1x128xf32>
    %112 = vector.shape_cast %111 : vector<8x1x128xf32> to vector<8x128xf32>
    %c1_131 = arith.constant 1 : index
    %c0_132 = arith.constant 0 : index
    %c0_133 = arith.constant 0 : index
    %113 = vector.load %arg8[%c1_131, %c0_132, %c0_133] : memref<4x128x128xf32, #tpu.memory_space<vmem>>, vector<1x128x128xf32>
    %114 = vector.shape_cast %113 : vector<1x128x128xf32> to vector<128x128xf32>
    %cst_134 = arith.constant dense<0.000000e+00> : vector<8x128xf32>
    %115 = tpu.matmul %112, %114, %cst_134 {dimension_numbers = #tpu.dot_dimension_numbers<[1], [0], [0], [1], [0, 0, 1, 1], [], []>} : vector<8x128xf32>, vector<128x128xf32>, vector<8x128xf32> -> vector<8x128xf32>
    %116 = arith.addf %110, %115 : vector<8x128xf32>
    %117 = vector.extract_strided_slice %102 {offsets = [0, 2, 0], sizes = [8, 1, 128], strides = [1, 1, 1]} : vector<8x4x128xf32> to vector<8x1x128xf32>
    %118 = vector.shape_cast %117 : vector<8x1x128xf32> to vector<8x128xf32>
    %c2_135 = arith.constant 2 : index
    %c0_136 = arith.constant 0 : index
    %c0_137 = arith.constant 0 : index
    %119 = vector.load %arg8[%c2_135, %c0_136, %c0_137] : memref<4x128x128xf32, #tpu.memory_space<vmem>>, vector<1x128x128xf32>
    %120 = vector.shape_cast %119 : vector<1x128x128xf32> to vector<128x128xf32>
    %cst_138 = arith.constant dense<0.000000e+00> : vector<8x128xf32>
    %121 = tpu.matmul %118, %120, %cst_138 {dimension_numbers = #tpu.dot_dimension_numbers<[1], [0], [0], [1], [0, 0, 1, 1], [], []>} : vector<8x128xf32>, vector<128x128xf32>, vector<8x128xf32> -> vector<8x128xf32>
    %122 = arith.addf %116, %121 : vector<8x128xf32>
    %123 = vector.extract_strided_slice %102 {offsets = [0, 3, 0], sizes = [8, 1, 128], strides = [1, 1, 1]} : vector<8x4x128xf32> to vector<8x1x128xf32>
    %124 = vector.shape_cast %123 : vector<8x1x128xf32> to vector<8x128xf32>
    %c3 = arith.constant 3 : index
    %c0_139 = arith.constant 0 : index
    %c0_140 = arith.constant 0 : index
    %125 = vector.load %arg8[%c3, %c0_139, %c0_140] : memref<4x128x128xf32, #tpu.memory_space<vmem>>, vector<1x128x128xf32>
    %126 = vector.shape_cast %125 : vector<1x128x128xf32> to vector<128x128xf32>
    %cst_141 = arith.constant dense<0.000000e+00> : vector<8x128xf32>
    %127 = tpu.matmul %124, %126, %cst_141 {dimension_numbers = #tpu.dot_dimension_numbers<[1], [0], [0], [1], [0, 0, 1, 1], [], []>} : vector<8x128xf32>, vector<128x128xf32>, vector<8x128xf32> -> vector<8x128xf32>
    %128 = arith.addf %122, %127 : vector<8x128xf32>
    %cst_142 = arith.constant 0.000000e+00 : f32
    %129 = vector.broadcast %cst_142 : f32 to vector<8x128xf32>
    %130 = arith.maximumf %128, %129 : vector<8x128xf32>
    %c0_143 = arith.constant 0 : index
    %c0_144 = arith.constant 0 : index
    %131 = vector.load %arg10[%c0_143, %c0_144] : memref<128x128xf32, #tpu.memory_space<vmem>>, vector<128x128xf32>
    %cst_145 = arith.constant dense<0.000000e+00> : vector<8x128xf32>
    %132 = tpu.matmul %130, %131, %cst_145 {dimension_numbers = #tpu.dot_dimension_numbers<[1], [0], [0], [1], [0, 0, 1, 1], [], []>} : vector<8x128xf32>, vector<128x128xf32>, vector<8x128xf32> -> vector<8x128xf32>
    %c0_146 = arith.constant 0 : index
    %c0_147 = arith.constant 0 : index
    %133 = vector.load %arg11[%c0_146, %c0_147] : memref<1x128xf32, #tpu.memory_space<vmem>>, vector<1x128xf32>
    %134 = vector.broadcast %133 : vector<1x128xf32> to vector<8x128xf32>
    %135 = arith.addf %132, %134 : vector<8x128xf32>
    %136 = tpu.iota {dimensions = array<i32: 1>} : vector<8x128xi32>
    %c10_i32 = arith.constant 10 : i32
    %137 = vector.broadcast %c10_i32 : i32 to vector<8x128xi32>
    %138 = arith.cmpi slt, %136, %137 : vector<8x128xi32>
    %cst_148 = arith.constant -1.000000e+30 : f32
    %139 = vector.broadcast %cst_148 : f32 to vector<8x128xf32>
    %140 = arith.select %138, %135, %139 : vector<8x128xi1>, vector<8x128xf32>
    %cst_149 = arith.constant dense<0xFF800000> : vector<8xf32>
    %141 = vector.multi_reduction <maximumf>, %140, %cst_149 [1] : vector<8x128xf32> to vector<8xf32>
    %142 = vector.shape_cast %141 : vector<8xf32> to vector<8x1xf32>
    %143 = vector.broadcast %142 : vector<8x1xf32> to vector<8x128xf32>
    %144 = arith.subf %140, %143 : vector<8x128xf32>
    %145 = math.exp %144 : vector<8x128xf32>
    %cst_150 = arith.constant dense<0.000000e+00> : vector<8xf32>
    %146 = vector.multi_reduction <add>, %145, %cst_150 [1] : vector<8x128xf32> to vector<8xf32>
    %147 = vector.shape_cast %146 : vector<8xf32> to vector<8x1xf32>
    %148 = math.log %147 : vector<8x1xf32>
    %149 = arith.addf %142, %148 : vector<8x1xf32>
    %150 = vector.broadcast %149 : vector<8x1xf32> to vector<8x128xf32>
    %151 = arith.subf %140, %150 : vector<8x128xf32>
    %c0_151 = arith.constant 0 : index
    %c0_152 = arith.constant 0 : index
    %152 = vector.load %arg12[%c0_151, %c0_152] : memref<8x128xf32, #tpu.memory_space<vmem>>, vector<8x128xf32>
    tpu.vector_store %arg12[%c0_151, %c0_152], %151 {strides = array<i32>} : memref<8x128xf32, #tpu.memory_space<vmem>>, vector<8x128xf32>,
    return
  }
  func.func @transform_0(%arg0: i32) -> (i32, i32, i32) {
    %c0_i32 = arith.constant 0 : i32
    %c0_i32_0 = arith.constant 0 : i32
    %c0_i32_1 = arith.constant 0 : i32
    return %arg0, %c0_i32, %c0_i32_0 : i32, i32, i32
  }
  func.func @transform_1(%arg0: i32) -> (i32, i32, i32) {
    %c0_i32 = arith.constant 0 : i32
    %c0_i32_0 = arith.constant 0 : i32
    %c0_i32_1 = arith.constant 0 : i32
    %c0_i32_2 = arith.constant 0 : i32
    return %c0_i32, %c0_i32_0, %c0_i32_1 : i32, i32, i32
  }
  func.func @transform_2(%arg0: i32) -> (i32, i32) {
    %c0_i32 = arith.constant 0 : i32
    %c0_i32_0 = arith.constant 0 : i32
    %c0_i32_1 = arith.constant 0 : i32
    return %c0_i32, %c0_i32_0 : i32, i32
  }
  func.func @transform_3(%arg0: i32) -> (i32, i32, i32) {
    %c0_i32 = arith.constant 0 : i32
    %c0_i32_0 = arith.constant 0 : i32
    %c0_i32_1 = arith.constant 0 : i32
    %c0_i32_2 = arith.constant 0 : i32
    return %c0_i32, %c0_i32_0, %c0_i32_1 : i32, i32, i32
  }
  func.func @transform_4(%arg0: i32) -> (i32, i32) {
    %c0_i32 = arith.constant 0 : i32
    %c0_i32_0 = arith.constant 0 : i32
    %c0_i32_1 = arith.constant 0 : i32
    return %c0_i32, %c0_i32_0 : i32, i32
  }
  func.func @transform_5(%arg0: i32) -> (i32, i32, i32) {
    %c0_i32 = arith.constant 0 : i32
    %c0_i32_0 = arith.constant 0 : i32
    %c0_i32_1 = arith.constant 0 : i32
    %c0_i32_2 = arith.constant 0 : i32
    return %c0_i32, %c0_i32_0, %c0_i32_1 : i32, i32, i32
  }
  func.func @transform_6(%arg0: i32) -> (i32, i32) {
    %c0_i32 = arith.constant 0 : i32
    %c0_i32_0 = arith.constant 0 : i32
    %c0_i32_1 = arith.constant 0 : i32
    return %c0_i32, %c0_i32_0 : i32, i32
  }
  func.func @transform_7(%arg0: i32) -> (i32, i32, i32) {
    %c0_i32 = arith.constant 0 : i32
    %c0_i32_0 = arith.constant 0 : i32
    %c0_i32_1 = arith.constant 0 : i32
    %c0_i32_2 = arith.constant 0 : i32
    return %c0_i32, %c0_i32_0, %c0_i32_1 : i32, i32, i32
  }
  func.func @transform_8(%arg0: i32) -> (i32, i32) {
    %c0_i32 = arith.constant 0 : i32
    %c0_i32_0 = arith.constant 0 : i32
    %c0_i32_1 = arith.constant 0 : i32
    return %c0_i32, %c0_i32_0 : i32, i32
  }
  func.func @transform_9(%arg0: i32) -> (i32, i32) {
    %c0_i32 = arith.constant 0 : i32
    %c0_i32_0 = arith.constant 0 : i32
    %c0_i32_1 = arith.constant 0 : i32
    return %c0_i32, %c0_i32_0 : i32, i32
  }
  func.func @transform_10(%arg0: i32) -> (i32, i32) {
    %c0_i32 = arith.constant 0 : i32
    %c0_i32_0 = arith.constant 0 : i32
    %c0_i32_1 = arith.constant 0 : i32
    return %c0_i32, %c0_i32_0 : i32, i32
  }
  func.func @transform_11(%arg0: i32) -> (i32, i32) {
    %c0_i32 = arith.constant 0 : i32
    %c0_i32_0 = arith.constant 0 : i32
    return %arg0, %c0_i32 : i32, i32
  }
}

</mosaic_0001>

<bundles_post_ra>
// kernel: forward.1
= control target key start
LH: loop header
LB: loop body
LE: loop exit
PB: predicated region body
PF: predicated region fallthrough
CT: control target
= control target key end

     0   :  { %16 = vsyncpa [#allocation9], 0  ;;  %s7341_s0 = inlined_call_operand.vmem [shape: f32[16,32,96], index: 0, kind: input, shape index: {}]   ;;  %s7342_s1 = inlined_call_operand.vmem [shape: f32[3,96,256], index: 1, kind: input, shape index: {}]   ;;  %s7343_s2 = inlined_call_operand.vmem [shape: f32[1,256], index: 2, kind: input, shape index: {}]   ;;  %s7344_s3 = inlined_call_operand.vmem [shape: f32[3,128,256], index: 3, kind: input, shape index: {}]   ;;  %s7345_s4 = inlined_call_operand.vmem [shape: f32[1,256], index: 4, kind: input, shape index: {}]   ;;  %s7346_s5 = inlined_call_operand.vmem [shape: f32[3,128,256], index: 5, kind: input, shape index: {}]   ;;  %s7347_s6 = inlined_call_operand.vmem [shape: f32[1,256], index: 6, kind: input, shape index: {}]   ;;  %s7348_s7 = inlined_call_operand.vmem [shape: f32[4,128,128], index: 7, kind: input, shape index: {}]   ;;  %s7349_s8 = inlined_call_operand.vmem [shape: f32[1,128], index: 8, kind: input, shape index: {}]   ;;  %s7350_s9 = inlined_call_operand.vmem [shape: f32[128,128], index: 9, kind: input, shape index: {}]   ;;  %s7351_s10 = inlined_call_operand.vmem [shape: f32[1,128], index: 10, kind: input, shape index: {}]   ;;  %s7352_s11 = inlined_call_operand.hbm [shape: f32[16,128], index: 11, kind: output, shape index: {}]  }
   0x1   :  { %18 = vsyncpa [#allocation9 + $0x1], 0  ;;  %s4901_s17 = smov 0   ;;  %s4903_s18 = smov 0  }
   0x2   :  { %s4905_s19 = smov 0   ;;  %s4907_s20 = smov 0  }
   0x3 LB: > { %7362 = sst [smem:[#allocation11_spill]] %s4832_s19  ;;  %s4922_s21 = sadd.s32 4294967295, %s4836_s20   ;;  %s4836_s20 = sphi %s4907_s20, %s7480_s20   ;;  %s4832_s19 = sphi %s4905_s19, %s7477_s19   ;;  %s4828_s18 = sphi %s4903_s18, %s7479_s18   ;;  %s4824_s17 = sphi %s4901_s17, %s7478_s17  }
   0x4   : > { %s4136_s22 = sadd.s32 4294967294, %s4836_s20   ;;  %s4926_s23 = sadd.s32 1, %s4836_s20  }
   0x5   : > { %s267_s24 = sadd.s32 1, %s4832_s19  ;;  %s264_s25 = ssub.s32 %s4836_s20, %s4926_s23 }
   0x6   : > { %p277_p0 = scmp.ne.s32.totalorder %s4832_s19, %s4828_s18  ;;  %p265_p1 = scmp.eq.s32.totalorder %s264_s25, 0 }
   0x7   : > { %p278_p2 = scmp.eq.s32.totalorder %s4922_s21, 1  ;;  %p283_p3 = scmp.ne.s32.totalorder %s4828_s18, %s4824_s17 }
   0x8   : > { %p284_p4 = scmp.eq.s32.totalorder %s4136_s22, 1  ;;  %p4139_p7 = scmp.ge.s32.totalorder %s4836_s20, 1 }
   0x9   : > { %s4937_s26 = scalar_select %p265_p1, %s4832_s19, %s267_s24  }
   0xa   : > { %p4939_p5 = por %p278_p2, %p277_p0  ;;  %p4943_p6 = por %p284_p4, %p283_p3 }
   0xb   : > { %7363 = sst [smem:[#allocation12_spill]] %s4937_s26  ;;  %p342_p8 = scmp.lt.s32.totalorder %s4836_s20, 3 }
   0xd   : > { %p343_p9 = pnand %p4139_p7, %p342_p8 }
   0xf   : > { %346 = sbr.rel (%p343_p9) target bundleno = 1813 (0x715), region = 64 }
  0x14   : > { %v528_v0 = vld [vmem:[%s7342_s1 + $0xb8] sm:$0xff]  ;;  %v527_v1 = vld [vmem:[%s7342_s1 + $0xb0] sm:$0xff]  ;;  %v526_v2 = vld [vmem:[%s7342_s1 + $0xa8] sm:$0xff]  ;;  %s7353_s16 = sshll.u32 %s4922_s21, 3  ;;  %vm422_vm0 = vcmask 778240   ;;  %v7355_v6 = vmov 0.0  }
  0x15   : > { %633 = vmatprep.subr.mxu0 %v528_v0  ;;  %v4199_v3 = vld [vmem:[%s7342_s1 + $0x178] sm:$0xff]  ;;  %v525_v4 = vld [vmem:[%s7342_s1 + $0xa0] sm:$0xff]  ;;  %v4198_v5 = vld [vmem:[%s7342_s1 + $0x170] sm:$0xff]  ;;  %689 = vmatprep.mubr.f32.mxu0 %v7355_v6  ;;  %2064 = vst [vmem:[#allocation4] sm:$0x1] %v7355_v6  ;;  %p5003_p10 = scmp.lt.s32.totalorder %s7353_s16, 15 }
  0x16   : > { %2065 = vst [vmem:[#allocation4 + $0x18] sm:$0x1] %v7355_v6  ;;  %2066 = vst [vmem:[#allocation4 + $0x30] sm:$0x1] %v7355_v6  ;;  %634 = vmatpush1.msra.mxu0 %v527_v1  ;;  %1118 = vmatprep.subr.mxu1 %v4199_v3  ;;  %v524_v7 = vld [vmem:[%s7342_s1 + $0x98] sm:$0xff]  ;;  %v4197_v8 = vld [vmem:[%s7342_s1 + $0x168] sm:$0xff] }
  0x17   : > { %2067 = vst [vmem:[#allocation4 + $0x48] sm:$0x1] %v7355_v6  ;;  %2068 = vst [vmem:[#allocation4 + $0x60] sm:$0x1] %v7355_v6  ;;  %635 = vmatprep.subr.mxu0 %v526_v2  ;;  %1119 = vmatpush1.msra.mxu1 %v4198_v5  ;;  %v523_v9 = vld [vmem:[%s7342_s1 + $0x90] sm:$0xff]  ;;  %v4196_v10 = vld [vmem:[%s7342_s1 + $0x160] sm:$0xff] }
  0x18   : > { %2069 = vst [vmem:[#allocation4 + $0x78] sm:$0x1] %v7355_v6  ;;  %2070 = vst [vmem:[#allocation4 + $0x90] sm:$0x1] %v7355_v6  ;;  %v4195_v11 = vld [vmem:[%s7342_s1 + $0x158] sm:$0xff]  ;;  %636 = vmatpush1.msra.mxu0 %v525_v4  ;;  %1120 = vmatprep.subr.mxu1 %v4197_v8  ;;  %v522_v12 = vld [vmem:[%s7342_s1 + $0x88] sm:$0xff] }
  0x19   : > { %2071 = vst [vmem:[#allocation4 + $0xa8] sm:$0x1] %v7355_v6  ;;  %2072 = vst [vmem:[#allocation4 + $0x11] sm:$0x1] %v7355_v6  ;;  %v4194_v13 = vld [vmem:[%s7342_s1 + $0x150] sm:$0xff]  ;;  %637 = vmatprep.subr.mxu0 %v524_v7  ;;  %1121 = vmatpush1.msra.mxu1 %v4196_v10  ;;  %v521_v14 = vld [vmem:[%s7342_s1 + $0x80] sm:$0xff] }
  0x1a   : > { %2073 = vst [vmem:[#allocation4 + $0x29] sm:$0x1] %v7355_v6  ;;  %2074 = vst [vmem:[#allocation4 + $0x41] sm:$0x1] %v7355_v6  ;;  %v4193_v15 = vld [vmem:[%s7342_s1 + $0x148] sm:$0xff]  ;;  %s7367_s16 = sshll.u32 %s4922_s21, 3  ;;  %638 = vmatpush1.msra.mxu0 %v523_v9  ;;  %1122 = vmatprep.subr.mxu1 %v4195_v11 }
  0x1b   : > { %2075 = vst [vmem:[#allocation4 + $0x59] sm:$0x1] %v7355_v6  ;;  %2076 = vst [vmem:[#allocation4 + $0x71] sm:$0x1] %v7355_v6  ;;  %s7482_s16 = smov (!%p5003_p10, %s7367_s16), 15  ;;  %v520_v16 = vld [vmem:[%s7342_s1 + $0x78] sm:$0xff]  ;;  %639 = vmatprep.subr.mxu0 %v522_v12  ;;  %1123 = vmatpush1.msra.mxu1 %v4194_v13 }
  0x1c   : > { %2077 = vst [vmem:[#allocation4 + $0x89] sm:$0x1] %v7355_v6  ;;  %2078 = vst [vmem:[#allocation4 + $0xa1] sm:$0x1] %v7355_v6  ;;  %v4192_v17 = vld [vmem:[%s7342_s1 + $0x140] sm:$0xff]  ;;  %v519_v18 = vld [vmem:[%s7342_s1 + $0x70] sm:$0xff]  ;;  %640 = vmatpush1.msra.mxu0 %v521_v14  ;;  %1124 = vmatprep.subr.mxu1 %v4193_v15 }
  0x1d   : > { %2079 = vst [vmem:[#allocation4 + $0xb9] sm:$0x1] %v7355_v6  ;;  %2912 = vst [vmem:[#allocation6] sm:$0x1] %v7355_v6  ;;  %v4191_v19 = vld [vmem:[%s7342_s1 + $0x138] sm:$0xff]  ;;  %v518_v20 = vld [vmem:[%s7342_s1 + $0x68] sm:$0xff]  ;;  %641 = vmatprep.subr.mxu0 %v520_v16  ;;  %1125 = vmatpush1.msra.mxu1 %v4192_v17 }
  0x1e   : > { %2913 = vst [vmem:[#allocation6 + $0x10] sm:$0x1] %v7355_v6  ;;  %2914 = vst [vmem:[#allocation6 + $0x20] sm:$0x1] %v7355_v6  ;;  %v4190_v21 = vld [vmem:[%s7342_s1 + $0x130] sm:$0xff]  ;;  %v517_v22 = vld [vmem:[%s7342_s1 + $0x60] sm:$0xff]  ;;  %642 = vmatpush1.msra.mxu0 %v519_v18  ;;  %1126 = vmatprep.subr.mxu1 %v4191_v19 }
  0x1f   : > { %2915 = vst [vmem:[#allocation6 + $0x30] sm:$0x1] %v7355_v6  ;;  %2916 = vst [vmem:[#allocation6 + $0x40] sm:$0x1] %v7355_v6  ;;  %v4189_v23 = vld [vmem:[%s7342_s1 + $0x128] sm:$0xff]  ;;  %s4470_s26 = sshll.u32 %s7482_s16, 5  ;;  %643 = vmatprep.subr.mxu0 %v518_v20  ;;  %1127 = vmatpush1.msra.mxu1 %v4190_v21 }
  0x20   : > { %2917 = vst [vmem:[#allocation6 + $0x50] sm:$0x1] %v7355_v6  ;;  %2918 = vst [vmem:[#allocation6 + $0x60] sm:$0x1] %v7355_v6  ;;  %v516_v24 = vld [vmem:[%s7342_s1 + $0x58] sm:$0xff]  ;;  %v4188_v25 = vld [vmem:[%s7342_s1 + $0x120] sm:$0xff]  ;;  %644 = vmatpush1.msra.mxu0 %v517_v22  ;;  %1128 = vmatprep.subr.mxu1 %v4189_v23  ;;  %s5118_s19 = scalar_lea.vmem %s7341_s0, %s4470_s26 }
  0x21   : > { %2919 = vst [vmem:[#allocation6 + $0x70] sm:$0x1] %v7355_v6  ;;  %2920 = vst [vmem:[#allocation6 + $0x9] sm:$0x1] %v7355_v6  ;;  %v515_v26 = vld [vmem:[%s7342_s1 + $0x50] sm:$0xff]  ;;  %v4187_v27 = vld [vmem:[%s7342_s1 + $0x118] sm:$0xff]  ;;  %645 = vmatprep.subr.mxu0 %v516_v24  ;;  %1129 = vmatpush1.msra.mxu1 %v4188_v25 }
  0x22   : > { %2921 = vst [vmem:[#allocation6 + $0x19] sm:$0x1] %v7355_v6  ;;  %2922 = vst [vmem:[#allocation6 + $0x29] sm:$0x1] %v7355_v6  ;;  %v514_v28 = vld [vmem:[%s7342_s1 + $0x48] sm:$0xff]  ;;  %v4186_v29 = vld [vmem:[%s7342_s1 + $0x110] sm:$0xff]  ;;  %646 = vmatpush1.msra.mxu0 %v515_v26  ;;  %1130 = vmatprep.subr.mxu1 %v4187_v27 }
  0x23   : > { %2923 = vst [vmem:[#allocation6 + $0x39] sm:$0x1] %v7355_v6  ;;  %2924 = vst [vmem:[#allocation6 + $0x49] sm:$0x1] %v7355_v6  ;;  %v513_v30 = vld [vmem:[%s7342_s1 + $0x40] sm:$0xff]  ;;  %v512_v31 = vld [vmem:[%s7342_s1 + $0x38] sm:$0xff]  ;;  %647 = vmatprep.subr.mxu0 %v514_v28  ;;  %1131 = vmatpush1.msra.mxu1 %v4186_v29 }
  0x24   : > { %2925 = vst [vmem:[#allocation6 + $0x59] sm:$0x1] %v7355_v6  ;;  %2926 = vst [vmem:[#allocation6 + $0x69] sm:$0x1] %v7355_v6  ;;  %v4185_v32 = vld [vmem:[%s7342_s1 + $0x108] sm:$0xff]  ;;  %vm439_vm1 = vcmask 785408   ;;  %648 = vmatpush1.msra.mxu0 %v513_v30  ;;  %1174 = vmatprep.mubr.f32.mxu1 %v7355_v6 }
  0x25   : > { %2927 = vst [vmem:[#allocation6 + $0x79] sm:$0x1] %v7355_v6  ;;  %423 = vst.msk [vmem:[#allocation2] sm:$0x1] %vm422_vm0, %v7355_v6  ;;  %v511_v33 = vld [vmem:[%s7342_s1 + $0x30] sm:$0xff]  ;;  %v4184_v34 = vld [vmem:[%s7342_s1 + $0x100] sm:$0xff]  ;;  %1132 = vmatprep.subr.mxu1 %v4185_v32  ;;  %649 = vmatprep.subr.mxu0 %v512_v31 }
  0x26   : > { %424 = vst.msk [vmem:[#allocation2 + $0x28] sm:$0x1] %vm422_vm0, %v7355_v6  ;;  %425 = vst.msk [vmem:[#allocation2 + $0x50] sm:$0x1] %vm422_vm0, %v7355_v6  ;;  %v510_v35 = vld [vmem:[%s7342_s1 + $0x28] sm:$0xff]  ;;  %v4183_v36 = vld [vmem:[%s7342_s1 + $0xf8] sm:$0xff]  ;;  %1133 = vmatpush1.msra.mxu1 %v4184_v34  ;;  %650 = vmatpush1.msra.mxu0 %v511_v33 }
  0x27   : > { %426 = vst.msk [vmem:[#allocation2 + $0x78] sm:$0x1] %vm422_vm0, %v7355_v6  ;;  %427 = vst.msk [vmem:[#allocation2 + $0xa0] sm:$0x1] %vm422_vm0, %v7355_v6  ;;  %v509_v37 = vld [vmem:[%s7342_s1 + $0x20] sm:$0xff]  ;;  %v4182_v39 = vld [vmem:[%s7342_s1 + $0xf0] sm:$0xff]  ;;  %1134 = vmatprep.subr.mxu1 %v4183_v36  ;;  %651 = vmatprep.subr.mxu0 %v510_v35 }
  0x28   : > { %428 = vst.msk [vmem:[#allocation2 + $0xc8] sm:$0x1] %vm422_vm0, %v7355_v6  ;;  %429 = vst.msk [vmem:[#allocation2 + $0xf0] sm:$0x1] %vm422_vm0, %v7355_v6  ;;  %v390_v38 = vld [vmem:[%s5118_s19] sm:$0xff]  ;;  %v508_v40 = vld [vmem:[%s7342_s1 + $0x18] sm:$0xff]  ;;  %1135 = vmatpush1.msra.mxu1 %v4182_v39  ;;  %652 = vmatpush1.msra.mxu0 %v509_v37 }
  0x29   : > { %430 = vst.msk [vmem:[#allocation2 + $0x118] sm:$0x1] %vm422_vm0, %v7355_v6  ;;  %431 = vst.msk [vmem:[#allocation2 + $0x21] sm:$0x1] %vm422_vm0, %v7355_v6  ;;  %v4181_v41 = vld [vmem:[%s7342_s1 + $0xe8] sm:$0xff]  ;;  %v507_v42 = vld [vmem:[%s7342_s1 + $0x10] sm:$0xff]  ;;  %653 = vmatprep.subr.mxu0 %v508_v40 }
  0x2a   : > { %432 = vst.msk [vmem:[#allocation2 + $0x49] sm:$0x1] %vm422_vm0, %v7355_v6  ;;  %433 = vst.msk [vmem:[#allocation2 + $0x71] sm:$0x1] %vm422_vm0, %v7355_v6  ;;  %v4180_v43 = vld [vmem:[%s7342_s1 + $0xe0] sm:$0xff]  ;;  %v391_v44 = vld [vmem:[%s5118_s19 + $0x8] sm:$0xff]  ;;  %1136 = vmatprep.subr.mxu1 %v4181_v41  ;;  %654 = vmatpush1.msra.mxu0 %v507_v42 }
  0x2b   : > { %434 = vst.msk [vmem:[#allocation2 + $0x99] sm:$0x1] %vm422_vm0, %v7355_v6  ;;  %435 = vst.msk [vmem:[#allocation2 + $0xc1] sm:$0x1] %vm422_vm0, %v7355_v6  ;;  %v392_v45 = vld [vmem:[%s5118_s19 + $0x10] sm:$0xff]  ;;  %v506_v46 = vld [vmem:[%s7342_s1 + $0x8] sm:$0xff]  ;;  %1137 = vmatpush1.msra.mxu1 %v4180_v43 }
  0x2c   : > { %436 = vst.msk [vmem:[#allocation2 + $0xe9] sm:$0x1] %vm422_vm0, %v7355_v6  ;;  %437 = vst.msk [vmem:[#allocation2 + $0x111] sm:$0x1] %vm422_vm0, %v7355_v6  ;;  %v393_v47 = vld [vmem:[%s5118_s19 + $0x18] sm:$0xff]  ;;  %v394_v48 = vld [vmem:[%s5118_s19 + $0x20] sm:$0xff]  ;;  %655 = vmatprep.subr.mxu0 %v506_v46 }
  0x2d   : > { %438 = vst.msk [vmem:[#allocation2 + $0x139] sm:$0x1] %vm422_vm0, %v7355_v6  ;;  %v4179_v49 = vld [vmem:[%s7342_s1 + $0xd8] sm:$0xff]  ;;  %v4178_v50 = vld [vmem:[%s7342_s1 + $0xd0] sm:$0xff]  ;;  %v395_v51 = vld [vmem:[%s5118_s19 + $0x28] sm:$0xff]  ;;  %vm4839_vm2 = vmmov 0  }
  0x2e   : > { %440 = vst.msk [vmem:[#allocation2 + $0x1] sm:$0xff] %vm439_vm1, %v390_v38  ;;  %441 = vst.msk [vmem:[#allocation2 + $0x9] sm:$0xff] %vm439_vm1, %v391_v44  ;;  %v396_v52 = vld [vmem:[%s5118_s19 + $0x30] sm:$0xff]  ;;  %v397_v53 = vld [vmem:[%s5118_s19 + $0x38] sm:$0xff]  ;;  %1138 = vmatprep.subr.mxu1 %v4179_v49  ;;  %vm3546_vm3 = vcmask 1041409   ;;  %vm3549_vm4 = vcmask 1042434  }
  0x2f   : > { %442 = vst.msk [vmem:[#allocation2 + $0x11] sm:$0xff] %vm439_vm1, %v392_v45  ;;  %443 = vst.msk [vmem:[#allocation2 + $0x19] sm:$0xff] %vm439_vm1, %v393_v47  ;;  %v398_v54 = vld [vmem:[%s5118_s19 + $0x40] sm:$0xff]  ;;  %v4177_v56 = vld [vmem:[%s7342_s1 + $0xc8] sm:$0xff]  ;;  %1139 = vmatpush1.msra.mxu1 %v4178_v50  ;;  %vm3552_vm5 = vcmask 1043459   ;;  %vm3555_vm6 = vcmask 1044484  }
  0x30   : > { %444 = vst.msk [vmem:[#allocation2 + $0x29] sm:$0xff] %vm439_vm1, %v394_v48  ;;  %445 = vst.msk [vmem:[#allocation2 + $0x31] sm:$0xff] %vm439_vm1, %v395_v51  ;;  %v505_v55 = vld [vmem:[%s7342_s1] sm:$0xff]  ;;  %v399_v57 = vld [vmem:[%s5118_s19 + $0x48] sm:$0xff]  ;;  %1140 = vmatprep.subr.mxu1 %v4177_v56  ;;  %vm3558_vm7 = vcmask 1045509   ;;  %vm3561_vm8 = vcmask 1046534  }
  0x31   : > { %446 = vst.msk [vmem:[#allocation2 + $0x39] sm:$0xff] %vm439_vm1, %v396_v52  ;;  %447 = vst.msk [vmem:[#allocation2 + $0x41] sm:$0xff] %vm439_vm1, %v397_v53  ;;  %v4255_v58 = vld [vmem:[%s7342_s1 + $0x238] sm:$0xff]  ;;  %v400_v59 = vld [vmem:[%s5118_s19 + $0x50] sm:$0xff]  ;;  %656 = vmatpush1.msra.mxu0 %v505_v55  ;;  %vm3564_vm9 = vcmask 1047559   ;;  %s380_s30 = sand.u32 1, %s4828_s18  }
  0x32   : > { %448 = vst.msk [vmem:[#allocation2 + $0x51] sm:$0xff] %vm439_vm1, %v398_v54  ;;  %449 = vst.msk [vmem:[#allocation2 + $0x59] sm:$0xff] %vm439_vm1, %v399_v57  ;;  %v401_v60 = vld [vmem:[%s5118_s19 + $0x58] sm:$0xff]  ;;  %v4176_v62 = vld [vmem:[%s7342_s1 + $0xc0] sm:$0xff]  ;;  %1592 = vmatprep.subr.mxu0 %v4255_v58  ;;  %s4140_s12 = sshll.u32 %s380_s30, 3  ;;  %s4467_s13 = sshll.u32 %s4922_s21, 7 }
  0x33   : > { %v4254_v63 = vld [vmem:[%s7342_s1 + $0x230] sm:$0xff]  ;;  %450 = vst.msk [vmem:[#allocation2 + $0x61] sm:$0xff] %vm439_vm1, %v400_v59  ;;  %451 = vst.msk [vmem:[#allocation2 + $0x69] sm:$0xff] %vm439_vm1, %v401_v60  ;;  %v402_v1 = vld [vmem:[%s5118_s19 + $0x60] sm:$0xff]  ;;  %1141 = vmatpush1.msra.mxu1 %v4176_v62  ;;  %s382_s14 = scalar_lea.vmem [#allocation8], %s4140_s12  ;;  %s4075_s26 = scalar_lea.hbm %s7352_s11, %s4467_s13 }
  0x34   : > { %v403_v2 = vld [vmem:[%s5118_s19 + $0x68] sm:$0xff]  ;;  %452 = vst.msk [vmem:[#allocation2 + $0x79] sm:$0xff] %vm439_vm1, %v402_v1  ;;  %v4252_v5 = vld [vmem:[%s7342_s1 + $0x220] sm:$0xff]  ;;  %v4251_v8 = vld [vmem:[%s7342_s1 + $0x218] sm:$0xff]  ;;  %s4077_s15 = sshll.u32 %s382_s14, 4  ;;  %s4064_s24 = scalar_lea.sflag [#allocation9], %s380_s30  ;;  %s4078_s15 = int_to_ptr.vmem [resolvable:$true] %s4077_s15 }
  0x35   : > { %v473_v61 = vld [vmem:[#allocation2] sm:$0xff]  ;;  %453 = vst.msk [vmem:[#allocation2 + $0x81] sm:$0xff] %vm439_vm1, %v403_v2  ;;  %v474_v3 = vld [vmem:[#allocation2 + $0x8] sm:$0xff]  ;;  %v4250_v9 = vld [vmem:[%s7342_s1 + $0x210] sm:$0xff]  ;;  %s4776_s25 = scalar_lea.vmem %s4078_s15, 128 }
  0x36   : > { %v957_v0 = vld [vmem:[#allocation2 + $0x1] sm:$0xff]  ;;  %4144 = vmatmul.mubr.msk.f32.vlgmr.msra.gmra.mxu0 %vm439_vm1, %v473_v61  ;;  %v958_v7 = vld [vmem:[#allocation2 + $0x9] sm:$0xff]  ;;  %v959_v13 = vld [vmem:[#allocation2 + $0x11] sm:$0xff]  ;;  %p4777_p11 = scmp.ne.s32.totalorder %s4078_s15, %s4776_s25 }
  0x37   : > { %v4253_v4 = vld [vmem:[%s7342_s1 + $0x228] sm:$0xff]  ;;  %1593 = vmatpush1.msra.mxu0 %v4254_v63  ;;  %4200 = vmatmul.mubr.msk.f32.vlgmr.msra.gmra.mxu1 %vm439_vm1, %v957_v0  ;;  %v475_v10 = vld [vmem:[#allocation2 + $0x10] sm:$0xff]  ;;  %v4248_v12 = vld [vmem:[%s7342_s1 + $0x200] sm:$0xff] }
  0x38   : > { %695 = vmatprep.mubr.f32.mxu0 %v7355_v6  ;;  %1180 = vmatprep.mubr.f32.mxu1 %v7355_v6  ;;  %v4249_v11 = vld [vmem:[%s7342_s1 + $0x208] sm:$0xff]  ;;  %v4247_v14 = vld [vmem:[%s7342_s1 + $0x1f8] sm:$0xff]  ;;  %v4246_v16 = vld [vmem:[%s7342_s1 + $0x1f0] sm:$0xff]  ;;  %p4778_p12 = pnand %p4777_p11, %p4939_p5 }
  0x39   : > { %1594 = vmatprep.subr.mxu0 %v4253_v4  ;;  %v476_v15 = vld [vmem:[#allocation2 + $0x18] sm:$0xff]  ;;  %v4245_v17 = vld [vmem:[%s7342_s1 + $0x1e8] sm:$0xff]  ;;  %v404_v18 = vld [vmem:[%s5118_s19 + $0x70] sm:$0xff] }
  0x3a   : > { %4145 = vmatmul.mubr.msk.f32.gmra.mxu0 %vm439_vm1, %v474_v3  ;;  %v405_v19 = vld [vmem:[%s5118_s19 + $0x78] sm:$0xff]  ;;  %v406_v20 = vld [vmem:[%s5118_s19 + $0x80] sm:$0xff]  ;;  %454 = vst.msk [vmem:[#allocation2 + $0x89] sm:$0xff] %vm439_vm1, %v404_v18  ;;  %v407_v23 = vld [vmem:[%s5118_s19 + $0x88] sm:$0xff]  ;;  %p4779_p13 = pneg %p4778_p12 }
  0x3b   : > { %701 = vmatprep.mubr.f32.mxu0 %v7355_v6  ;;  %1595 = vmatpush1.msra.mxu0 %v4252_v5  ;;  %v960_v21 = vld [vmem:[#allocation2 + $0x19] sm:$0xff]  ;;  %455 = vst.msk [vmem:[#allocation2 + $0x91] sm:$0xff] %vm439_vm1, %v405_v19  ;;  %456 = vst.msk [vmem:[#allocation2 + $0xa1] sm:$0xff] %vm439_vm1, %v406_v20  ;;  %v477_v24 = vld [vmem:[#allocation2 + $0x28] sm:$0xff] }
  0x3c   : > { %4201 = vmatmul.mubr.msk.f32.gmra.mxu1 %vm439_vm1, %v958_v7  ;;  %1596 = vmatprep.subr.mxu0 %v4251_v8  ;;  %v4244_v22 = vld [vmem:[%s7342_s1 + $0x1e0] sm:$0xff]  ;;  %v4243_v25 = vld [vmem:[%s7342_s1 + $0x1d8] sm:$0xff]  ;;  %457 = vst.msk [vmem:[#allocation2 + $0xa9] sm:$0xff] %vm439_vm1, %v407_v23  ;;  %v408_v26 = vld [vmem:[%s5118_s19 + $0x90] sm:$0xff] }
  0x3d   : > { %1186 = vmatprep.mubr.f32.mxu1 %v7355_v6  ;;  %1597 = vmatpush1.msra.mxu0 %v4250_v9  ;;  %v409_v27 = vld [vmem:[%s5118_s19 + $0x98] sm:$0xff]  ;;  %v4242_v28 = vld [vmem:[%s7342_s1 + $0x1d0] sm:$0xff]  ;;  %458 = vst.msk [vmem:[#allocation2 + $0xb1] sm:$0xff] %vm439_vm1, %v408_v26  ;;  %v410_v29 = vld [vmem:[%s5118_s19 + $0xa0] sm:$0xff] }
  0x3e   : > { %4146 = vmatmul.mubr.msk.f32.gmra.mxu0 %vm439_vm1, %v475_v10  ;;  %1598 = vmatprep.subr.mxu0 %v4249_v11  ;;  %459 = vst.msk [vmem:[#allocation2 + $0xb9] sm:$0xff] %vm439_vm1, %v409_v27  ;;  %v411_v30 = vld [vmem:[%s5118_s19 + $0xa8] sm:$0xff]  ;;  %460 = vst.msk [vmem:[#allocation2 + $0xc9] sm:$0xff] %vm439_vm1, %v410_v29  ;;  %v412_v33 = vld [vmem:[%s5118_s19 + $0xb0] sm:$0xff] }
  0x3f   : > { %707 = vmatprep.mubr.f32.mxu0 %v7355_v6  ;;  %1599 = vmatpush1.msra.mxu0 %v4248_v12  ;;  %v961_v31 = vld [vmem:[#allocation2 + $0x29] sm:$0xff]  ;;  %461 = vst.msk [vmem:[#allocation2 + $0xd1] sm:$0xff] %vm439_vm1, %v411_v30  ;;  %v4240_v34 = vld [vmem:[%s7342_s1 + $0x1c0] sm:$0xff]  ;;  %462 = vst.msk [vmem:[#allocation2 + $0xd9] sm:$0xff] %vm439_vm1, %v412_v33 }
  0x40   : > { %4202 = vmatmul.mubr.msk.f32.gmra.mxu1 %vm439_vm1, %v959_v13  ;;  %1600 = vmatprep.subr.mxu0 %v4247_v14  ;;  %v4241_v32 = vld [vmem:[%s7342_s1 + $0x1c8] sm:$0xff]  ;;  %v413_v35 = vld [vmem:[%s5118_s19 + $0xb8] sm:$0xff]  ;;  %v414_v36 = vld [vmem:[%s5118_s19 + $0xc0] sm:$0xff] }
  0x41   : > { %1192 = vmatprep.mubr.f32.mxu1 %v7355_v6  ;;  %1601 = vmatpush1.msra.mxu0 %v4246_v16  ;;  %v4239_v37 = vld [vmem:[%s7342_s1 + $0x1b8] sm:$0xff]  ;;  %463 = vst.msk [vmem:[#allocation2 + $0xe1] sm:$0xff] %vm439_vm1, %v413_v35  ;;  %464 = vst.msk [vmem:[#allocation2 + $0xf1] sm:$0xff] %vm439_vm1, %v414_v36  ;;  %v415_v38 = vld [vmem:[%s5118_s19 + $0xc8] sm:$0xff] }
  0x42   : > { %4147 = vmatmul.mubr.msk.f32.gmra.mxu0 %vm439_vm1, %v476_v15  ;;  %1602 = vmatprep.subr.mxu0 %v4245_v17  ;;  %v416_v39 = vld [vmem:[%s5118_s19 + $0xd0] sm:$0xff]  ;;  %465 = vst.msk [vmem:[#allocation2 + $0xf9] sm:$0xff] %vm439_vm1, %v415_v38  ;;  %v417_v41 = vld [vmem:[%s5118_s19 + $0xd8] sm:$0xff]  ;;  %v4237_v43 = vld [vmem:[%s7342_s1 + $0x1a8] sm:$0xff] }
  0x43   : > { %713 = vmatprep.mubr.f32.mxu0 %v7355_v6  ;;  %1603 = vmatpush1.msra.mxu0 %v4244_v22  ;;  %v4238_v40 = vld [vmem:[%s7342_s1 + $0x1b0] sm:$0xff]  ;;  %466 = vst.msk [vmem:[#allocation2 + $0x101] sm:$0xff] %vm439_vm1, %v416_v39  ;;  %467 = vst.msk [vmem:[#allocation2 + $0x109] sm:$0xff] %vm439_vm1, %v417_v41  ;;  %v4236_v44 = vld [vmem:[%s7342_s1 + $0x1a0] sm:$0xff] }
  0x44   : > { %4203 = vmatmul.mubr.msk.f32.gmra.mxu1 %vm439_vm1, %v960_v21  ;;  %1604 = vmatprep.subr.mxu0 %v4243_v25  ;;  %v478_v42 = vld [vmem:[#allocation2 + $0x30] sm:$0xff]  ;;  %v4235_v46 = vld [vmem:[%s7342_s1 + $0x198] sm:$0xff]  ;;  %v480_v50 = vld [vmem:[#allocation2 + $0x40] sm:$0xff] }
  0x45   : > { %1198 = vmatprep.mubr.f32.mxu1 %v7355_v6  ;;  %1605 = vmatpush1.msra.mxu0 %v4242_v28  ;;  %v962_v45 = vld [vmem:[#allocation2 + $0x31] sm:$0xff]  ;;  %v963_v49 = vld [vmem:[#allocation2 + $0x39] sm:$0xff]  ;;  %v964_v51 = vld [vmem:[#allocation2 + $0x41] sm:$0xff] }
  0x46   : > { %4148 = vmatmul.mubr.msk.f32.gmra.mxu0 %vm439_vm1, %v477_v24  ;;  %1606 = vmatprep.subr.mxu0 %v4241_v32  ;;  %v4234_v47 = vld [vmem:[%s7342_s1 + $0x190] sm:$0xff]  ;;  %v479_v48 = vld [vmem:[#allocation2 + $0x38] sm:$0xff]  ;;  %v418_v52 = vld [vmem:[%s5118_s19 + $0xe0] sm:$0xff] }
  0x47   : > { %719 = vmatprep.mubr.f32.mxu0 %v7355_v6  ;;  %1607 = vmatpush1.msra.mxu0 %v4240_v34  ;;  %v419_v53 = vld [vmem:[%s5118_s19 + $0xe8] sm:$0xff]  ;;  %468 = vst.msk [vmem:[#allocation2 + $0x119] sm:$0xff] %vm439_vm1, %v418_v52  ;;  %v4232_v55 = vld [vmem:[%s7342_s1 + $0x180] sm:$0xff]  ;;  %v420_v56 = vld [vmem:[%s5118_s19 + $0xf0] sm:$0xff] }
  0x48   : > { %4204 = vmatmul.mubr.msk.f32.gmra.mxu1 %vm439_vm1, %v961_v31  ;;  %1608 = vmatprep.subr.mxu0 %v4239_v37  ;;  %469 = vst.msk [vmem:[#allocation2 + $0x121] sm:$0xff] %vm439_vm1, %v419_v53  ;;  %v4233_v54 = vld [vmem:[%s7342_s1 + $0x188] sm:$0xff]  ;;  %470 = vst.msk [vmem:[#allocation2 + $0x129] sm:$0xff] %vm439_vm1, %v420_v56  ;;  %v421_v57 = vld [vmem:[%s5118_s19 + $0xf8] sm:$0xff]  ;;  %s4840_s19 = smov [#allocation8]  }
  0x49   : > { %1204 = vmatprep.mubr.f32.mxu1 %v7355_v6  ;;  %1609 = vmatpush1.msra.mxu0 %v4238_v40  ;;  %v481_v58 = vld [vmem:[#allocation2 + $0x50] sm:$0xff]  ;;  %471 = vst.msk [vmem:[#allocation2 + $0x131] sm:$0xff] %vm439_vm1, %v421_v57  ;;  %v482_v60 = vld [vmem:[#allocation2 + $0x58] sm:$0xff]  ;;  %v483_v62 = vld [vmem:[#allocation2 + $0x60] sm:$0xff]  ;;  %s4780_s29 = sshll.u32 %s4840_s19, 4  ;;  %s4781_s29 = int_to_ptr.vmem [resolvable:$false] %s4780_s29 }
  0x4a   : > { %4149 = vmatmul.mubr.msk.f32.gmra.mxu0 %vm439_vm1, %v478_v42  ;;  %1610 = vmatprep.subr.mxu0 %v4237_v43  ;;  %v965_v59 = vld [vmem:[#allocation2 + $0x51] sm:$0xff]  ;;  %v966_v61 = vld [vmem:[#allocation2 + $0x59] sm:$0xff]  ;;  %v967_v63 = vld [vmem:[#allocation2 + $0x61] sm:$0xff]  ;;  %s4782_s21 = scalar_lea.vmem %s4781_s29, 256  ;;  %p4783_p0 = scmp.lt.s32.totalorder %s4078_s15, %s4781_s29 }
  0x4b   : > { %725 = vmatprep.mubr.f32.mxu0 %v7355_v6  ;;  %1611 = vmatpush1.msra.mxu0 %v4236_v44  ;;  %v484_v0 = vld [vmem:[#allocation2 + $0x68] sm:$0xff]  ;;  %v485_v2 = vld [vmem:[#allocation2 + $0x78] sm:$0xff]  ;;  %v486_v4 = vld [vmem:[#allocation2 + $0x80] sm:$0xff]  ;;  %p4784_p1 = scmp.lt.s32.totalorder %s4782_s21, %s4776_s25 }
  0x4c   : > { %4205 = vmatmul.mubr.msk.f32.gmra.mxu1 %vm439_vm1, %v962_v45  ;;  %1612 = vmatprep.subr.mxu0 %v4235_v46  ;;  %v968_v1 = vld [vmem:[#allocation2 + $0x69] sm:$0xff]  ;;  %v969_v3 = vld [vmem:[#allocation2 + $0x79] sm:$0xff]  ;;  %v970_v5 = vld [vmem:[#allocation2 + $0x81] sm:$0xff] }
  0x4d   : > { %1210 = vmatprep.mubr.f32.mxu1 %v7355_v6  ;;  %1613 = vmatpush1.msra.mxu0 %v4234_v47  ;;  %v487_v7 = vld [vmem:[#allocation2 + $0x88] sm:$0xff]  ;;  %v488_v9 = vld [vmem:[#allocation2 + $0x90] sm:$0xff]  ;;  %v489_v11 = vld [vmem:[#allocation2 + $0xa0] sm:$0xff]  ;;  %p4785_p2 = por %p4784_p1, %p4783_p0 }
  0x4e   : > { %4150 = vmatmul.mubr.msk.f32.gmra.mxu0 %vm439_vm1, %v479_v48  ;;  %1614 = vmatprep.subr.mxu0 %v4233_v54  ;;  %v971_v8 = vld [vmem:[#allocation2 + $0x89] sm:$0xff]  ;;  %v972_v10 = vld [vmem:[#allocation2 + $0x91] sm:$0xff]  ;;  %v973_v12 = vld [vmem:[#allocation2 + $0xa1] sm:$0xff] }
  0x4f   : > { %731 = vmatprep.mubr.f32.mxu0 %v7355_v6  ;;  %1615 = vmatpush1.msra.mxu0 %v4232_v55  ;;  %v490_v13 = vld [vmem:[#allocation2 + $0xa8] sm:$0xff]  ;;  %v491_v15 = vld [vmem:[#allocation2 + $0xb0] sm:$0xff]  ;;  %v492_v17 = vld [vmem:[#allocation2 + $0xb8] sm:$0xff]  ;;  %p4786_p3 = pnand %p4785_p2, %p4779_p13 }
  0x50   : > { %4206 = vmatmul.mubr.msk.f32.gmra.mxu1 %vm439_vm1, %v963_v49  ;;  %v974_v14 = vld [vmem:[#allocation2 + $0xa9] sm:$0xff]  ;;  %v975_v16 = vld [vmem:[#allocation2 + $0xb1] sm:$0xff]  ;;  %v976_v18 = vld [vmem:[#allocation2 + $0xb9] sm:$0xff] }
  0x51   : > { %1216 = vmatprep.mubr.f32.mxu1 %v7355_v6  ;;  %v493_v19 = vld [vmem:[#allocation2 + $0xc8] sm:$0xff]  ;;  %v494_v21 = vld [vmem:[#allocation2 + $0xd0] sm:$0xff]  ;;  %v495_v23 = vld [vmem:[#allocation2 + $0xd8] sm:$0xff] }
  0x52   : > { %4151 = vmatmul.mubr.msk.f32.gmra.mxu0 %vm439_vm1, %v480_v50  ;;  %v977_v20 = vld [vmem:[#allocation2 + $0xc9] sm:$0xff]  ;;  %v978_v22 = vld [vmem:[#allocation2 + $0xd1] sm:$0xff]  ;;  %v979_v24 = vld [vmem:[#allocation2 + $0xd9] sm:$0xff] }
  0x53   : > { %737 = vmatprep.mubr.f32.mxu0 %v7355_v6  ;;  %v496_v25 = vld [vmem:[#allocation2 + $0xe0] sm:$0xff]  ;;  %v497_v27 = vld [vmem:[#allocation2 + $0xf0] sm:$0xff]  ;;  %v498_v29 = vld [vmem:[#allocation2 + $0xf8] sm:$0xff] }
  0x54   : > { %4207 = vmatmul.mubr.msk.f32.gmra.mxu1 %vm439_vm1, %v964_v51  ;;  %v980_v26 = vld [vmem:[#allocation2 + $0xe1] sm:$0xff]  ;;  %v981_v28 = vld [vmem:[#allocation2 + $0xf1] sm:$0xff]  ;;  %v982_v30 = vld [vmem:[#allocation2 + $0xf9] sm:$0xff] }
  0x55   : > { %1222 = vmatprep.mubr.f32.mxu1 %v7355_v6  ;;  %v499_v31 = vld [vmem:[#allocation2 + $0x100] sm:$0xff]  ;;  %v500_v33 = vld [vmem:[#allocation2 + $0x108] sm:$0xff]  ;;  %v501_v35 = vld [vmem:[#allocation2 + $0x118] sm:$0xff] }
  0x56   : > { %4152 = vmatmul.mubr.msk.f32.gmra.mxu0 %vm439_vm1, %v481_v58  ;;  %v983_v32 = vld [vmem:[#allocation2 + $0x101] sm:$0xff]  ;;  %v984_v34 = vld [vmem:[#allocation2 + $0x109] sm:$0xff]  ;;  %v985_v36 = vld [vmem:[#allocation2 + $0x119] sm:$0xff] }
  0x57   : > { %743 = vmatprep.mubr.f32.mxu0 %v7355_v6  ;;  %v502_v37 = vld [vmem:[#allocation2 + $0x120] sm:$0xff]  ;;  %v503_v39 = vld [vmem:[#allocation2 + $0x128] sm:$0xff]  ;;  %v504_v41 = vld [vmem:[#allocation2 + $0x130] sm:$0xff] }
  0x58   : > { %4208 = vmatmul.mubr.msk.f32.gmra.mxu1 %vm439_vm1, %v965_v59  ;;  %v986_v38 = vld [vmem:[#allocation2 + $0x121] sm:$0xff]  ;;  %v987_v40 = vld [vmem:[#allocation2 + $0x129] sm:$0xff]  ;;  %v988_v42 = vld [vmem:[#allocation2 + $0x131] sm:$0xff] }
  0x59   : > { %1228 = vmatprep.mubr.f32.mxu1 %v7355_v6  ;;  %v1431_v43 = vld [vmem:[#allocation2 + $0x2] sm:$0xff]  ;;  %v1432_v44 = vld [vmem:[#allocation2 + $0xa] sm:$0xff]  ;;  %v1433_v45 = vld [vmem:[#allocation2 + $0x12] sm:$0xff] }
  0x5a   : > { %4153 = vmatmul.mubr.msk.f32.gmra.mxu0 %vm439_vm1, %v482_v60  ;;  %v1434_v46 = vld [vmem:[#allocation2 + $0x1a] sm:$0xff]  ;;  %v1435_v47 = vld [vmem:[#allocation2 + $0x2a] sm:$0xff]  ;;  %v1436_v48 = vld [vmem:[#allocation2 + $0x32] sm:$0xff] }
  0x5b   : > { %749 = vmatprep.mubr.f32.mxu0 %v7355_v6  ;;  %v1437_v49 = vld [vmem:[#allocation2 + $0x3a] sm:$0xff]  ;;  %v1438_v50 = vld [vmem:[#allocation2 + $0x42] sm:$0xff]  ;;  %v1439_v52 = vld [vmem:[#allocation2 + $0x52] sm:$0xff] }
  0x5c   : > { %4209 = vmatmul.mubr.msk.f32.gmra.mxu1 %vm439_vm1, %v966_v61  ;;  %v2144_v51 = vld [vmem:[%s7344_s3 + $0xf8] sm:$0xff]  ;;  %v2143_v53 = vld [vmem:[%s7344_s3 + $0xf0] sm:$0xff]  ;;  %v2142_v55 = vld [vmem:[%s7344_s3 + $0xe8] sm:$0xff] }
  0x5d   : > { %1234 = vmatprep.mubr.f32.mxu1 %v7355_v6  ;;  %2145 = vmatprep.subr.mxu1 %v2144_v51  ;;  %v1440_v54 = vld [vmem:[#allocation2 + $0x5a] sm:$0xff]  ;;  %v1441_v56 = vld [vmem:[#allocation2 + $0x62] sm:$0xff]  ;;  %v1442_v58 = vld [vmem:[#allocation2 + $0x6a] sm:$0xff] }
  0x5e   : > { %4154 = vmatmul.mubr.msk.f32.gmra.mxu0 %vm439_vm1, %v483_v62  ;;  %2146 = vmatpush1.msra.mxu1 %v2143_v53  ;;  %v2141_v57 = vld [vmem:[%s7344_s3 + $0xe0] sm:$0xff]  ;;  %v2140_v59 = vld [vmem:[%s7344_s3 + $0xd8] sm:$0xff]  ;;  %v2139_v61 = vld [vmem:[%s7344_s3 + $0xd0] sm:$0xff] }
  0x5f   : > { %755 = vmatprep.mubr.f32.mxu0 %v7355_v6  ;;  %2147 = vmatprep.subr.mxu1 %v2142_v55  ;;  %v1443_v60 = vld [vmem:[#allocation2 + $0x7a] sm:$0xff]  ;;  %v1444_v62 = vld [vmem:[#allocation2 + $0x82] sm:$0xff] }
  0x60   : > { %4210 = vmatmul.mubr.msk.f32.gmra.mxu1 %vm439_vm1, %v967_v63  ;;  %v2138_v63 = vld [vmem:[%s7344_s3 + $0xc8] sm:$0xff]  ;;  %v2124_v51 = vld [vmem:[%s7344_s3 + $0x58] sm:$0xff] }
  0x61   : > { %1240 = vmatprep.mubr.f32.mxu1 %v7355_v6  ;;  %2148 = vmatpush1.msra.mxu1 %v2141_v57  ;;  %v1453_v53 = vld [vmem:[#allocation2 + $0xda] sm:$0xff]  ;;  %v4338_v57 = vld [vmem:[%s7344_s3 + $0x290] sm:$0xff] }
  0x62   : > { %4155 = vmatmul.mubr.msk.f32.gmra.mxu0 %vm439_vm1, %v484_v0  ;;  %2149 = vmatprep.subr.mxu1 %v2140_v59  ;;  %v1445_v0 = vld [vmem:[#allocation2 + $0x8a] sm:$0xff] }
  0x63   : > { %761 = vmatprep.mubr.f32.mxu0 %v7355_v6  ;;  %2150 = vmatpush1.msra.mxu1 %v2139_v61  ;;  %v4337_v59 = vld [vmem:[%s7344_s3 + $0x288] sm:$0xff]  ;;  %v2121_v61 = vld [vmem:[%s7344_s3 + $0x40] sm:$0xff] }
  0x64   : > { %4211 = vmatmul.mubr.msk.f32.gmra.mxu1 %vm439_vm1, %v968_v1  ;;  %2151 = vmatprep.subr.mxu1 %v2138_v63  ;;  %v2137_v1 = vld [vmem:[%s7344_s3 + $0xc0] sm:$0xff] }
  0x65   : > { %1246 = vmatprep.mubr.f32.mxu1 %v7355_v6  ;;  %2152 = vmatpush1.msra.mxu1 %v2137_v1  ;;  %v1454_v63 = vld [vmem:[#allocation2 + $0xe2] sm:$0xff] }
  0x66   : > { %4156 = vmatmul.mubr.msk.f32.gmra.mxu0 %vm439_vm1, %v485_v2  ;;  %v1446_v2 = vld [vmem:[#allocation2 + $0x92] sm:$0xff] }
  0x67   : > { %767 = vmatprep.mubr.f32.mxu0 %v7355_v6 }
  0x68   : > { %4212 = vmatmul.mubr.msk.f32.gmra.mxu1 %vm439_vm1, %v969_v3  ;;  %v2136_v3 = vld [vmem:[%s7344_s3 + $0xb8] sm:$0xff] }
  0x69   : > { %1252 = vmatprep.mubr.f32.mxu1 %v7355_v6  ;;  %2153 = vmatprep.subr.mxu1 %v2136_v3  ;;  %v4335_v3 = vld [vmem:[%s7344_s3 + $0x278] sm:$0xff] }
  0x6a   : > { %4157 = vmatmul.mubr.msk.f32.gmra.mxu0 %vm439_vm1, %v486_v4  ;;  %v1447_v4 = vld [vmem:[#allocation2 + $0xa2] sm:$0xff] }
  0x6b   : > { %773 = vmatprep.mubr.f32.mxu0 %v7355_v6 }
  0x6c   : > { %4213 = vmatmul.mubr.msk.f32.gmra.mxu1 %vm439_vm1, %v970_v5  ;;  %v2135_v5 = vld [vmem:[%s7344_s3 + $0xb0] sm:$0xff] }
  0x6d   : > { %1258 = vmatprep.mubr.f32.mxu1 %v7355_v6  ;;  %2154 = vmatpush1.msra.mxu1 %v2135_v5  ;;  %v4334_v5 = vld [vmem:[%s7344_s3 + $0x270] sm:$0xff] }
  0x6e   : > { %4158 = vmatmul.mubr.msk.f32.gmra.mxu0 %vm439_vm1, %v487_v7 }
  0x6f   : > { %779 = vmatprep.mubr.f32.mxu0 %v7355_v6 }
  0x70   : > { %4214 = vmatmul.mubr.msk.f32.gmra.mxu1 %vm439_vm1, %v971_v8  ;;  %v1448_v8 = vld [vmem:[#allocation2 + $0xaa] sm:$0xff] }
  0x71   : > { %1264 = vmatprep.mubr.f32.mxu1 %v7355_v6 }
  0x72   : > { %4159 = vmatmul.mubr.msk.f32.gmra.mxu0 %vm439_vm1, %v488_v9 }
  0x73   : > { %785 = vmatprep.mubr.f32.mxu0 %v7355_v6 }
  0x74   : > { %4215 = vmatmul.mubr.msk.f32.gmra.mxu1 %vm439_vm1, %v972_v10 }
  0x75   : > { %1270 = vmatprep.mubr.f32.mxu1 %v7355_v6 }
  0x76   : > { %4160 = vmatmul.mubr.msk.f32.gmra.mxu0 %vm439_vm1, %v489_v11 }
  0x77   : > { %791 = vmatprep.mubr.f32.mxu0 %v7355_v6 }
  0x78   : > { %4216 = vmatmul.mubr.msk.f32.gmra.mxu1 %vm439_vm1, %v973_v12 }
  0x79   : > { %1276 = vmatprep.mubr.f32.mxu1 %v7355_v6 }
  0x7a   : > { %4161 = vmatmul.mubr.msk.f32.gmra.mxu0 %vm439_vm1, %v490_v13  ;;  %v1449_v13 = vld [vmem:[#allocation2 + $0xb2] sm:$0xff] }
  0x7b   : > { %797 = vmatprep.mubr.f32.mxu0 %v7355_v6 }
  0x7c   : > { %4217 = vmatmul.mubr.msk.f32.gmra.mxu1 %vm439_vm1, %v974_v14 }
  0x7d   : > { %1282 = vmatprep.mubr.f32.mxu1 %v7355_v6 }
  0x7e   : > { %4162 = vmatmul.mubr.msk.f32.gmra.mxu0 %vm439_vm1, %v491_v15 }
  0x7f   : > { %803 = vmatprep.mubr.f32.mxu0 %v7355_v6 }
  0x80   : > { %4218 = vmatmul.mubr.msk.f32.gmra.mxu1 %vm439_vm1, %v975_v16  ;;  %v4351_v16 = vld [vmem:[%s7344_s3 + $0x2f8] sm:$0xff] }
  0x81   : > { %1288 = vmatprep.mubr.f32.mxu1 %v7355_v6  ;;  %2640 = vmatprep.subr.mxu0 %v4351_v16  ;;  %v4333_v16 = vld [vmem:[%s7344_s3 + $0x268] sm:$0xff] }
  0x82   : > { %4163 = vmatmul.mubr.msk.f32.gmra.mxu0 %vm439_vm1, %v492_v17  ;;  %v2134_v17 = vld [vmem:[%s7344_s3 + $0xa8] sm:$0xff] }
  0x83   : > { %809 = vmatprep.mubr.f32.mxu0 %v7355_v6  ;;  %2155 = vmatprep.subr.mxu1 %v2134_v17  ;;  %v1455_v17 = vld [vmem:[#allocation2 + $0xf2] sm:$0xff] }
  0x84   : > { %4219 = vmatmul.mubr.msk.f32.gmra.mxu1 %vm439_vm1, %v976_v18  ;;  %v2133_v18 = vld [vmem:[%s7344_s3 + $0xa0] sm:$0xff] }
  0x85   : > { %1294 = vmatprep.mubr.f32.mxu1 %v7355_v6  ;;  %2156 = vmatpush1.msra.mxu1 %v2133_v18  ;;  %v2117_v18 = vld [vmem:[%s7344_s3 + $0x20] sm:$0xff] }
  0x86   : > { %4164 = vmatmul.mubr.msk.f32.gmra.mxu0 %vm439_vm1, %v493_v19  ;;  %v4350_v19 = vld [vmem:[%s7344_s3 + $0x2f0] sm:$0xff] }
  0x87   : > { %815 = vmatprep.mubr.f32.mxu0 %v7355_v6 }
  0x88   : > { %4220 = vmatmul.mubr.msk.f32.gmra.mxu1 %vm439_vm1, %v977_v20 }
  0x89   : > { %1300 = vmatprep.mubr.f32.mxu1 %v7355_v6 }
  0x8a   : > { %4165 = vmatmul.mubr.msk.f32.gmra.mxu0 %vm439_vm1, %v494_v21  ;;  %v4349_v21 = vld [vmem:[%s7344_s3 + $0x2e8] sm:$0xff] }
  0x8b   : > { %821 = vmatprep.mubr.f32.mxu0 %v7355_v6 }
  0x8c   : > { %4221 = vmatmul.mubr.msk.f32.gmra.mxu1 %vm439_vm1, %v978_v22  ;;  %v1450_v22 = vld [vmem:[#allocation2 + $0xba] sm:$0xff] }
  0x8d   : > { %1306 = vmatprep.mubr.f32.mxu1 %v7355_v6 }
  0x8e   : > { %4166 = vmatmul.mubr.msk.f32.gmra.mxu0 %vm439_vm1, %v495_v23 }
  0x8f   : > { %827 = vmatprep.mubr.f32.mxu0 %v7355_v6 }
  0x90   : > { %4222 = vmatmul.mubr.msk.f32.gmra.mxu1 %vm439_vm1, %v979_v24 }
  0x91   : > { %1312 = vmatprep.mubr.f32.mxu1 %v7355_v6 }
  0x92   : > { %4167 = vmatmul.mubr.msk.f32.gmra.mxu0 %vm439_vm1, %v496_v25  ;;  %v4348_v25 = vld [vmem:[%s7344_s3 + $0x2e0] sm:$0xff] }
  0x93   : > { %833 = vmatprep.mubr.f32.mxu0 %v7355_v6 }
  0x94   : > { %4223 = vmatmul.mubr.msk.f32.gmra.mxu1 %vm439_vm1, %v980_v26  ;;  %v2132_v26 = vld [vmem:[%s7344_s3 + $0x98] sm:$0xff] }
  0x95   : > { %1318 = vmatprep.mubr.f32.mxu1 %v7355_v6  ;;  %2157 = vmatprep.subr.mxu1 %v2132_v26  ;;  %v4331_v26 = vld [vmem:[%s7344_s3 + $0x258] sm:$0xff] }
  0x96   : > { %4168 = vmatmul.mubr.msk.f32.gmra.mxu0 %vm439_vm1, %v497_v27  ;;  %v4347_v27 = vld [vmem:[%s7344_s3 + $0x2d8] sm:$0xff] }
  0x97   : > { %839 = vmatprep.mubr.f32.mxu0 %v7355_v6 }
  0x98   : > { %4224 = vmatmul.mubr.msk.f32.gmra.mxu1 %vm439_vm1, %v981_v28  ;;  %v2131_v28 = vld [vmem:[%s7344_s3 + $0x90] sm:$0xff] }
  0x99   : > { %1324 = vmatprep.mubr.f32.mxu1 %v7355_v6  ;;  %2158 = vmatpush1.msra.mxu1 %v2131_v28  ;;  %v2115_v28 = vld [vmem:[%s7344_s3 + $0x10] sm:$0xff] }
  0x9a   : > { %4169 = vmatmul.mubr.msk.f32.gmra.mxu0 %vm439_vm1, %v498_v29 }
  0x9b   : > { %845 = vmatprep.mubr.f32.mxu0 %v7355_v6 }
  0x9c   : > { %4225 = vmatmul.mubr.msk.f32.gmra.mxu1 %vm439_vm1, %v982_v30  ;;  %v4346_v30 = vld [vmem:[%s7344_s3 + $0x2d0] sm:$0xff] }
  0x9d   : > { %1330 = vmatprep.mubr.f32.mxu1 %v7355_v6 }
  0x9e   : > { %4170 = vmatmul.mubr.msk.f32.gmra.mxu0 %vm439_vm1, %v499_v31  ;;  %v2130_v31 = vld [vmem:[%s7344_s3 + $0x88] sm:$0xff] }
  0x9f   : > { %851 = vmatprep.mubr.f32.mxu0 %v7355_v6  ;;  %2159 = vmatprep.subr.mxu1 %v2130_v31  ;;  %v1456_v31 = vld [vmem:[#allocation2 + $0xfa] sm:$0xff] }
  0xa0   : > { %4226 = vmatmul.mubr.msk.f32.gmra.mxu1 %vm439_vm1, %v983_v32  ;;  %v1451_v32 = vld [vmem:[#allocation2 + $0xca] sm:$0xff] }
  0xa1   : > { %1336 = vmatprep.mubr.f32.mxu1 %v7355_v6 }
  0xa2   : > { %4171 = vmatmul.mubr.msk.f32.gmra.mxu0 %vm439_vm1, %v500_v33  ;;  %v4345_v33 = vld [vmem:[%s7344_s3 + $0x2c8] sm:$0xff] }
  0xa3   : > { %857 = vmatprep.mubr.f32.mxu0 %v7355_v6 }
  0xa4   : > { %4227 = vmatmul.mubr.msk.f32.gmra.mxu1 %vm439_vm1, %v984_v34  ;;  %v2129_v34 = vld [vmem:[%s7344_s3 + $0x80] sm:$0xff] }
  0xa5   : > { %1342 = vmatprep.mubr.f32.mxu1 %v7355_v6  ;;  %2160 = vmatpush1.msra.mxu1 %v2129_v34 }
  0xa6   : > { %4172 = vmatmul.mubr.msk.f32.gmra.mxu0 %vm439_vm1, %v501_v35 }
  0xa7   : > { %863 = vmatprep.mubr.f32.mxu0 %v7355_v6 }
  0xa8   : > { %4228 = vmatmul.mubr.msk.f32.gmra.mxu1 %vm439_vm1, %v985_v36 }
  0xa9   : > { %1348 = vmatprep.mubr.f32.mxu1 %v7355_v6 }
  0xaa   : > { %4173 = vmatmul.mubr.msk.f32.gmra.mxu0 %vm439_vm1, %v502_v37  ;;  %v4344_v37 = vld [vmem:[%s7344_s3 + $0x2c0] sm:$0xff] }
  0xab   : > { %869 = vmatprep.mubr.f32.mxu0 %v7355_v6 }
  0xac   : > { %4229 = vmatmul.mubr.msk.f32.gmra.mxu1 %vm439_vm1, %v986_v38  ;;  %v2128_v38 = vld [vmem:[%s7344_s3 + $0x78] sm:$0xff] }
  0xad   : > { %1354 = vmatprep.mubr.f32.mxu1 %v7355_v6  ;;  %2161 = vmatprep.subr.mxu1 %v2128_v38  ;;  %v2113_v38 = vld [vmem:[%s7344_s3] sm:$0xff] }
  0xae   : > { %4174 = vmatmul.mubr.msk.f32.gmra.mxu0 %vm439_vm1, %v503_v39  ;;  %v4343_v39 = vld [vmem:[%s7344_s3 + $0x2b8] sm:$0xff] }
  0xaf   : > { %875 = vmatprep.mubr.f32.mxu0 %v7355_v6 }
  0xb0   : > { %4230 = vmatmul.mubr.msk.f32.gmra.mxu1 %vm439_vm1, %v987_v40 }
  0xb1   : > { %1360 = vmatprep.mubr.f32.mxu1 %v7355_v6 }
  0xb2   : > { %4175 = vmatmul.mubr.msk.f32.gmra.mxu0 %vm439_vm1, %v504_v41  ;;  %v2127_v41 = vld [vmem:[%s7344_s3 + $0x70] sm:$0xff] }
  0xb3   : > { %1648 = vmatprep.mubr.f32.mxu0 %v7355_v6  ;;  %2162 = vmatpush1.msra.mxu1 %v2127_v41 }
  0xb4   : > { %4231 = vmatmul.mubr.msk.f32.gmra.mxu1 %vm439_vm1, %v988_v42  ;;  %v4342_v42 = vld [vmem:[%s7344_s3 + $0x2b0] sm:$0xff] }
  0xb5   : > { %2209 = vmatprep.mubr.f32.mxu1 %v7355_v6 }
  0xb6   : > { %4256 = vmatmul.mubr.msk.f32.vlgmr.msra.gmra.mxu0 %vm439_vm1, %v1431_v43  ;;  %v1452_v43 = vld [vmem:[#allocation2 + $0xd2] sm:$0xff] }
  0xb7   : > { %1654 = vmatprep.mubr.f32.mxu0 %v7355_v6  ;;  %2641 = vmatpush1.msra.mxu0 %v4350_v19 }
  0xb8   : > { %2642 = vmatprep.subr.mxu0 %v4349_v21 }
  0xb9   : > { %2643 = vmatpush1.msra.mxu0 %v4348_v25  ;;  %v2116_v25 = vld [vmem:[%s7344_s3 + $0x18] sm:$0xff] }
  0xba   : > { %4257 = vmatmul.mubr.msk.f32.gmra.mxu0 %vm439_vm1, %v1432_v44  ;;  %2644 = vmatprep.subr.mxu0 %v4347_v27  ;;  %v2126_v44 = vld [vmem:[%s7344_s3 + $0x68] sm:$0xff] }
  0xbb   : > { %1660 = vmatprep.mubr.f32.mxu0 %v7355_v6  ;;  %2645 = vmatpush1.msra.mxu0 %v4346_v30  ;;  %v4330_v30 = vld [vmem:[%s7344_s3 + $0x250] sm:$0xff] }
  0xbc   : > { %2646 = vmatprep.subr.mxu0 %v4345_v33  ;;  %2163 = vmatprep.subr.mxu1 %v2126_v44 }
  0xbd   : > { %2647 = vmatpush1.msra.mxu0 %v4344_v37  ;;  %v4329_v37 = vld [vmem:[%s7344_s3 + $0x248] sm:$0xff] }
  0xbe   : > { %4258 = vmatmul.mubr.msk.f32.gmra.mxu0 %vm439_vm1, %v1433_v45  ;;  %2648 = vmatprep.subr.mxu0 %v4343_v39  ;;  %v4328_v39 = vld [vmem:[%s7344_s3 + $0x240] sm:$0xff] }
  0xbf   : > { %1666 = vmatprep.mubr.f32.mxu0 %v7355_v6  ;;  %2649 = vmatpush1.msra.mxu0 %v4342_v42  ;;  %v4327_v42 = vld [vmem:[%s7344_s3 + $0x238] sm:$0xff] }
  0xc2   : > { %4259 = vmatmul.mubr.msk.f32.gmra.mxu0 %vm439_vm1, %v1434_v46 }
  0xc3   : > { %1672 = vmatprep.mubr.f32.mxu0 %v7355_v6 }
  0xc6   : > { %4260 = vmatmul.mubr.msk.f32.gmra.mxu0 %vm439_vm1, %v1435_v47  ;;  %v4341_v47 = vld [vmem:[%s7344_s3 + $0x2a8] sm:$0xff] }
  0xc7   : > { %1678 = vmatprep.mubr.f32.mxu0 %v7355_v6  ;;  %2650 = vmatprep.subr.mxu0 %v4341_v47 }
  0xca   : > { %4261 = vmatmul.mubr.msk.f32.gmra.mxu0 %vm439_vm1, %v1436_v48  ;;  %v2125_v48 = vld [vmem:[%s7344_s3 + $0x60] sm:$0xff] }
  0xcb   : > { %1684 = vmatprep.mubr.f32.mxu0 %v7355_v6  ;;  %2164 = vmatpush1.msra.mxu1 %v2125_v48  ;;  %v4326_v48 = vld [vmem:[%s7344_s3 + $0x230] sm:$0xff] }
  0xcc   : > { %2165 = vmatprep.subr.mxu1 %v2124_v51 }
  0xce   : > { %4262 = vmatmul.mubr.msk.f32.gmra.mxu0 %vm439_vm1, %v1437_v49  ;;  %v4340_v49 = vld [vmem:[%s7344_s3 + $0x2a0] sm:$0xff] }
  0xcf   : > { %1690 = vmatprep.mubr.f32.mxu0 %v7355_v6  ;;  %2651 = vmatpush1.msra.mxu0 %v4340_v49  ;;  %v4325_v49 = vld [vmem:[%s7344_s3 + $0x228] sm:$0xff] }
  0xd2   : > { %4263 = vmatmul.mubr.msk.f32.gmra.mxu0 %vm439_vm1, %v1438_v50 }
  0xd3   : > { %1696 = vmatprep.mubr.f32.mxu0 %v7355_v6 }
  0xd6   : > { %4264 = vmatmul.mubr.msk.f32.gmra.mxu0 %vm439_vm1, %v1439_v52  ;;  %v4339_v52 = vld [vmem:[%s7344_s3 + $0x298] sm:$0xff] }
  0xd7   : > { %1702 = vmatprep.mubr.f32.mxu0 %v7355_v6  ;;  %2652 = vmatprep.subr.mxu0 %v4339_v52  ;;  %v4324_v52 = vld [vmem:[%s7344_s3 + $0x220] sm:$0xff] }
  0xd8   : > { %2653 = vmatpush1.msra.mxu0 %v4338_v57 }
  0xd9   : > { %2654 = vmatprep.subr.mxu0 %v4337_v59  ;;  %v4322_v59 = vld [vmem:[%s7344_s3 + $0x210] sm:$0xff] }
  0xda   : > { %4265 = vmatmul.mubr.msk.f32.gmra.mxu0 %vm439_vm1, %v1440_v54  ;;  %v2123_v54 = vld [vmem:[%s7344_s3 + $0x50] sm:$0xff] }
  0xdb   : > { %1708 = vmatprep.mubr.f32.mxu0 %v7355_v6  ;;  %2166 = vmatpush1.msra.mxu1 %v2123_v54  ;;  %v4323_v54 = vld [vmem:[%s7344_s3 + $0x218] sm:$0xff] }
  0xde   : > { %4266 = vmatmul.mubr.msk.f32.gmra.mxu0 %vm439_vm1, %v1441_v56 }
  0xdf   : > { %1714 = vmatprep.mubr.f32.mxu0 %v7355_v6 }
  0xe2   : > { %4267 = vmatmul.mubr.msk.f32.gmra.mxu0 %vm439_vm1, %v1442_v58  ;;  %v2122_v58 = vld [vmem:[%s7344_s3 + $0x48] sm:$0xff] }
  0xe3   : > { %1720 = vmatprep.mubr.f32.mxu0 %v7355_v6  ;;  %2167 = vmatprep.subr.mxu1 %v2122_v58 }
  0xe4   : > { %2168 = vmatpush1.msra.mxu1 %v2121_v61  ;;  %v4321_v61 = vld [vmem:[%s7344_s3 + $0x208] sm:$0xff] }
  0xe6   : > { %4268 = vmatmul.mubr.msk.f32.gmra.mxu0 %vm439_vm1, %v1443_v60 }
  0xe7   : > { %1726 = vmatprep.mubr.f32.mxu0 %v7355_v6 }
  0xea   : > { %4269 = vmatmul.mubr.msk.f32.gmra.mxu0 %vm439_vm1, %v1444_v62  ;;  %v4336_v62 = vld [vmem:[%s7344_s3 + $0x280] sm:$0xff] }
  0xeb   : > { %1732 = vmatprep.mubr.f32.mxu0 %v7355_v6  ;;  %2655 = vmatpush1.msra.mxu0 %v4336_v62 }
  0xec   : > { %2656 = vmatprep.subr.mxu0 %v4335_v3 }
  0xed   : > { %2657 = vmatpush1.msra.mxu0 %v4334_v5 }
  0xee   : > { %4270 = vmatmul.mubr.msk.f32.gmra.mxu0 %vm439_vm1, %v1445_v0  ;;  %v2120_v0 = vld [vmem:[%s7344_s3 + $0x38] sm:$0xff]  ;;  %2658 = vmatprep.subr.mxu0 %v4333_v16 }
  0xef   : > { %1738 = vmatprep.mubr.f32.mxu0 %v7355_v6  ;;  %2169 = vmatprep.subr.mxu1 %v2120_v0  ;;  %v1459_v0 = vld [vmem:[#allocation2 + $0x11a] sm:$0xff] }
  0xf2   : > { %4271 = vmatmul.mubr.msk.f32.gmra.mxu0 %vm439_vm1, %v1446_v2 }
  0xf3   : > { %1744 = vmatprep.mubr.f32.mxu0 %v7355_v6 }
  0xf6   : > { %v5504_v7 = vpop.f32.mrf.mxu0  ;;  %4272 = vmatmul.mubr.msk.f32.gmra.mxu0 %vm439_vm1, %v1447_v4  ;;  %v2119_v4 = vld [vmem:[%s7344_s3 + $0x30] sm:$0xff] }
  0xf7   : > { %1750 = vmatprep.mubr.f32.mxu0 %v7355_v6  ;;  %v5510_v10 = vpop.f32.mrf.mxu1  ;;  %2170 = vmatpush1.msra.mxu1 %v2119_v4 }
  0xf8   : > { %v5508_v9 = vpop.f32.mrf.mxu0 }
  0xf9   : > { %v5514_v12 = vpop.f32.mrf.mxu1 }
  0xfa   : > { %v5512_v11 = vpop.f32.mrf.mxu0  ;;  %4273 = vmatmul.mubr.msk.f32.gmra.mxu0 %vm439_vm1, %v1448_v8 }
  0xfb   : > { %1756 = vmatprep.mubr.f32.mxu0 %v7355_v6 }
  0xfc   : > { %v5518_v14 = vpop.f32.mrf.mxu0  ;;  %v5520_v15 = vpop.f32.mrf.mxu1 }
  0xfe   : > { %v5534_v20 = vpop.f32.mrf.mxu0  ;;  %4274 = vmatmul.mubr.msk.f32.gmra.mxu0 %vm439_vm1, %v1449_v13  ;;  %v5541_v23 = vpop.f32.mrf.mxu1  ;;  %v2118_v13 = vld [vmem:[%s7344_s3 + $0x28] sm:$0xff] }
  0xff   : > { %1762 = vmatprep.mubr.f32.mxu0 %v7355_v6  ;;  %2171 = vmatprep.subr.mxu1 %v2118_v13  ;;  %v1460_v13 = vld [vmem:[#allocation2 + $0x122] sm:$0xff] }
 0x100   : > { %v5543_v24 = vpop.f32.mrf.mxu0  ;;  %v5573_v35 = vpop.f32.mrf.mxu1  ;;  %2172 = vmatpush1.msra.mxu1 %v2117_v18 }
 0x101   : > { %2173 = vmatprep.subr.mxu1 %v2116_v25 }
 0x102   : > { %v5557_v29 = vpop.f32.mrf.mxu0  ;;  %4275 = vmatmul.mubr.msk.f32.gmra.mxu0 %vm439_vm1, %v1450_v22  ;;  %v5599_v45 = vpop.f32.mrf.mxu1  ;;  %v4332_v22 = vld [vmem:[%s7344_s3 + $0x260] sm:$0xff]  ;;  %2174 = vmatpush1.msra.mxu1 %v2115_v28 }
 0x103   : > { %1768 = vmatprep.mubr.f32.mxu0 %v7355_v6  ;;  %2659 = vmatpush1.msra.mxu0 %v4332_v22  ;;  %v1461_v22 = vld [vmem:[#allocation2 + $0x12a] sm:$0xff] }
 0x104   : > { %v5575_v36 = vpop.f32.mrf.mxu0  ;;  %v5625_v55 = vpop.f32.mrf.mxu1  ;;  %2660 = vmatprep.subr.mxu0 %v4331_v26 }
 0x105   : > { %2661 = vmatpush1.msra.mxu0 %v4330_v30  ;;  %v1462_v30 = vld [vmem:[#allocation2 + $0x132] sm:$0xff] }
 0x106   : > { %v5586_v40 = vpop.f32.mrf.mxu0  ;;  %4276 = vmatmul.mubr.msk.f32.gmra.mxu0 %vm439_vm1, %v1451_v32  ;;  %v5651_v1 = vpop.f32.mrf.mxu1  ;;  %v2114_v32 = vld [vmem:[%s7344_s3 + $0x8] sm:$0xff]  ;;  %2662 = vmatprep.subr.mxu0 %v4329_v37 }
 0x107   : > { %1774 = vmatprep.mubr.f32.mxu0 %v7355_v6  ;;  %2175 = vmatprep.subr.mxu1 %v2114_v32 }
 0x108   : > { %v5601_v46 = vpop.f32.mrf.mxu0  ;;  %v5677_v19 = vpop.f32.mrf.mxu1  ;;  %2176 = vmatpush1.msra.mxu1 %v2113_v38  ;;  %2663 = vmatpush1.msra.mxu0 %v4328_v39 }
 0x109   : > { %2664 = vmatprep.subr.mxu0 %v4327_v42 }
 0x10a   : > { %v5612_v50 = vpop.f32.mrf.mxu0  ;;  %4277 = vmatmul.mubr.msk.f32.gmra.mxu0 %vm439_vm1, %v1452_v43  ;;  %v5703_v33 = vpop.f32.mrf.mxu1  ;;  %v1457_v43 = vld [vmem:[#allocation2 + $0x102] sm:$0xff] }
 0x10b   : > { %1780 = vmatprep.mubr.f32.mxu0 %v7355_v6  ;;  %2665 = vmatpush1.msra.mxu0 %v4326_v48 }
 0x10c   : > { %v5627_v56 = vpop.f32.mrf.mxu0  ;;  %v5723_v44 = vpop.f32.mrf.mxu1  ;;  %2666 = vmatprep.subr.mxu0 %v4325_v49 }
 0x10d   : > { %2667 = vmatpush1.msra.mxu0 %v4324_v52 }
 0x10e   : > { %v5638_v60 = vpop.f32.mrf.mxu0  ;;  %4278 = vmatmul.mubr.msk.f32.gmra.mxu0 %vm439_vm1, %v1453_v53  ;;  %v1458_v53 = vld [vmem:[#allocation2 + $0x10a] sm:$0xff]  ;;  %v5743_v57 = vpop.f32.mrf.mxu1  ;;  %2668 = vmatprep.subr.mxu0 %v4323_v54 }
 0x10f   : > { %1786 = vmatprep.mubr.f32.mxu0 %v7355_v6  ;;  %2669 = vmatpush1.msra.mxu0 %v4322_v59 }
 0x110   : > { %v5653_v2 = vpop.f32.mrf.mxu0  ;;  %v5760_v3 = vpop.f32.mrf.mxu1  ;;  %2670 = vmatprep.subr.mxu0 %v4321_v61 }
 0x112   : > { %v5664_v8 = vpop.f32.mrf.mxu0  ;;  %4279 = vmatmul.mubr.msk.f32.gmra.mxu0 %vm439_vm1, %v1454_v63  ;;  %v4320_v63 = vld [vmem:[%s7344_s3 + $0x200] sm:$0xff]  ;;  %v5768_v16 = vpop.f32.mrf.mxu1 }
 0x113   : > { %1792 = vmatprep.mubr.f32.mxu0 %v7355_v6  ;;  %2671 = vmatpush1.msra.mxu0 %v4320_v63 }
 0x114   : > { %v5679_v21 = vpop.f32.mrf.mxu0  ;;  %v5776_v25 = vpop.f32.mrf.mxu1 }
 0x116   : > { %v5690_v27 = vpop.f32.mrf.mxu0  ;;  %4280 = vmatmul.mubr.msk.f32.gmra.mxu0 %vm439_vm1, %v1455_v17 }
 0x117   : > { %1798 = vmatprep.mubr.f32.mxu0 %v7355_v6 }
 0x118   : > { %v5705_v34 = vpop.f32.mrf.mxu0 }
 0x11a   : > { %v5716_v41 = vpop.f32.mrf.mxu0  ;;  %4281 = vmatmul.mubr.msk.f32.gmra.mxu0 %vm439_vm1, %v1456_v31  ;;  %v5784_v31 = vpop.f32.mrf.mxu1 }
 0x11b   : > { %1804 = vmatprep.mubr.f32.mxu0 %v7355_v6 }
 0x11c   : > { %v5725_v47 = vpop.f32.mrf.mxu0  ;;  %v5792_v38 = vpop.f32.mrf.mxu1 }
 0x11e   : > { %v5733_v51 = vpop.f32.mrf.mxu0  ;;  %4282 = vmatmul.mubr.msk.f32.gmra.mxu0 %vm439_vm1, %v1457_v43  ;;  %v5798_v43 = vpop.f32.mrf.mxu1 }
 0x11f   : > { %1810 = vmatprep.mubr.f32.mxu0 %v7355_v6 }
 0x120   : > { %v5745_v58 = vpop.f32.mrf.mxu0  ;;  %v5804_v52 = vpop.f32.mrf.mxu1 }
 0x122   : > { %v5753_v62 = vpop.f32.mrf.mxu0  ;;  %4283 = vmatmul.mubr.msk.f32.gmra.mxu0 %vm439_vm1, %v1458_v53  ;;  %v5810_v59 = vpop.f32.mrf.mxu1 }
 0x123   : > { %1816 = vmatprep.mubr.f32.mxu0 %v7355_v6 }
 0x124   : > { %v5762_v4 = vpop.f32.mrf.mxu0 }
 0x126   : > { %v5764_v5 = vpop.f32.mrf.mxu0  ;;  %4284 = vmatmul.mubr.msk.f32.gmra.mxu0 %vm439_vm1, %v1459_v0  ;;  %v5816_v0 = vpop.f32.mrf.mxu1 }
 0x127   : > { %1822 = vmatprep.mubr.f32.mxu0 %v7355_v6 }
 0x128   : > { %v5770_v17 = vpop.f32.mrf.mxu0 }
 0x12a   : > { %v5772_v18 = vpop.f32.mrf.mxu0  ;;  %4285 = vmatmul.mubr.msk.f32.gmra.mxu0 %vm439_vm1, %v1460_v13 }
 0x12b   : > { %7368 = vst [vmem:[#allocation13_spill] sm:$0xff] %v5772_v18  ;;  %1828 = vmatprep.mubr.f32.mxu0 %v7355_v6 }
 0x12c   : > { %v5778_v26 = vpop.f32.mrf.mxu0 }
 0x12d   : > { %7369 = vst [vmem:[#allocation14_spill] sm:$0xff] %v5778_v26 }
 0x12e   : > { %v5780_v28 = vpop.f32.mrf.mxu0  ;;  %4286 = vmatmul.mubr.msk.f32.gmra.mxu0 %vm439_vm1, %v1461_v22 }
 0x12f   : > { %7370 = vst [vmem:[#allocation15_spill] sm:$0xff] %v5780_v28  ;;  %1834 = vmatprep.mubr.f32.mxu0 %v7355_v6 }
 0x130   : > { %v5786_v32 = vpop.f32.mrf.mxu0 }
 0x131   : > { %7371 = vst [vmem:[#allocation16_spill] sm:$0xff] %v5786_v32 }
 0x132   : > { %v5788_v37 = vpop.f32.mrf.mxu0  ;;  %4287 = vmatmul.mubr.msk.f32.gmra.mxu0 %vm439_vm1, %v1462_v30  ;;  %v5822_v30 = vpop.f32.mrf.mxu1 }
 0x133   : > { %7372 = vst [vmem:[#allocation17_spill] sm:$0xff] %v5788_v37  ;;  %2704 = vmatprep.mubr.f32.mxu0 %v7355_v6 }
 0x134   : > { %v5794_v39 = vpop.f32.mrf.mxu0 }
 0x135   : > { %7373 = vst [vmem:[#allocation18_spill] sm:$0xff] %v5794_v39 }
 0x136   : > { %v5796_v42 = vpop.f32.mrf.mxu0 }
 0x137   : > { %7374 = vst [vmem:[#allocation19_spill] sm:$0xff] %v5796_v42 }
 0x138   : > { %v5800_v48 = vpop.f32.mrf.mxu0 }
 0x139   : > { %7375 = vst [vmem:[#allocation20_spill] sm:$0xff] %v5800_v48 }
 0x13a   : > { %v5802_v49 = vpop.f32.mrf.mxu0 }
 0x13b   : > { %7376 = vst [vmem:[#allocation21_spill] sm:$0xff] %v5802_v49 }
 0x13c   : > { %v5806_v53 = vpop.f32.mrf.mxu0 }
 0x13d   : > { %7377 = vst [vmem:[#allocation22_spill] sm:$0xff] %v5806_v53  ;;  %v5828_v53 = vpop.f32.mrf.mxu1 }
 0x13e   : > { %v5808_v54 = vpop.f32.mrf.mxu0 }
 0x13f   : > { %7378 = vst [vmem:[#allocation23_spill] sm:$0xff] %v5808_v54 }
 0x140   : > { %v5812_v61 = vpop.f32.mrf.mxu0 }
 0x141   : > { %7379 = vst [vmem:[#allocation24_spill] sm:$0xff] %v5812_v61  ;;  %v5834_v61 = vpop.f32.mrf.mxu1 }
 0x142   : > { %v5814_v63 = vpop.f32.mrf.mxu0 }
 0x143   : > { %7380 = vst [vmem:[#allocation25_spill] sm:$0xff] %v5814_v63 }
 0x144   : > { %v5818_v13 = vpop.f32.mrf.mxu0 }
 0x145   : > { %7381 = vst [vmem:[#allocation26_spill] sm:$0xff] %v5818_v13  ;;  %v5840_v13 = vpop.f32.mrf.mxu1 }
 0x146   : > { %v5820_v22 = vpop.f32.mrf.mxu0  ;;  %7389 = vst [vmem:[#allocation34_spill] sm:$0xff] %v5840_v13 }
 0x147   : > { %7382 = vst [vmem:[#allocation27_spill] sm:$0xff] %v5820_v22 }
 0x148   : > { %v5824_v6 = vpop.f32.mrf.mxu0 }
 0x149   : > { %7383 = vst [vmem:[#allocation28_spill] sm:$0xff] %v5824_v6  ;;  %v5846_v6 = vpop.f32.mrf.mxu1 }
 0x14a   : > { %v5826_v49 = vpop.f32.mrf.mxu0  ;;  %7392 = vst [vmem:[#allocation37_spill] sm:$0xff] %v5846_v6 }
 0x14b   : > { %7384 = vst [vmem:[#allocation29_spill] sm:$0xff] %v5826_v49 }
 0x14c   : > { %v5830_v54 = vpop.f32.mrf.mxu0 }
 0x14d   : > { %7385 = vst [vmem:[#allocation30_spill] sm:$0xff] %v5830_v54 }
 0x14e   : > { %v5832_v48 = vpop.f32.mrf.mxu0 }
 0x14f   : > { %7386 = vst [vmem:[#allocation31_spill] sm:$0xff] %v5832_v48  ;;  %v4319_v48 = vld [vmem:[%s7344_s3 + $0x1f8] sm:$0xff] }
 0x150   : > { %v5836_v63 = vpop.f32.mrf.mxu0  ;;  %2398 = vmatprep.subr.mxu1 %v4319_v48 }
 0x151   : > { %7387 = vst [vmem:[#allocation32_spill] sm:$0xff] %v5836_v63  ;;  %v5855_v63 = vpop.f32.mrf.mxu1 }
 0x152   : > { %v5838_v42 = vpop.f32.mrf.mxu0  ;;  %7395 = vst [vmem:[#allocation40_spill] sm:$0xff] %v5855_v63 }
 0x153   : > { %7388 = vst [vmem:[#allocation33_spill] sm:$0xff] %v5838_v42 }
 0x154   : > { %v5842_v22 = vpop.f32.mrf.mxu0 }
 0x155   : > { %7390 = vst [vmem:[#allocation35_spill] sm:$0xff] %v5842_v22  ;;  %v5861_v22 = vpop.f32.mrf.mxu1 }
 0x156   : > { %v5844_v39 = vpop.f32.mrf.mxu0  ;;  %7398 = vst [vmem:[#allocation43_spill] sm:$0xff] %v5861_v22 }
 0x157   : > { %7391 = vst [vmem:[#allocation36_spill] sm:$0xff] %v5844_v39  ;;  %v5867_v28 = vpop.f32.mrf.mxu1 }
 0x158   : > { %v5848_v49 = vpop.f32.mrf.mxu0  ;;  %7401 = vst [vmem:[#allocation46_spill] sm:$0xff] %v5867_v28 }
 0x159   : > { %7393 = vst [vmem:[#allocation38_spill] sm:$0xff] %v5848_v49  ;;  %v7357_v49 = vlaneseq  ;;  %v5874_v63 = vpop.f32.mrf.mxu1 }
 0x15a   : > { %v5853_v54 = vpop.f32.mrf.mxu0  ;;  %7404 = vst [vmem:[#allocation49_spill] sm:$0xff] %v5874_v63 }
 0x15b   : > { %7394 = vst [vmem:[#allocation39_spill] sm:$0xff] %v5853_v54  ;;  %v884_v54 = vshrl.u32 %v7357_v49, 7  ;;  %v5887_v28 = vpop.f32.mrf.mxu1 }
 0x15c   : > { %v5857_v42 = vpop.f32.mrf.mxu0  ;;  %7409 = vst [vmem:[#allocation54_spill] sm:$0xff] %v5887_v28 }
 0x15d   : > { %7396 = vst [vmem:[#allocation41_spill] sm:$0xff] %v5857_v42  ;;  %v5880_v22 = vsub.s32 0, %v884_v54 }
 0x15e   : > { %v5859_v37 = vpop.f32.mrf.mxu0 }
 0x15f   : > { %7397 = vst [vmem:[#allocation42_spill] sm:$0xff] %v5859_v37  ;;  %7407 = vst [vmem:[#allocation52_spill] sm:$0xff] %v5880_v22 }
 0x160   : > { %v5863_v39 = vpop.f32.mrf.mxu0 }
 0x161   : > { %7399 = vst [vmem:[#allocation44_spill] sm:$0xff] %v5863_v39  ;;  %v5882_v39 = vsub.s32 1, %v884_v54 }
 0x162   : > { %v5865_v32 = vpop.f32.mrf.mxu0 }
 0x163   : > { %7400 = vst [vmem:[#allocation45_spill] sm:$0xff] %v5865_v32  ;;  %7408 = vst [vmem:[#allocation53_spill] sm:$0xff] %v5882_v39  ;;  %v472_v32 = vld [vmem:[%s7343_s2] sm:$0x3] }
 0x164   : > { %v5869_v26 = vpop.f32.mrf.mxu0  ;;  %v5894_v49 = vrot.slane %v472_v32, %v5880_v22 }
 0x165   : > { %7402 = vst [vmem:[#allocation47_spill] sm:$0xff] %v5869_v26 }
 0x166   : > { %v5871_v48 = vpop.f32.mrf.mxu0  ;;  %v893_v6 = vadd.f32 %v5894_v49, %v5504_v7 }
 0x167   : > { %7403 = vst [vmem:[#allocation48_spill] sm:$0xff] %v5871_v48 }
 0x168   : > { %v5876_v42 = vpop.f32.mrf.mxu0  ;;  %v1367_v22 = vadd.f32 %v5510_v10, %v893_v6 }
 0x169   : > { %7405 = vst [vmem:[#allocation50_spill] sm:$0xff] %v5876_v42  ;;  %v5897_v42 = vrot.slane %v472_v32, %v5882_v39  ;;  %v895_v32 = vadd.f32 %v5894_v49, %v5512_v11 }
 0x16a   : > { %v5878_v37 = vpop.f32.mrf.mxu0 }
 0x16b   : > { %7406 = vst [vmem:[#allocation51_spill] sm:$0xff] %v5878_v37  ;;  %v5899_v37 = vpop.f32.mrf.mxu1  ;;  %v898_v6 = vadd.f32 %v5897_v42, %v5543_v24 }
 0x16c   : > { %v5889_v26 = vpop.f32.mrf.mxu0  ;;  %7412 = vst [vmem:[#allocation57_spill] sm:$0xff] %v5899_v37 }
 0x16d   : > { %7410 = vst [vmem:[#allocation55_spill] sm:$0xff] %v5889_v26  ;;  %v894_v26 = vadd.f32 %v5897_v42, %v5508_v9  ;;  %v5909_v28 = vpop.f32.mrf.mxu1 }
 0x16e   : > { %v5891_v48 = vpop.f32.mrf.mxu0  ;;  %7415 = vst [vmem:[#allocation60_spill] sm:$0xff] %v5909_v28  ;;  %v1369_v28 = vadd.f32 %v5520_v15, %v895_v32 }
 0x16f   : > { %7411 = vst [vmem:[#allocation56_spill] sm:$0xff] %v5891_v48  ;;  %v5919_v37 = vpop.f32.mrf.mxu1 }
 0x170   : > { %v5901_v54 = vpop.f32.mrf.mxu0  ;;  %7417 = vst [vmem:[#allocation62_spill] sm:$0xff] %v5919_v37 }
 0x171   : > { %7413 = vst [vmem:[#allocation58_spill] sm:$0xff] %v5901_v54  ;;  %v1368_v54 = vadd.f32 %v5514_v12, %v894_v26  ;;  %v5927_v12 = vpop.f32.mrf.mxu1 }
 0x172   : > { %v5903_v63 = vpop.f32.mrf.mxu0 }
 0x173   : > { %7414 = vst [vmem:[#allocation59_spill] sm:$0xff] %v5903_v63  ;;  %v896_v63 = vadd.f32 %v5897_v42, %v5518_v14  ;;  %v5935_v24 = vpop.f32.mrf.mxu1 }
 0x174   : > { %v5911_v48 = vpop.f32.mrf.mxu0 }
 0x175   : > { %7416 = vst [vmem:[#allocation61_spill] sm:$0xff] %v5911_v48  ;;  %v897_v48 = vadd.f32 %v5894_v49, %v5534_v20  ;;  %v1370_v11 = vadd.f32 %v5541_v23, %v896_v63  ;;  %v1372_v20 = vadd.f32 %v5599_v45, %v898_v6  ;;  %v900_v23 = vadd.f32 %v5897_v42, %v5575_v36  ;;  %v5943_v36 = vpop.f32.mrf.mxu1 }
 0x176   : > { %v1650_v39 = vpop.f32.mrf.mxu0  ;;  %v902_v45 = vadd.f32 %v5897_v42, %v5601_v46 }
 0x177   : > { %v1841_v13 = vadd.f32 %v1650_v39, %v1367_v22  ;;  %v899_v39 = vadd.f32 %v5894_v49, %v5557_v29  ;;  %v1371_v22 = vadd.f32 %v5573_v35, %v897_v48  ;;  %v901_v29 = vadd.f32 %v5894_v49, %v5586_v40  ;;  %v5951_v46 = vpop.f32.mrf.mxu1 }
 0x178   : > { %v1652_v7 = vpop.f32.mrf.mxu0  ;;  %v1374_v35 = vadd.f32 %v5651_v1, %v900_v23  ;;  %v1376_v40 = vadd.f32 %v5703_v33, %v902_v45  ;;  %v904_v1 = vadd.f32 %v5897_v42, %v5627_v56  ;;  %v906_v56 = vadd.f32 %v5897_v42, %v5653_v2 }
 0x179   : > { %v1842_v9 = vadd.f32 %v1652_v7, %v1368_v54  ;;  %v1375_v6 = vadd.f32 %v5677_v19, %v901_v29  ;;  %v905_v19 = vadd.f32 %v5894_v49, %v5638_v60  ;;  %v908_v2 = vadd.f32 %v5897_v42, %v5679_v21 }
 0x17a   : > { %v1656_v18 = vpop.f32.mrf.mxu0  ;;  %v1378_v33 = vadd.f32 %v5743_v57, %v904_v1  ;;  %v1380_v57 = vadd.f32 %v5768_v16, %v906_v56  ;;  %v910_v21 = vadd.f32 %v5897_v42, %v5705_v34  ;;  %v4316_v34 = vld [vmem:[%s7344_s3 + $0x1e0] sm:$0xff] }
 0x17b   : > { %v1905_v10 = vmax.f32 %v1841_v13, %v1842_v9  ;;  %v1843_v26 = vadd.f32 %v1656_v18, %v1369_v28  ;;  %v1373_v18 = vadd.f32 %v5625_v55, %v899_v39  ;;  %v1379_v60 = vadd.f32 %v5760_v3, %v905_v19 }
 0x17c   : > { %v1658_v14 = vpop.f32.mrf.mxu0  ;;  %v909_v3 = vadd.f32 %v5894_v49, %v5690_v27  ;;  %v1382_v16 = vadd.f32 %v5784_v31, %v908_v2  ;;  %v4317_v27 = vld [vmem:[%s7344_s3 + $0x1e8] sm:$0xff] }
 0x17d   : > { %1937 = vst [vmem:[#allocation3] sm:$0xff] %v1905_v10  ;;  %v1844_v37 = vadd.f32 %v1658_v14, %v1370_v11  ;;  %v903_v11 = vadd.f32 %v5894_v49, %v5612_v50 }
 0x17e   : > { %v1662_v15 = vpop.f32.mrf.mxu0  ;;  %v1383_v19 = vadd.f32 %v5792_v38, %v909_v3  ;;  %v4313_v38 = vld [vmem:[%s7344_s3 + $0x1c8] sm:$0xff] }
 0x17f   : > { %v1906_v63 = vmax.f32 %v1843_v26, %v1844_v37  ;;  %v1845_v54 = vadd.f32 %v1662_v15, %v1371_v22  ;;  %v1377_v50 = vadd.f32 %v5723_v44, %v903_v11  ;;  %v907_v44 = vadd.f32 %v5894_v49, %v5664_v8 }
 0x180   : > { %v1664_v13 = vpop.f32.mrf.mxu0 }
 0x181   : > { %1938 = vst [vmem:[#allocation3 + $0x8] sm:$0xff] %v1906_v63  ;;  %v1846_v32 = vadd.f32 %v1664_v13, %v1372_v20  ;;  %v1381_v8 = vadd.f32 %v5776_v25, %v907_v44  ;;  %v4312_v44 = vld [vmem:[%s7344_s3 + $0x1c0] sm:$0xff] }
 0x182   : > { %v1668_v28 = vpop.f32.mrf.mxu0 }
 0x183   : > { %v1907_v48 = vmax.f32 %v1845_v54, %v1846_v32  ;;  %v1847_v7 = vadd.f32 %v1668_v28, %v1373_v18  ;;  %v5959_v54 = vpop.f32.mrf.mxu1 }
 0x184   : > { %v1670_v37 = vpop.f32.mrf.mxu0 }
 0x185   : > { %1939 = vst [vmem:[#allocation3 + $0x10] sm:$0xff] %v1907_v48  ;;  %v1848_v9 = vadd.f32 %v1670_v37, %v1374_v35  ;;  %v5967_v45 = vpop.f32.mrf.mxu1 }
 0x186   : > { %v1674_v55 = vpop.f32.mrf.mxu0 }
 0x187   : > { %v1908_v10 = vmax.f32 %v1847_v7, %v1848_v9  ;;  %v1849_v22 = vadd.f32 %v1674_v55, %v1375_v6 }
 0x188   : > { %v1969_v14 = vld [vmem:[#allocation3] ss:$2 sm:$0xff]  ;;  %v2001_v26 = vld [vmem:[#allocation3 + $0x1] ss:$2 sm:$0xff]  ;;  %v1676_v39 = vpop.f32.mrf.mxu0 }
 0x189   : > { %v2032_v15 = vmax.f32 %v1969_v14, %v2001_v26  ;;  %1940 = vst [vmem:[#allocation3 + $0x18] sm:$0xff] %v1908_v10  ;;  %v1850_v20 = vadd.f32 %v1676_v39, %v1376_v40  ;;  %v4318_v10 = vld [vmem:[%s7344_s3 + $0x1f0] sm:$0xff]  ;;  %v5980_v14 = vpop.f32.mrf.mxu1 }
 0x18a   : > { %v1680_v23 = vpop.f32.mrf.mxu0 }
 0x18b   : > { %v2048_v63 = vmax.f32 %v2032_v15, 0.0  ;;  %v1909_v13 = vmax.f32 %v1849_v22, %v1850_v20  ;;  %v1851_v18 = vadd.f32 %v1680_v23, %v1377_v50  ;;  %v911_v15 = vadd.f32 %v5894_v49, %v5716_v41  ;;  %v4315_v50 = vld [vmem:[%s7344_s3 + $0x1d8] sm:$0xff]  ;;  %v4314_v41 = vld [vmem:[%s7344_s3 + $0x1d0] sm:$0xff] }
 0x18c   : > { %v1682_v32 = vpop.f32.mrf.mxu0  ;;  %v7418_v20 = vmov 0.0   ;;  %v1384_v23 = vadd.f32 %v5798_v43, %v910_v21 }
 0x18d   : > { %2080 = vst [vmem:[#allocation4 + $0x1] sm:$0xff] %v2048_v63  ;;  %1941 = vst [vmem:[#allocation3 + $0x20] sm:$0xff] %v1909_v13  ;;  %v1852_v28 = vadd.f32 %v1682_v32, %v1378_v33  ;;  %v912_v33 = vadd.f32 %v5897_v42, %v5725_v47  ;;  %v6002_v63 = vpop.f32.mrf.mxu1 }
 0x18e   : > { %v1686_v29 = vpop.f32.mrf.mxu0 }
 0x18f   : > { %v1910_v35 = vmax.f32 %v1851_v18, %v1852_v28  ;;  %v1853_v9 = vadd.f32 %v1686_v29, %v1379_v60  ;;  %v1385_v29 = vadd.f32 %v5804_v52, %v911_v15  ;;  %v913_v60 = vadd.f32 %v5894_v49, %v5733_v51  ;;  %v4311_v51 = vld [vmem:[%s7344_s3 + $0x1b8] sm:$0xff]  ;;  %v4306_v15 = vld [vmem:[%s7344_s3 + $0x190] sm:$0xff] }
 0x190   : > { %v1971_v48 = vld [vmem:[#allocation3 + $0x10] ss:$2 sm:$0xff]  ;;  %v2003_v37 = vld [vmem:[#allocation3 + $0x11] ss:$2 sm:$0xff]  ;;  %v1688_v7 = vpop.f32.mrf.mxu0  ;;  %v1386_v2 = vadd.f32 %v5810_v59, %v912_v33 }
 0x191   : > { %1942 = vst [vmem:[#allocation3 + $0x28] sm:$0xff] %v1910_v35  ;;  %v1854_v11 = vadd.f32 %v1688_v7, %v1380_v57  ;;  %v2033_v55 = vmax.f32 %v1971_v48, %v2003_v37  ;;  %v914_v35 = vadd.f32 %v5897_v42, %v5745_v58  ;;  %v6018_v7 = vpop.f32.mrf.mxu1  ;;  %v4310_v58 = vld [vmem:[%s7344_s3 + $0x1b0] sm:$0xff] }
 0x192   : > { %v1692_v6 = vpop.f32.mrf.mxu0 }
 0x193   : > { %v1911_v40 = vmax.f32 %v1853_v9, %v1854_v11  ;;  %v5975_v1 = vmax.f32 %v2033_v55, 0.0  ;;  %v1855_v31 = vadd.f32 %v1692_v6, %v1381_v8  ;;  %v915_v8 = vadd.f32 %v5894_v49, %v5753_v62  ;;  %v4309_v6 = vld [vmem:[%s7344_s3 + $0x1a8] sm:$0xff]  ;;  %v4308_v62 = vld [vmem:[%s7344_s3 + $0x1a0] sm:$0xff] }
 0x194   : > { %v1694_v26 = vpop.f32.mrf.mxu0  ;;  %v2097_v25 = vld [vmem:[#allocation4] sm:$0xff]  ;;  %v1388_v21 = vadd.f32 %v5822_v30, %v914_v35 }
 0x195   : > { %1943 = vst [vmem:[#allocation3 + $0x30] sm:$0xff] %v1911_v40  ;;  %v1856_v39 = vadd.f32 %v1694_v26, %v1382_v16  ;;  %2210 = vmatmul.mubr.f32.vlgmr.msra.gmra.mxu1 %v2097_v25  ;;  %2081 = vst [vmem:[#allocation4 + $0x9] sm:$0xff] %v5975_v1  ;;  %v1387_v16 = vadd.f32 %v5816_v0, %v913_v60  ;;  %v916_v40 = vadd.f32 %v5897_v42, %v5762_v4  ;;  %v4307_v26 = vld [vmem:[%s7344_s3 + $0x198] sm:$0xff]  ;;  %v6044_v25 = vpop.f32.mrf.mxu1 }
 0x196   : > { %v1698_v22 = vpop.f32.mrf.mxu0  ;;  %2215 = vmatprep.mubr.f32.mxu1 %v7418_v20  ;;  %2399 = vmatpush1.msra.mxu1 %v4318_v10  ;;  %v7420_v60 = vld [vmem:[#allocation34_spill] sm:$0xff] }
 0x197   : > { %v1912_v56 = vmax.f32 %v1855_v31, %v1856_v39  ;;  %2400 = vmatprep.subr.mxu1 %v4317_v27  ;;  %v1857_v43 = vadd.f32 %v1698_v22, %v1383_v19  ;;  %v1389_v22 = vadd.f32 %v5828_v53, %v915_v8  ;;  %v1390_v33 = vadd.f32 %v5834_v61, %v916_v40  ;;  %v6064_v53 = vpop.f32.mrf.mxu1  ;;  %v4303_v61 = vld [vmem:[%s7344_s3 + $0x178] sm:$0xff]  ;;  %v7423_v40 = vld [vmem:[#allocation40_spill] sm:$0xff] }
 0x198   : > { %v1973_v13 = vld [vmem:[#allocation3 + $0x20] ss:$2 sm:$0xff]  ;;  %v2005_v32 = vld [vmem:[#allocation3 + $0x21] ss:$2 sm:$0xff]  ;;  %v1700_v18 = vpop.f32.mrf.mxu0  ;;  %2401 = vmatpush1.msra.mxu1 %v4316_v34  ;;  %v4299_v8 = vld [vmem:[%s7344_s3 + $0x158] sm:$0xff] }
 0x199   : > { %1944 = vst [vmem:[#allocation3 + $0x38] sm:$0xff] %v1912_v56  ;;  %v1858_v28 = vadd.f32 %v1700_v18, %v1384_v23  ;;  %v2034_v47 = vmax.f32 %v1973_v13, %v2005_v32  ;;  %2402 = vmatprep.subr.mxu1 %v4315_v50  ;;  %v917_v50 = vadd.f32 %v5894_v49, %v5764_v5  ;;  %v4305_v23 = vld [vmem:[%s7344_s3 + $0x188] sm:$0xff]  ;;  %v4304_v5 = vld [vmem:[%s7344_s3 + $0x180] sm:$0xff] }
 0x19a   : > { %v1704_v57 = vpop.f32.mrf.mxu0  ;;  %2403 = vmatpush1.msra.mxu1 %v4314_v41  ;;  %v918_v56 = vadd.f32 %v5897_v42, %v5770_v17 }
 0x19b   : > { %v1913_v48 = vmax.f32 %v1857_v43, %v1858_v28  ;;  %v6016_v37 = vmax.f32 %v2034_v47, 0.0  ;;  %2404 = vmatprep.subr.mxu1 %v4313_v38  ;;  %v1859_v52 = vadd.f32 %v1704_v57, %v1385_v29  ;;  %v4302_v43 = vld [vmem:[%s7344_s3 + $0x170] sm:$0xff]  ;;  %v4301_v29 = vld [vmem:[%s7344_s3 + $0x168] sm:$0xff]  ;;  %v1391_v57 = vadd.f32 %v7420_v60, %v917_v50 }
 0x19c   : > { %v1706_v9 = vpop.f32.mrf.mxu0  ;;  %v2098_v11 = vld [vmem:[#allocation4 + $0x8] sm:$0xff]  ;;  %2405 = vmatpush1.msra.mxu1 %v4312_v44  ;;  %v7419_v28 = vld [vmem:[#allocation13_spill] sm:$0xff] }
 0x19d   : > { %v2591_v55 = vld [vmem:[#allocation4 + $0x2] sm:$0xff]  ;;  %1945 = vst [vmem:[#allocation3 + $0x40] sm:$0xff] %v1913_v48  ;;  %v1860_v59 = vadd.f32 %v1706_v9, %v1386_v2  ;;  %2216 = vmatmul.mubr.f32.gmra.mxu1 %v2098_v11  ;;  %2082 = vst [vmem:[#allocation4 + $0x19] sm:$0xff] %v6016_v37  ;;  %2406 = vmatprep.subr.mxu1 %v4311_v51  ;;  %v2592_v39 = vld [vmem:[#allocation4 + $0xa] sm:$0xff]  ;;  %v919_v47 = vadd.f32 %v5894_v49, %v7419_v28  ;;  %v6086_v51 = vpop.f32.mrf.mxu1 }
 0x19e   : > { %2705 = vmatmul.mubr.f32.vlgmr.msra.gmra.mxu0 %v2591_v55  ;;  %v1710_v3 = vpop.f32.mrf.mxu0  ;;  %2221 = vmatprep.mubr.f32.mxu1 %v7418_v20  ;;  %v7421_v2 = vld [vmem:[#allocation37_spill] sm:$0xff]  ;;  %v7422_v48 = vld [vmem:[#allocation14_spill] sm:$0xff]  ;;  %v4300_v55 = vld [vmem:[%s7344_s3 + $0x160] sm:$0xff] }
 0x19f   : > { %2710 = vmatprep.mubr.f32.mxu0 %v7418_v20  ;;  %v1914_v10 = vmax.f32 %v1859_v52, %v1860_v59  ;;  %2407 = vmatpush1.msra.mxu1 %v4310_v58  ;;  %v1861_v30 = vadd.f32 %v1710_v3, %v1387_v16  ;;  %v1392_v35 = vadd.f32 %v7421_v2, %v918_v56  ;;  %v4294_v60 = vld [vmem:[%s7344_s3 + $0x130] sm:$0xff] }
 0x1a0   : > { %v1975_v27 = vld [vmem:[#allocation3 + $0x30] ss:$2 sm:$0xff]  ;;  %v2007_v31 = vld [vmem:[#allocation3 + $0x31] ss:$2 sm:$0xff]  ;;  %v1712_v0 = vpop.f32.mrf.mxu0  ;;  %2408 = vmatprep.subr.mxu1 %v4309_v6  ;;  %v920_v9 = vadd.f32 %v5897_v42, %v7422_v48 }
 0x1a1   : > { %1946 = vst [vmem:[#allocation3 + $0x48] sm:$0xff] %v1914_v10  ;;  %v1862_v4 = vadd.f32 %v1712_v0, %v1388_v21  ;;  %v2035_v34 = vmax.f32 %v1975_v27, %v2007_v31  ;;  %2409 = vmatpush1.msra.mxu1 %v4308_v62  ;;  %v4298_v21 = vld [vmem:[%s7344_s3 + $0x150] sm:$0xff]  ;;  %v1393_v10 = vadd.f32 %v7423_v40, %v919_v47  ;;  %v7424_v62 = vld [vmem:[#allocation15_spill] sm:$0xff]  ;;  %v7430_v47 = vld [vmem:[#allocation18_spill] sm:$0xff] }
 0x1a2   : > { %2711 = vmatmul.mubr.f32.gmra.mxu0 %v2592_v39  ;;  %v1716_v19 = vpop.f32.mrf.mxu0  ;;  %2410 = vmatprep.subr.mxu1 %v4307_v26  ;;  %v921_v26 = vadd.f32 %v5894_v49, %v7424_v62  ;;  %v7425_v31 = vld [vmem:[#allocation43_spill] sm:$0xff]  ;;  %v7426_v39 = vld [vmem:[#allocation16_spill] sm:$0xff]  ;;  %v4291_v40 = vld [vmem:[%s7344_s3 + $0x118] sm:$0xff] }
 0x1a3   : > { %2716 = vmatprep.mubr.f32.mxu0 %v7418_v20  ;;  %v1915_v41 = vmax.f32 %v1861_v30, %v1862_v4  ;;  %v6059_v13 = vmax.f32 %v2035_v34, 0.0  ;;  %2411 = vmatpush1.msra.mxu1 %v4306_v15  ;;  %v1863_v38 = vadd.f32 %v1716_v19, %v1389_v22  ;;  %v1394_v0 = vadd.f32 %v7425_v31, %v920_v9  ;;  %v6102_v15 = vpop.f32.mrf.mxu1 }
 0x1a4   : > { %v1718_v32 = vpop.f32.mrf.mxu0  ;;  %v2099_v18 = vld [vmem:[#allocation4 + $0x18] sm:$0xff]  ;;  %2412 = vmatprep.subr.mxu1 %v4305_v23  ;;  %v922_v30 = vadd.f32 %v5897_v42, %v7426_v39  ;;  %v4297_v23 = vld [vmem:[%s7344_s3 + $0x148] sm:$0xff]  ;;  %v4290_v39 = vld [vmem:[%s7344_s3 + $0x110] sm:$0xff] }
 0x1a5   : > { %1947 = vst [vmem:[#allocation3 + $0x50] sm:$0xff] %v1915_v41  ;;  %v1864_v17 = vadd.f32 %v1718_v32, %v1390_v33  ;;  %2222 = vmatmul.mubr.f32.gmra.mxu1 %v2099_v18  ;;  %2083 = vst [vmem:[#allocation4 + $0x21] sm:$0xff] %v6059_v13  ;;  %v4296_v41 = vld [vmem:[%s7344_s3 + $0x140] sm:$0xff]  ;;  %v6128_v2 = vpop.f32.mrf.mxu1 }
 0x1a6   : > { %v1722_v44 = vpop.f32.mrf.mxu0  ;;  %2227 = vmatprep.mubr.f32.mxu1 %v7418_v20  ;;  %2413 = vmatpush1.msra.mxu1 %v4304_v5  ;;  %v7427_v5 = vld [vmem:[#allocation17_spill] sm:$0xff] }
 0x1a7   : > { %v1916_v11 = vmax.f32 %v1863_v38, %v1864_v17  ;;  %2414 = vmatprep.subr.mxu1 %v4303_v61  ;;  %v1865_v3 = vadd.f32 %v1722_v44, %v1391_v57  ;;  %v923_v32 = vadd.f32 %v5894_v49, %v7427_v5  ;;  %v4295_v61 = vld [vmem:[%s7344_s3 + $0x138] sm:$0xff]  ;;  %v924_v44 = vadd.f32 %v5897_v42, %v7430_v47  ;;  %v4293_v57 = vld [vmem:[%s7344_s3 + $0x128] sm:$0xff] }
 0x1a8   : > { %v1977_v52 = vld [vmem:[#allocation3 + $0x40] ss:$2 sm:$0xff]  ;;  %v2009_v59 = vld [vmem:[#allocation3 + $0x41] ss:$2 sm:$0xff]  ;;  %v1724_v58 = vpop.f32.mrf.mxu0  ;;  %2415 = vmatpush1.msra.mxu1 %v4302_v43  ;;  %v7428_v38 = vld [vmem:[#allocation46_spill] sm:$0xff] }
 0x1a9   : > { %1948 = vst [vmem:[#allocation3 + $0x58] sm:$0xff] %v1916_v11  ;;  %v1866_v6 = vadd.f32 %v1724_v58, %v1392_v35  ;;  %v2036_v16 = vmax.f32 %v1977_v52, %v2009_v59  ;;  %2416 = vmatprep.subr.mxu1 %v4301_v29  ;;  %v1395_v17 = vadd.f32 %v7428_v38, %v921_v26  ;;  %v7429_v43 = vld [vmem:[#allocation49_spill] sm:$0xff]  ;;  %v4292_v58 = vld [vmem:[%s7344_s3 + $0x120] sm:$0xff]  ;;  %v7434_v26 = vld [vmem:[#allocation20_spill] sm:$0xff] }
 0x1aa   : > { %v1728_v27 = vpop.f32.mrf.mxu0  ;;  %2417 = vmatpush1.msra.mxu1 %v4300_v55  ;;  %v1396_v28 = vadd.f32 %v7429_v43, %v922_v30  ;;  %v6148_v30 = vpop.f32.mrf.mxu1 }
 0x1ab   : > { %v1917_v4 = vmax.f32 %v1865_v3, %v1866_v6  ;;  %v6100_v34 = vmax.f32 %v2036_v16, 0.0  ;;  %2418 = vmatprep.subr.mxu1 %v4299_v8  ;;  %v1867_v33 = vadd.f32 %v1728_v27, %v1393_v10  ;;  %v7431_v8 = vld [vmem:[#allocation54_spill] sm:$0xff]  ;;  %v7432_v6 = vld [vmem:[#allocation19_spill] sm:$0xff]  ;;  %v7433_v10 = vld [vmem:[#allocation57_spill] sm:$0xff]  ;;  %v926_v27 = vadd.f32 %v5897_v42, %v7434_v26 }
 0x1ac   : > { %v1730_v22 = vpop.f32.mrf.mxu0  ;;  %v2100_v50 = vld [vmem:[#allocation4 + $0x20] sm:$0xff]  ;;  %2419 = vmatpush1.msra.mxu1 %v4298_v21  ;;  %v1397_v3 = vadd.f32 %v7431_v8, %v923_v32  ;;  %v925_v16 = vadd.f32 %v5894_v49, %v7432_v6  ;;  %v1398_v62 = vadd.f32 %v7433_v10, %v924_v44  ;;  %v7436_v32 = vld [vmem:[#allocation60_spill] sm:$0xff]  ;;  %v6164_v47 = vpop.f32.mrf.mxu1  ;;  %v7441_v26 = vld [vmem:[#allocation25_spill] sm:$0xff] }
 0x1ad   : > { %v2593_v19 = vld [vmem:[#allocation4 + $0x1a] sm:$0xff]  ;;  %1949 = vst [vmem:[#allocation3 + $0x60] sm:$0xff] %v1917_v4  ;;  %v1868_v56 = vadd.f32 %v1730_v22, %v1394_v0  ;;  %2228 = vmatmul.mubr.f32.gmra.mxu1 %v2100_v50  ;;  %2084 = vst [vmem:[#allocation4 + $0x31] sm:$0xff] %v6100_v34  ;;  %2420 = vmatprep.subr.mxu1 %v4297_v23  ;;  %v2594_v11 = vld [vmem:[#allocation4 + $0x22] sm:$0xff] }
 0x1ae   : > { %2717 = vmatmul.mubr.f32.gmra.mxu0 %v2593_v19  ;;  %v1734_v18 = vpop.f32.mrf.mxu0  ;;  %2233 = vmatprep.mubr.f32.mxu1 %v7418_v20  ;;  %v4289_v50 = vld [vmem:[%s7344_s3 + $0x108] sm:$0xff] }
 0x1af   : > { %2722 = vmatprep.mubr.f32.mxu0 %v7418_v20  ;;  %v1918_v29 = vmax.f32 %v1867_v33, %v1868_v56  ;;  %2421 = vmatpush1.msra.mxu1 %v4296_v41  ;;  %v1869_v55 = vadd.f32 %v1734_v18, %v1395_v17  ;;  %v4288_v33 = vld [vmem:[%s7344_s3 + $0x100] sm:$0xff]  ;;  %v7435_v56 = vld [vmem:[#allocation21_spill] sm:$0xff]  ;;  %v1399_v18 = vadd.f32 %v7436_v32, %v925_v16  ;;  %v7438_v17 = vld [vmem:[#allocation22_spill] sm:$0xff]  ;;  %v6174_v16 = vpop.f32.mrf.mxu1 }
 0x1b0   : > { %v1979_v35 = vld [vmem:[#allocation3 + $0x50] ss:$2 sm:$0xff]  ;;  %v2011_v48 = vld [vmem:[#allocation3 + $0x51] ss:$2 sm:$0xff]  ;;  %v1736_v9 = vpop.f32.mrf.mxu0  ;;  %2422 = vmatprep.subr.mxu1 %v4295_v61  ;;  %v927_v41 = vadd.f32 %v5894_v49, %v7435_v56  ;;  %v928_v43 = vadd.f32 %v5897_v42, %v7438_v17 }
 0x1b1   : > { %1950 = vst [vmem:[#allocation3 + $0x68] sm:$0xff] %v1918_v29  ;;  %v1870_v52 = vadd.f32 %v1736_v9, %v1396_v28  ;;  %v2037_v59 = vmax.f32 %v1979_v35, %v2011_v48  ;;  %2423 = vmatpush1.msra.mxu1 %v4294_v60  ;;  %v7437_v61 = vld [vmem:[#allocation62_spill] sm:$0xff] }
 0x1b2   : > { %2723 = vmatmul.mubr.f32.gmra.mxu0 %v2594_v11  ;;  %v1740_v21 = vpop.f32.mrf.mxu0  ;;  %2424 = vmatprep.subr.mxu1 %v4293_v57  ;;  %v1400_v38 = vadd.f32 %v7437_v61, %v926_v27  ;;  %v1401_v9 = vadd.f32 %v5927_v12, %v927_v41  ;;  %v7439_v11 = vld [vmem:[#allocation23_spill] sm:$0xff] }
 0x1b3   : > { %2728 = vmatprep.mubr.f32.mxu0 %v7418_v20  ;;  %v1919_v31 = vmax.f32 %v1869_v55, %v1870_v52  ;;  %v6143_v0 = vmax.f32 %v2037_v59, 0.0  ;;  %2425 = vmatpush1.msra.mxu1 %v4292_v58  ;;  %v1871_v19 = vadd.f32 %v1740_v21, %v1397_v3  ;;  %v929_v55 = vadd.f32 %v5894_v49, %v7439_v11  ;;  %v7440_v58 = vld [vmem:[#allocation24_spill] sm:$0xff] }
 0x1b4   : > { %v1742_v4 = vpop.f32.mrf.mxu0  ;;  %v2101_v22 = vld [vmem:[#allocation4 + $0x30] sm:$0xff]  ;;  %2426 = vmatprep.subr.mxu1 %v4291_v40  ;;  %v1402_v59 = vadd.f32 %v5935_v24, %v928_v43  ;;  %v930_v8 = vadd.f32 %v5897_v42, %v7440_v58  ;;  %v931_v24 = vadd.f32 %v5894_v49, %v7441_v26  ;;  %v7444_v43 = vld [vmem:[#allocation28_spill] sm:$0xff] }
 0x1b5   : > { %1951 = vst [vmem:[#allocation3 + $0x70] sm:$0xff] %v1919_v31  ;;  %v1872_v23 = vadd.f32 %v1742_v4, %v1398_v62  ;;  %2234 = vmatmul.mubr.f32.gmra.mxu1 %v2101_v22  ;;  %2085 = vst [vmem:[#allocation4 + $0x39] sm:$0xff] %v6143_v0  ;;  %v1403_v31 = vadd.f32 %v5943_v36, %v929_v55  ;;  %v7442_v4 = vld [vmem:[#allocation26_spill] sm:$0xff]  ;;  %v7443_v36 = vld [vmem:[#allocation27_spill] sm:$0xff] }
 0x1b6   : > { %v1746_v5 = vpop.f32.mrf.mxu0  ;;  %2239 = vmatprep.mubr.f32.mxu1 %v7418_v20  ;;  %2427 = vmatpush1.msra.mxu1 %v4290_v39  ;;  %v1404_v39 = vadd.f32 %v5951_v46, %v930_v8  ;;  %v932_v22 = vadd.f32 %v5897_v42, %v7442_v4  ;;  %v1405_v61 = vadd.f32 %v5959_v54, %v931_v24 }
 0x1b7   : > { %v1920_v28 = vmax.f32 %v1871_v19, %v1872_v23  ;;  %2428 = vmatprep.subr.mxu1 %v4289_v50  ;;  %v1873_v57 = vadd.f32 %v1746_v5, %v1399_v18  ;;  %v6185_v19 = vpop.f32.mrf.mxu1  ;;  %v933_v46 = vadd.f32 %v5894_v49, %v7443_v36 }
 0x1b8   : > { %v1981_v44 = vld [vmem:[#allocation3 + $0x60] ss:$2 sm:$0xff]  ;;  %v2013_v29 = vld [vmem:[#allocation3 + $0x61] ss:$2 sm:$0xff]  ;;  %v1748_v60 = vpop.f32.mrf.mxu0  ;;  %2429 = vmatpush1.msra.mxu1 %v4288_v33  ;;  %v1406_v17 = vadd.f32 %v5967_v45, %v932_v22 }
 0x1b9   : > { %1952 = vst [vmem:[#allocation3 + $0x78] sm:$0xff] %v1920_v28  ;;  %v1874_v35 = vadd.f32 %v1748_v60, %v1400_v38  ;;  %v2038_v48 = vmax.f32 %v1981_v44, %v2013_v29  ;;  %v934_v28 = vadd.f32 %v5897_v42, %v7444_v43  ;;  %v6196_v60 = vpop.f32.mrf.mxu1  ;;  %v1407_v55 = vadd.f32 %v5980_v14, %v933_v46  ;;  %v7450_v46 = vld [vmem:[#allocation35_spill] sm:$0xff] }
 0x1ba   : > { %v1752_v52 = vpop.f32.mrf.mxu0 }
 0x1bb   : > { %v1921_v3 = vmax.f32 %v1873_v57, %v1874_v35  ;;  %v6172_v6 = vmax.f32 %v2038_v48, 0.0  ;;  %v1875_v62 = vadd.f32 %v1752_v52, %v1401_v9  ;;  %v7445_v9 = vld [vmem:[#allocation29_spill] sm:$0xff]  ;;  %v1408_v52 = vadd.f32 %v6002_v63, %v934_v28 }
 0x1bc   : > { %v1754_v21 = vpop.f32.mrf.mxu0  ;;  %v2102_v40 = vld [vmem:[#allocation4 + $0x38] sm:$0xff]  ;;  %v935_v11 = vadd.f32 %v5894_v49, %v7445_v9 }
 0x1bd   : > { %v2595_v10 = vld [vmem:[#allocation4 + $0x32] sm:$0xff]  ;;  %1953 = vst [vmem:[#allocation3 + $0x80] sm:$0xff] %v1921_v3  ;;  %v1876_v12 = vadd.f32 %v1754_v21, %v1402_v59  ;;  %2240 = vmatmul.mubr.f32.gmra.mxu1 %v2102_v40  ;;  %2086 = vst [vmem:[#allocation4 + $0x49] sm:$0xff] %v6172_v6  ;;  %v2596_v41 = vld [vmem:[#allocation4 + $0x3a] sm:$0xff]  ;;  %v6206_v3 = vpop.f32.mrf.mxu1 }
 0x1be   : > { %2729 = vmatmul.mubr.f32.gmra.mxu0 %v2595_v10  ;;  %v1758_v27 = vpop.f32.mrf.mxu0  ;;  %2245 = vmatprep.mubr.f32.mxu1 %v7418_v20  ;;  %v7446_v59 = vld [vmem:[#allocation30_spill] sm:$0xff]  ;;  %v1409_v24 = vadd.f32 %v6018_v7, %v935_v11 }
 0x1bf   : > { %2734 = vmatprep.mubr.f32.mxu0 %v7418_v20  ;;  %v1922_v50 = vmax.f32 %v1875_v62, %v1876_v12  ;;  %v1877_v5 = vadd.f32 %v1758_v27, %v1403_v31  ;;  %v936_v58 = vadd.f32 %v5897_v42, %v7446_v59  ;;  %v7447_v27 = vld [vmem:[#allocation31_spill] sm:$0xff] }
 0x1c0   : > { %v1983_v23 = vld [vmem:[#allocation3 + $0x70] ss:$2 sm:$0xff]  ;;  %v2015_v33 = vld [vmem:[#allocation3 + $0x71] ss:$2 sm:$0xff]  ;;  %v1760_v56 = vpop.f32.mrf.mxu0  ;;  %v937_v14 = vadd.f32 %v5894_v49, %v7447_v27 }
 0x1c1   : > { %1954 = vst [vmem:[#allocation3 + $0x88] sm:$0xff] %v1922_v50  ;;  %v1878_v32 = vadd.f32 %v1760_v56, %v1404_v39  ;;  %v2039_v18 = vmax.f32 %v1983_v23, %v2015_v33  ;;  %v1410_v63 = vadd.f32 %v6044_v25, %v936_v58  ;;  %v7448_v39 = vld [vmem:[#allocation32_spill] sm:$0xff]  ;;  %v6216_v23 = vpop.f32.mrf.mxu1 }
 0x1c2   : > { %2735 = vmatmul.mubr.f32.gmra.mxu0 %v2596_v41  ;;  %v1764_v38 = vpop.f32.mrf.mxu0  ;;  %v938_v4 = vadd.f32 %v5897_v42, %v7448_v39 }
 0x1c3   : > { %2740 = vmatprep.mubr.f32.mxu0 %v7418_v20  ;;  %v1923_v44 = vmax.f32 %v1877_v5, %v1878_v32  ;;  %v6194_v29 = vmax.f32 %v2039_v18, 0.0  ;;  %v1879_v54 = vadd.f32 %v1764_v38, %v1405_v61  ;;  %v7449_v32 = vld [vmem:[#allocation33_spill] sm:$0xff]  ;;  %v1411_v61 = vadd.f32 %v6064_v53, %v937_v14  ;;  %v6227_v43 = vpop.f32.mrf.mxu1  ;;  %v7451_v53 = vld [vmem:[#allocation36_spill] sm:$0xff] }
 0x1c4   : > { %v1766_v57 = vpop.f32.mrf.mxu0  ;;  %v2103_v35 = vld [vmem:[#allocation4 + $0x48] sm:$0xff]  ;;  %v939_v25 = vadd.f32 %v5894_v49, %v7449_v32  ;;  %v1412_v36 = vadd.f32 %v6086_v51, %v938_v4  ;;  %v940_v38 = vadd.f32 %v5897_v42, %v7450_v46  ;;  %v941_v51 = vadd.f32 %v5894_v49, %v7451_v53  ;;  %v7454_v14 = vld [vmem:[#allocation41_spill] sm:$0xff]  ;;  %v7455_v32 = vld [vmem:[#allocation42_spill] sm:$0xff] }
 0x1c5   : > { %1955 = vst [vmem:[#allocation3 + $0x90] sm:$0xff] %v1923_v44  ;;  %v1880_v48 = vadd.f32 %v1766_v57, %v1406_v17  ;;  %2246 = vmatmul.mubr.f32.gmra.mxu1 %v2103_v35  ;;  %2087 = vst [vmem:[#allocation4 + $0x51] sm:$0xff] %v6194_v29 }
 0x1c6   : > { %v1770_v45 = vpop.f32.mrf.mxu0  ;;  %2251 = vmatprep.mubr.f32.mxu1 %v7418_v20  ;;  %v1413_v11 = vadd.f32 %v6102_v15, %v939_v25 }
 0x1c7   : > { %v1924_v8 = vmax.f32 %v1879_v54, %v1880_v48  ;;  %v1881_v62 = vadd.f32 %v1770_v45, %v1407_v55  ;;  %v1414_v55 = vadd.f32 %v6128_v2, %v940_v38 }
 0x1c8   : > { %v1985_v21 = vld [vmem:[#allocation3 + $0x80] ss:$2 sm:$0xff]  ;;  %v2017_v40 = vld [vmem:[#allocation3 + $0x81] ss:$2 sm:$0xff]  ;;  %v1772_v10 = vpop.f32.mrf.mxu0 }
 0x1c9   : > { %1956 = vst [vmem:[#allocation3 + $0x98] sm:$0xff] %v1924_v8  ;;  %v1882_v12 = vadd.f32 %v1772_v10, %v1408_v52  ;;  %v2040_v26 = vmax.f32 %v1985_v21, %v2017_v40  ;;  %v7452_v52 = vld [vmem:[#allocation38_spill] sm:$0xff]  ;;  %v6238_v21 = vpop.f32.mrf.mxu1 }
 0x1ca   : > { %v1776_v31 = vpop.f32.mrf.mxu0  ;;  %v942_v59 = vadd.f32 %v5897_v42, %v7452_v52 }
 0x1cb   : > { %v1925_v22 = vmax.f32 %v1881_v62, %v1882_v12  ;;  %v6214_v50 = vmax.f32 %v2040_v26, 0.0  ;;  %v1883_v5 = vadd.f32 %v1776_v31, %v1409_v24  ;;  %v7453_v12 = vld [vmem:[#allocation39_spill] sm:$0xff]  ;;  %v1415_v24 = vadd.f32 %v6148_v30, %v941_v51  ;;  %v6248_v39 = vpop.f32.mrf.mxu1 }
 0x1cc   : > { %v1778_v33 = vpop.f32.mrf.mxu0  ;;  %v2104_v56 = vld [vmem:[#allocation4 + $0x50] sm:$0xff]  ;;  %v943_v26 = vadd.f32 %v5894_v49, %v7453_v12  ;;  %v1416_v27 = vadd.f32 %v6164_v47, %v942_v59  ;;  %v944_v31 = vadd.f32 %v5897_v42, %v7454_v14  ;;  %v945_v30 = vadd.f32 %v5894_v49, %v7455_v32  ;;  %v7459_v12 = vld [vmem:[#allocation48_spill] sm:$0xff] }
 0x1cd   : > { %v2597_v41 = vld [vmem:[#allocation4 + $0x4a] sm:$0xff]  ;;  %1957 = vst [vmem:[#allocation3 + $0xa0] sm:$0xff] %v1925_v22  ;;  %v1884_v7 = vadd.f32 %v1778_v33, %v1410_v63  ;;  %2252 = vmatmul.mubr.f32.gmra.mxu1 %v2104_v56  ;;  %2088 = vst [vmem:[#allocation4 + $0x61] sm:$0xff] %v6214_v50  ;;  %v2598_v35 = vld [vmem:[#allocation4 + $0x52] sm:$0xff]  ;;  %v1350_v38 = vpop.f32.mrf.mxu1 }
 0x1ce   : > { %2741 = vmatmul.mubr.f32.gmra.mxu0 %v2597_v41  ;;  %v1782_v18 = vpop.f32.mrf.mxu0  ;;  %2257 = vmatprep.mubr.f32.mxu1 %v7418_v20  ;;  %v1418_v47 = vadd.f32 %v6185_v19, %v944_v31 }
 0x1cf   : > { %2746 = vmatprep.mubr.f32.mxu0 %v7418_v20  ;;  %v1926_v17 = vmax.f32 %v1883_v5, %v1884_v7  ;;  %v1885_v54 = vadd.f32 %v1782_v18, %v1411_v61  ;;  %v1417_v7 = vadd.f32 %v6174_v16, %v943_v26  ;;  %v7456_v18 = vld [vmem:[#allocation44_spill] sm:$0xff]  ;;  %v7457_v16 = vld [vmem:[#allocation45_spill] sm:$0xff] }
 0x1d0   : > { %v1987_v28 = vld [vmem:[#allocation3 + $0x90] ss:$2 sm:$0xff]  ;;  %v2019_v44 = vld [vmem:[#allocation3 + $0x91] ss:$2 sm:$0xff]  ;;  %v1784_v57 = vpop.f32.mrf.mxu0  ;;  %v946_v61 = vadd.f32 %v5897_v42, %v7456_v18  ;;  %v947_v19 = vadd.f32 %v5894_v49, %v7457_v16 }
 0x1d1   : > { %1958 = vst [vmem:[#allocation3 + $0xa8] sm:$0xff] %v1926_v17  ;;  %v1886_v48 = vadd.f32 %v1784_v57, %v1412_v36  ;;  %v2041_v9 = vmax.f32 %v1987_v28, %v2019_v44 }
 0x1d2   : > { %2747 = vmatmul.mubr.f32.gmra.mxu0 %v2598_v35  ;;  %v1788_v45 = vpop.f32.mrf.mxu0 }
 0x1d3   : > { %2752 = vmatprep.mubr.f32.mxu0 %v7418_v20  ;;  %v1927_v58 = vmax.f32 %v1885_v54, %v1886_v48  ;;  %v6236_v8 = vmax.f32 %v2041_v9, 0.0  ;;  %v1887_v15 = vadd.f32 %v1788_v45, %v1413_v11  ;;  %v1419_v48 = vadd.f32 %v6196_v60, %v945_v30  ;;  %v7458_v11 = vld [vmem:[#allocation47_spill] sm:$0xff]  ;;  %v1352_v45 = vpop.f32.mrf.mxu1 }
 0x1d4   : > { %v1790_v40 = vpop.f32.mrf.mxu0  ;;  %v2105_v10 = vld [vmem:[#allocation4 + $0x60] sm:$0xff]  ;;  %v1420_v9 = vadd.f32 %v6206_v3, %v946_v61  ;;  %v948_v53 = vadd.f32 %v5897_v42, %v7458_v11  ;;  %v949_v60 = vadd.f32 %v5894_v49, %v7459_v12 }
 0x1d5   : > { %1959 = vst [vmem:[#allocation3 + $0xb0] sm:$0xff] %v1927_v58  ;;  %v1888_v62 = vadd.f32 %v1790_v40, %v1414_v55  ;;  %2258 = vmatmul.mubr.f32.gmra.mxu1 %v2105_v10  ;;  %2089 = vst [vmem:[#allocation4 + $0x69] sm:$0xff] %v6236_v8  ;;  %v1356_v31 = vpop.f32.mrf.mxu1 }
 0x1d6   : > { %v1794_v2 = vpop.f32.mrf.mxu0  ;;  %2263 = vmatprep.mubr.f32.mxu1 %v7418_v20  ;;  %v1422_v26 = vadd.f32 %v6227_v43, %v948_v53  ;;  %v1423_v43 = vadd.f32 %v6238_v21, %v949_v60 }
 0x1d7   : > { %v1928_v63 = vmax.f32 %v1887_v15, %v1888_v62  ;;  %v1889_v56 = vadd.f32 %v1794_v2, %v1415_v24  ;;  %v1421_v62 = vadd.f32 %v6216_v23, %v947_v19  ;;  %v7460_v2 = vld [vmem:[#allocation50_spill] sm:$0xff] }
 0x1d8   : > { %v1989_v4 = vld [vmem:[#allocation3 + $0xa0] ss:$2 sm:$0xff]  ;;  %v2021_v22 = vld [vmem:[#allocation3 + $0xa1] ss:$2 sm:$0xff]  ;;  %v1796_v33 = vpop.f32.mrf.mxu0  ;;  %v950_v24 = vadd.f32 %v5897_v42, %v7460_v2  ;;  %v7464_v19 = vld [vmem:[#allocation58_spill] sm:$0xff] }
 0x1d9   : > { %1960 = vst [vmem:[#allocation3 + $0xb8] sm:$0xff] %v1928_v63  ;;  %v1890_v41 = vadd.f32 %v1796_v33, %v1416_v27  ;;  %v2042_v5 = vmax.f32 %v1989_v4, %v2021_v22  ;;  %v7461_v33 = vld [vmem:[#allocation51_spill] sm:$0xff] }
 0x1da   : > { %v1800_v25 = vpop.f32.mrf.mxu0 }
 0x1db   : > { %v1929_v36 = vmax.f32 %v1889_v56, %v1890_v41  ;;  %v6256_v46 = vmax.f32 %v2042_v5, 0.0  ;;  %v1891_v57 = vadd.f32 %v1800_v25, %v1417_v7  ;;  %v951_v56 = vadd.f32 %v5894_v49, %v7461_v33  ;;  %v7462_v7 = vld [vmem:[#allocation55_spill] sm:$0xff]  ;;  %v1358_v25 = vpop.f32.mrf.mxu1 }
 0x1dc   : > { %v1802_v17 = vpop.f32.mrf.mxu0  ;;  %v2106_v28 = vld [vmem:[#allocation4 + $0x68] sm:$0xff]  ;;  %v1424_v5 = vadd.f32 %v6248_v39, %v950_v24  ;;  %v952_v32 = vadd.f32 %v5897_v42, %v7462_v7  ;;  %v954_v39 = vadd.f32 %v5897_v42, %v7464_v19  ;;  %v4410_v19 = vld [vmem:[%s7346_s5 + $0x2d0] sm:$0xff] }
 0x1dd   : > { %v2599_v44 = vld [vmem:[#allocation4 + $0x62] sm:$0xff]  ;;  %1961 = vst [vmem:[#allocation3 + $0xc0] sm:$0xff] %v1929_v36  ;;  %v1892_v35 = vadd.f32 %v1802_v17, %v1418_v47  ;;  %2264 = vmatmul.mubr.f32.gmra.mxu1 %v2106_v28  ;;  %2090 = vst [vmem:[#allocation4 + $0x79] sm:$0xff] %v6256_v46  ;;  %v2600_v58 = vld [vmem:[#allocation4 + $0x6a] sm:$0xff] }
 0x1de   : > { %2753 = vmatmul.mubr.f32.gmra.mxu0 %v2599_v44  ;;  %v1806_v54 = vpop.f32.mrf.mxu0  ;;  %2269 = vmatprep.mubr.f32.mxu1 %v7418_v20  ;;  %v1425_v44 = vadd.f32 %v1350_v38, %v951_v56  ;;  %v1426_v21 = vadd.f32 %v1352_v45, %v952_v32  ;;  %v7465_v45 = vld [vmem:[#allocation59_spill] sm:$0xff] }
 0x1df   : > { %2758 = vmatprep.mubr.f32.mxu0 %v7418_v20  ;;  %v1930_v51 = vmax.f32 %v1891_v57, %v1892_v35  ;;  %v1893_v40 = vadd.f32 %v1806_v54, %v1419_v48  ;;  %v7463_v57 = vld [vmem:[#allocation56_spill] sm:$0xff] }
 0x1e0   : > { %v1991_v55 = vld [vmem:[#allocation3 + $0xb0] ss:$2 sm:$0xff]  ;;  %v2023_v52 = vld [vmem:[#allocation3 + $0xb1] ss:$2 sm:$0xff]  ;;  %v1808_v59 = vpop.f32.mrf.mxu0  ;;  %v953_v35 = vadd.f32 %v5894_v49, %v7463_v57 }
 0x1e1   : > { %1962 = vst [vmem:[#allocation3 + $0xc8] sm:$0xff] %v1930_v51  ;;  %v1894_v10 = vadd.f32 %v1808_v59, %v1420_v9  ;;  %v2043_v15 = vmax.f32 %v1991_v55, %v2023_v52  ;;  %v1362_v9 = vpop.f32.mrf.mxu1 }
 0x1e2   : > { %2759 = vmatmul.mubr.f32.gmra.mxu0 %v2600_v58  ;;  %v1812_v3 = vpop.f32.mrf.mxu0  ;;  %v1427_v38 = vadd.f32 %v1356_v31, %v953_v35  ;;  %v955_v58 = vadd.f32 %v5894_v49, %v7465_v45  ;;  %v4404_v45 = vld [vmem:[%s7346_s5 + $0x2a0] sm:$0xff] }
 0x1e3   : > { %2764 = vmatprep.mubr.f32.mxu0 %v7418_v20  ;;  %v1931_v27 = vmax.f32 %v1893_v40, %v1894_v10  ;;  %v6274_v14 = vmax.f32 %v2043_v15, 0.0  ;;  %v1895_v22 = vadd.f32 %v1812_v3, %v1421_v62  ;;  %v1428_v40 = vadd.f32 %v1358_v25, %v954_v39  ;;  %v7466_v10 = vld [vmem:[#allocation61_spill] sm:$0xff]  ;;  %v1364_v12 = vpop.f32.mrf.mxu1  ;;  %v2970_v39 = vld [vmem:[%s7346_s5 + $0xc8] sm:$0xff] }
 0x1e4   : > { %v1814_v63 = vpop.f32.mrf.mxu0  ;;  %v2107_v4 = vld [vmem:[#allocation4 + $0x78] sm:$0xff]  ;;  %v956_v15 = vadd.f32 %v5897_v42, %v7466_v10  ;;  %v2963_v10 = vld [vmem:[%s7346_s5 + $0x90] sm:$0xff] }
 0x1e5   : > { %1963 = vst [vmem:[#allocation3 + $0xd0] sm:$0xff] %v1931_v27  ;;  %v1896_v23 = vadd.f32 %v1814_v63, %v1422_v26  ;;  %2270 = vmatmul.mubr.f32.gmra.mxu1 %v2107_v4  ;;  %2091 = vst [vmem:[#allocation4 + $0x81] sm:$0xff] %v6274_v14  ;;  %v1429_v4 = vadd.f32 %v1362_v9, %v955_v58  ;;  %v4408_v9 = vld [vmem:[%s7346_s5 + $0x2c0] sm:$0xff]  ;;  %v2964_v58 = vld [vmem:[%s7346_s5 + $0x98] sm:$0xff] }
 0x1e6   : > { %v1818_v41 = vpop.f32.mrf.mxu0  ;;  %2275 = vmatprep.mubr.f32.mxu1 %v7418_v20  ;;  %v1430_v49 = vadd.f32 %v1364_v12, %v956_v15  ;;  %v4402_v15 = vld [vmem:[%s7346_s5 + $0x290] sm:$0xff]  ;;  %v4401_v12 = vld [vmem:[%s7346_s5 + $0x288] sm:$0xff] }
 0x1e7   : > { %v1932_v30 = vmax.f32 %v1895_v22, %v1896_v23  ;;  %v1897_v36 = vadd.f32 %v1818_v41, %v1423_v43 }
 0x1e8   : > { %v1993_v47 = vld [vmem:[#allocation3 + $0xc0] ss:$2 sm:$0xff]  ;;  %v2025_v18 = vld [vmem:[#allocation3 + $0xc1] ss:$2 sm:$0xff]  ;;  %v1820_v61 = vpop.f32.mrf.mxu0 }
 0x1e9   : > { %1964 = vst [vmem:[#allocation3 + $0xd8] sm:$0xff] %v1932_v30  ;;  %v1898_v17 = vadd.f32 %v1820_v61, %v1424_v5  ;;  %v2044_v28 = vmax.f32 %v1993_v47, %v2025_v18 }
 0x1ea   : > { %v1824_v16 = vpop.f32.mrf.mxu0 }
 0x1eb   : > { %v1933_v54 = vmax.f32 %v1897_v36, %v1898_v17  ;;  %v6288_v48 = vmax.f32 %v2044_v28, 0.0  ;;  %v1899_v55 = vadd.f32 %v1824_v16, %v1425_v44  ;;  %v2349_v16 = vld [vmem:[#allocation4 + $0x1] sm:$0xff] }
 0x1ec   : > { %v1826_v11 = vpop.f32.mrf.mxu0  ;;  %v2108_v53 = vld [vmem:[#allocation4 + $0x80] sm:$0xff] }
 0x1ed   : > { %v2601_v51 = vld [vmem:[#allocation4 + $0x7a] sm:$0xff]  ;;  %1965 = vst [vmem:[#allocation3 + $0xe0] sm:$0xff] %v1933_v54  ;;  %v1900_v52 = vadd.f32 %v1826_v11, %v1426_v21  ;;  %2276 = vmatmul.mubr.f32.gmra.mxu1 %v2108_v53  ;;  %2092 = vst [vmem:[#allocation4 + $0x91] sm:$0xff] %v6288_v48  ;;  %v2602_v2 = vld [vmem:[#allocation4 + $0x82] sm:$0xff] }
 0x1ee   : > { %2765 = vmatmul.mubr.f32.gmra.mxu0 %v2601_v51  ;;  %v1830_v59 = vpop.f32.mrf.mxu0  ;;  %2281 = vmatprep.mubr.f32.mxu1 %v7418_v20  ;;  %v4409_v54 = vld [vmem:[%s7346_s5 + $0x2c8] sm:$0xff]  ;;  %v2968_v11 = vld [vmem:[%s7346_s5 + $0xb8] sm:$0xff]  ;;  %v2967_v51 = vld [vmem:[%s7346_s5 + $0xb0] sm:$0xff] }
 0x1ef   : > { %2770 = vmatprep.mubr.f32.mxu0 %v7418_v20  ;;  %v1934_v62 = vmax.f32 %v1899_v55, %v1900_v52  ;;  %v1901_v24 = vadd.f32 %v1830_v59, %v1427_v38  ;;  %v4407_v53 = vld [vmem:[%s7346_s5 + $0x2b8] sm:$0xff]  ;;  %v4406_v55 = vld [vmem:[%s7346_s5 + $0x2b0] sm:$0xff]  ;;  %v2966_v52 = vld [vmem:[%s7346_s5 + $0xa8] sm:$0xff] }
 0x1f0   : > { %v1995_v60 = vld [vmem:[#allocation3 + $0xd0] ss:$2 sm:$0xff]  ;;  %v2027_v3 = vld [vmem:[#allocation3 + $0xd1] ss:$2 sm:$0xff]  ;;  %v1832_v26 = vpop.f32.mrf.mxu0  ;;  %v4405_v38 = vld [vmem:[%s7346_s5 + $0x2a8] sm:$0xff] }
 0x1f1   : > { %1966 = vst [vmem:[#allocation3 + $0xe8] sm:$0xff] %v1934_v62  ;;  %v1902_v27 = vadd.f32 %v1832_v26, %v1428_v40  ;;  %v2045_v31 = vmax.f32 %v1995_v60, %v2027_v3  ;;  %v2965_v59 = vld [vmem:[%s7346_s5 + $0xa0] sm:$0xff]  ;;  %v4403_v40 = vld [vmem:[%s7346_s5 + $0x298] sm:$0xff]  ;;  %v2962_v62 = vld [vmem:[%s7346_s5 + $0x88] sm:$0xff] }
 0x1f2   : > { %2771 = vmatmul.mubr.f32.gmra.mxu0 %v2602_v2  ;;  %v1836_v63 = vpop.f32.mrf.mxu0  ;;  %v2961_v60 = vld [vmem:[%s7346_s5 + $0x80] sm:$0xff]  ;;  %v2960_v26 = vld [vmem:[%s7346_s5 + $0x78] sm:$0xff] }
 0x1f3   : > { %2776 = vmatprep.mubr.f32.mxu0 %v7418_v20  ;;  %v1935_v22 = vmax.f32 %v1901_v24, %v1902_v27  ;;  %v6298_v23 = vmax.f32 %v2045_v31, 0.0  ;;  %v1903_v56 = vadd.f32 %v1836_v63, %v1429_v4  ;;  %v4400_v3 = vld [vmem:[%s7346_s5 + $0x280] sm:$0xff]  ;;  %v4399_v2 = vld [vmem:[%s7346_s5 + $0x278] sm:$0xff]  ;;  %v2959_v24 = vld [vmem:[%s7346_s5 + $0x70] sm:$0xff] }
 0x1f4   : > { %v1838_v42 = vpop.f32.mrf.mxu0  ;;  %v2109_v33 = vld [vmem:[#allocation4 + $0x90] sm:$0xff]  ;;  %v2958_v31 = vld [vmem:[%s7346_s5 + $0x68] sm:$0xff]  ;;  %v2957_v4 = vld [vmem:[%s7346_s5 + $0x60] sm:$0xff] }
 0x1f5   : > { %1967 = vst [vmem:[#allocation3 + $0xf0] sm:$0xff] %v1935_v22  ;;  %v1904_v41 = vadd.f32 %v1838_v42, %v1430_v49  ;;  %2282 = vmatmul.mubr.f32.gmra.mxu1 %v2109_v33  ;;  %2093 = vst [vmem:[#allocation4 + $0x99] sm:$0xff] %v6298_v23  ;;  %v4398_v27 = vld [vmem:[%s7346_s5 + $0x270] sm:$0xff]  ;;  %v4397_v63 = vld [vmem:[%s7346_s5 + $0x268] sm:$0xff] }
 0x1f6   : > { %2287 = vmatprep.mubr.f32.mxu1 %v7418_v20  ;;  %v4396_v49 = vld [vmem:[%s7346_s5 + $0x260] sm:$0xff]  ;;  %v2956_v22 = vld [vmem:[%s7346_s5 + $0x58] sm:$0xff]  ;;  %v2955_v42 = vld [vmem:[%s7346_s5 + $0x50] sm:$0xff] }
 0x1f7   : > { %v1936_v43 = vmax.f32 %v1903_v56, %v1904_v41  ;;  %v4394_v33 = vld [vmem:[%s7346_s5 + $0x250] sm:$0xff]  ;;  %v2954_v56 = vld [vmem:[%s7346_s5 + $0x48] sm:$0xff] }
 0x1f8   : > { %v1997_v5 = vld [vmem:[#allocation3 + $0xe0] ss:$2 sm:$0xff]  ;;  %v2029_v7 = vld [vmem:[#allocation3 + $0xe1] ss:$2 sm:$0xff] }
 0x1f9   : > { %1968 = vst [vmem:[#allocation3 + $0xf8] sm:$0xff] %v1936_v43  ;;  %v2046_v32 = vmax.f32 %v1997_v5, %v2029_v7  ;;  %v4393_v41 = vld [vmem:[%s7346_s5 + $0x248] sm:$0xff]  ;;  %v2953_v43 = vld [vmem:[%s7346_s5 + $0x40] sm:$0xff]  ;;  %v2952_v7 = vld [vmem:[%s7346_s5 + $0x38] sm:$0xff] }
 0x1fa   : > { %v4392_v5 = vld [vmem:[%s7346_s5 + $0x240] sm:$0xff] }
 0x1fb   : > { %v2062_v30 = vmax.f32 %v2046_v32, 0.0  ;;  %v4391_v32 = vld [vmem:[%s7346_s5 + $0x238] sm:$0xff] }
 0x1fc   : > { %v2110_v25 = vld [vmem:[#allocation4 + $0x98] sm:$0xff] }
 0x1fd   : > { %v2603_v47 = vld [vmem:[#allocation4 + $0x92] sm:$0xff]  ;;  %2288 = vmatmul.mubr.f32.gmra.mxu1 %v2110_v25  ;;  %2094 = vst [vmem:[#allocation4 + $0xa9] sm:$0xff] %v2062_v30  ;;  %v2604_v36 = vld [vmem:[#allocation4 + $0x9a] sm:$0xff] }
 0x1fe   : > { %2777 = vmatmul.mubr.f32.gmra.mxu0 %v2603_v47  ;;  %2293 = vmatprep.mubr.f32.mxu1 %v7418_v20  ;;  %v4390_v25 = vld [vmem:[%s7346_s5 + $0x230] sm:$0xff]  ;;  %v2950_v47 = vld [vmem:[%s7346_s5 + $0x28] sm:$0xff] }
 0x1ff   : > { %2782 = vmatprep.mubr.f32.mxu0 %v7418_v20 }
 0x200   : > { %v1999_v18 = vld [vmem:[#allocation3 + $0xf0] ss:$2 sm:$0xff]  ;;  %v2031_v61 = vld [vmem:[#allocation3 + $0xf1] ss:$2 sm:$0xff] }
 0x201   : > { %v2047_v17 = vmax.f32 %v1999_v18, %v2031_v61  ;;  %v4389_v18 = vld [vmem:[%s7346_s5 + $0x228] sm:$0xff]  ;;  %v2949_v61 = vld [vmem:[%s7346_s5 + $0x20] sm:$0xff] }
 0x202   : > { %2783 = vmatmul.mubr.f32.gmra.mxu0 %v2604_v36  ;;  %v4388_v36 = vld [vmem:[%s7346_s5 + $0x220] sm:$0xff] }
 0x203   : > { %2788 = vmatprep.mubr.f32.mxu0 %v7418_v20  ;;  %v2063_v28 = vmax.f32 %v2047_v17, 0.0  ;;  %v2948_v17 = vld [vmem:[%s7346_s5 + $0x18] sm:$0xff] }
 0x204   : > { %v2111_v44 = vld [vmem:[#allocation4 + $0xa8] sm:$0xff] }
 0x205   : > { %2294 = vmatmul.mubr.f32.gmra.mxu1 %v2111_v44  ;;  %2095 = vst [vmem:[#allocation4 + $0xb1] sm:$0xff] %v2063_v28  ;;  %v2947_v44 = vld [vmem:[%s7346_s5 + $0x10] sm:$0xff] }
 0x206   : > { %2299 = vmatprep.mubr.f32.mxu1 %v7418_v20 }
 0x20c   : > { %v2112_v57 = vld [vmem:[#allocation4 + $0xb0] sm:$0xff] }
 0x20d   : > { %v2605_v35 = vld [vmem:[#allocation4 + $0xaa] sm:$0xff]  ;;  %2300 = vmatmul.mubr.f32.gmra.mxu1 %v2112_v57  ;;  %v2606_v21 = vld [vmem:[#allocation4 + $0xb2] sm:$0xff] }
 0x20e   : > { %2789 = vmatmul.mubr.f32.gmra.mxu0 %v2605_v35  ;;  %2462 = vmatprep.mubr.f32.mxu1 %v7418_v20  ;;  %v4386_v57 = vld [vmem:[%s7346_s5 + $0x210] sm:$0xff]  ;;  %v2946_v35 = vld [vmem:[%s7346_s5 + $0x8] sm:$0xff] }
 0x20f   : > { %2794 = vmatprep.mubr.f32.mxu0 %v7418_v20 }
 0x211   : > { %2463 = vmatmul.mubr.f32.vlgmr.msra.gmra.mxu1 %v2349_v16  ;;  %v4385_v16 = vld [vmem:[%s7346_s5 + $0x208] sm:$0xff] }
 0x212   : > { %2795 = vmatmul.mubr.f32.gmra.mxu0 %v2606_v21  ;;  %2468 = vmatprep.mubr.f32.mxu1 %v7418_v20  ;;  %v2945_v21 = vld [vmem:[%s7346_s5] sm:$0xff] }
 0x213   : > { %3392 = vmatprep.mubr.f32.mxu0 %v7418_v20 }
 0x215   : > { %2469 = vmatmul.mubr.f32.gmra.mxu1 %v5975_v1  ;;  %v2976_v1 = vld [vmem:[%s7346_s5 + $0xf8] sm:$0xff] }
 0x216   : > { %2474 = vmatprep.mubr.f32.mxu1 %v7418_v20  ;;  %2977 = vmatprep.subr.mxu1 %v2976_v1  ;;  %v4384_v1 = vld [vmem:[%s7346_s5 + $0x200] sm:$0xff] }
 0x219   : > { %2475 = vmatmul.mubr.f32.gmra.mxu1 %v6016_v37  ;;  %v2975_v37 = vld [vmem:[%s7346_s5 + $0xf0] sm:$0xff] }
 0x21a   : > { %2480 = vmatprep.mubr.f32.mxu1 %v7418_v20  ;;  %2978 = vmatpush1.msra.mxu1 %v2975_v37 }
 0x21d   : > { %2481 = vmatmul.mubr.f32.gmra.mxu1 %v6059_v13  ;;  %v4415_v13 = vld [vmem:[%s7346_s5 + $0x2f8] sm:$0xff] }
 0x21e   : > { %2486 = vmatprep.mubr.f32.mxu1 %v7418_v20  ;;  %3328 = vmatprep.subr.mxu0 %v4415_v13 }
 0x221   : > { %2487 = vmatmul.mubr.f32.gmra.mxu1 %v6100_v34  ;;  %v4414_v34 = vld [vmem:[%s7346_s5 + $0x2f0] sm:$0xff] }
 0x222   : > { %2492 = vmatprep.mubr.f32.mxu1 %v7418_v20  ;;  %3329 = vmatpush1.msra.mxu0 %v4414_v34 }
 0x225   : > { %2493 = vmatmul.mubr.f32.gmra.mxu1 %v6143_v0  ;;  %v2974_v0 = vld [vmem:[%s7346_s5 + $0xe8] sm:$0xff] }
 0x226   : > { %2498 = vmatprep.mubr.f32.mxu1 %v7418_v20  ;;  %2979 = vmatprep.subr.mxu1 %v2974_v0 }
 0x229   : > { %2499 = vmatmul.mubr.f32.gmra.mxu1 %v6172_v6  ;;  %v4413_v6 = vld [vmem:[%s7346_s5 + $0x2e8] sm:$0xff] }
 0x22a   : > { %2504 = vmatprep.mubr.f32.mxu1 %v7418_v20  ;;  %3330 = vmatprep.subr.mxu0 %v4413_v6 }
 0x22d   : > { %2505 = vmatmul.mubr.f32.gmra.mxu1 %v6194_v29  ;;  %v2973_v29 = vld [vmem:[%s7346_s5 + $0xe0] sm:$0xff] }
 0x22e   : > { %2510 = vmatprep.mubr.f32.mxu1 %v7418_v20  ;;  %2980 = vmatpush1.msra.mxu1 %v2973_v29 }
 0x231   : > { %2511 = vmatmul.mubr.f32.gmra.mxu1 %v6214_v50  ;;  %v4412_v50 = vld [vmem:[%s7346_s5 + $0x2e0] sm:$0xff] }
 0x232   : > { %2516 = vmatprep.mubr.f32.mxu1 %v7418_v20  ;;  %3331 = vmatpush1.msra.mxu0 %v4412_v50 }
 0x235   : > { %2517 = vmatmul.mubr.f32.gmra.mxu1 %v6236_v8  ;;  %v2972_v8 = vld [vmem:[%s7346_s5 + $0xd8] sm:$0xff] }
 0x236   : > { %2522 = vmatprep.mubr.f32.mxu1 %v7418_v20  ;;  %2981 = vmatprep.subr.mxu1 %v2972_v8 }
 0x239   : > { %2523 = vmatmul.mubr.f32.gmra.mxu1 %v6256_v46  ;;  %v4411_v46 = vld [vmem:[%s7346_s5 + $0x2d8] sm:$0xff] }
 0x23a   : > { %2528 = vmatprep.mubr.f32.mxu1 %v7418_v20  ;;  %3332 = vmatprep.subr.mxu0 %v4411_v46 }
 0x23b   : > { %3333 = vmatpush1.msra.mxu0 %v4410_v19 }
 0x23c   : > { %3334 = vmatprep.subr.mxu0 %v4409_v54 }
 0x23d   : > { %2529 = vmatmul.mubr.f32.gmra.mxu1 %v6274_v14  ;;  %v2971_v14 = vld [vmem:[%s7346_s5 + $0xd0] sm:$0xff]  ;;  %3335 = vmatpush1.msra.mxu0 %v4408_v9 }
 0x23e   : > { %2534 = vmatprep.mubr.f32.mxu1 %v7418_v20  ;;  %2982 = vmatpush1.msra.mxu1 %v2971_v14  ;;  %v4383_v14 = vld [vmem:[%s7346_s5 + $0x1f8] sm:$0xff] }
 0x23f   : > { %2983 = vmatprep.subr.mxu1 %v2970_v39  ;;  %3336 = vmatprep.subr.mxu0 %v4407_v53 }
 0x240   : > { %3337 = vmatpush1.msra.mxu0 %v4406_v55 }
 0x241   : > { %2535 = vmatmul.mubr.f32.gmra.mxu1 %v6288_v48  ;;  %v2969_v48 = vld [vmem:[%s7346_s5 + $0xc0] sm:$0xff]  ;;  %3338 = vmatprep.subr.mxu0 %v4405_v38 }
 0x242   : > { %2540 = vmatprep.mubr.f32.mxu1 %v7418_v20  ;;  %2984 = vmatpush1.msra.mxu1 %v2969_v48 }
 0x243   : > { %2985 = vmatprep.subr.mxu1 %v2968_v11  ;;  %3339 = vmatpush1.msra.mxu0 %v4404_v45 }
 0x244   : > { %2986 = vmatpush1.msra.mxu1 %v2967_v51  ;;  %3340 = vmatprep.subr.mxu0 %v4403_v40 }
 0x245   : > { %2541 = vmatmul.mubr.f32.gmra.mxu1 %v6298_v23  ;;  %2987 = vmatprep.subr.mxu1 %v2966_v52  ;;  %v4395_v23 = vld [vmem:[%s7346_s5 + $0x258] sm:$0xff] }
 0x246   : > { %2546 = vmatprep.mubr.f32.mxu1 %v7418_v20  ;;  %2988 = vmatpush1.msra.mxu1 %v2965_v59 }
 0x247   : > { %2989 = vmatprep.subr.mxu1 %v2964_v58  ;;  %3341 = vmatpush1.msra.mxu0 %v4402_v15 }
 0x248   : > { %2990 = vmatpush1.msra.mxu1 %v2963_v10  ;;  %3342 = vmatprep.subr.mxu0 %v4401_v12 }
 0x249   : > { %2547 = vmatmul.mubr.f32.gmra.mxu1 %v2062_v30  ;;  %2991 = vmatprep.subr.mxu1 %v2962_v62  ;;  %v2951_v30 = vld [vmem:[%s7346_s5 + $0x30] sm:$0xff] }
 0x24a   : > { %2552 = vmatprep.mubr.f32.mxu1 %v7418_v20  ;;  %2992 = vmatpush1.msra.mxu1 %v2961_v60 }
 0x24b   : > { %3343 = vmatpush1.msra.mxu0 %v4400_v3  ;;  %2993 = vmatprep.subr.mxu1 %v2960_v26 }
 0x24c   : > { %3344 = vmatprep.subr.mxu0 %v4399_v2  ;;  %2994 = vmatpush1.msra.mxu1 %v2959_v24 }
 0x24d   : > { %2553 = vmatmul.mubr.f32.gmra.mxu1 %v2063_v28  ;;  %3345 = vmatpush1.msra.mxu0 %v4398_v27  ;;  %v4387_v28 = vld [vmem:[%s7346_s5 + $0x218] sm:$0xff] }
 0x24e   : > { %3041 = vmatprep.mubr.f32.mxu1 %v7418_v20  ;;  %2995 = vmatprep.subr.mxu1 %v2958_v31 }
 0x24f   : > { %3346 = vmatprep.subr.mxu0 %v4397_v63  ;;  %2996 = vmatpush1.msra.mxu1 %v2957_v4 }
 0x250   : > { %3347 = vmatpush1.msra.mxu0 %v4396_v49  ;;  %2997 = vmatprep.subr.mxu1 %v2956_v22 }
 0x251   : > { %3348 = vmatprep.subr.mxu0 %v4395_v23  ;;  %2998 = vmatpush1.msra.mxu1 %v2955_v42  ;;  %v2096_v42 = vld [vmem:[%s7345_s4] sm:$0x3] }
 0x252   : > { %3349 = vmatpush1.msra.mxu0 %v4394_v33  ;;  %2999 = vmatprep.subr.mxu1 %v2954_v56 }
 0x253   : > { %3350 = vmatprep.subr.mxu0 %v4393_v41  ;;  %3000 = vmatpush1.msra.mxu1 %v2953_v43  ;;  %v7467_v41 = vld [vmem:[#allocation52_spill] sm:$0xff] }
 0x254   : > { %3351 = vmatpush1.msra.mxu0 %v4392_v5  ;;  %3001 = vmatprep.subr.mxu1 %v2952_v7  ;;  %v6598_v43 = vrot.slane %v2096_v42, %v7467_v41 }
 0x255   : > { %3352 = vmatprep.subr.mxu0 %v4391_v32  ;;  %3002 = vmatpush1.msra.mxu1 %v2951_v30  ;;  %v2211_v37 = vpop.f32.mrf.mxu1  ;;  %v7469_v32 = vld [vmem:[#allocation53_spill] sm:$0xff] }
 0x256   : > { %3353 = vmatpush1.msra.mxu0 %v4390_v25  ;;  %3003 = vmatprep.subr.mxu1 %v2950_v47  ;;  %v6605_v30 = vrot.slane %v2096_v42, %v7469_v32  ;;  %v2317_v47 = vadd.f32 %v6598_v43, %v2211_v37 }
 0x257   : > { %3354 = vmatprep.subr.mxu0 %v4389_v18  ;;  %3004 = vmatpush1.msra.mxu1 %v2949_v61  ;;  %v2213_v13 = vpop.f32.mrf.mxu1 }
 0x258   : > { %3355 = vmatpush1.msra.mxu0 %v4388_v36  ;;  %3005 = vmatprep.subr.mxu1 %v2948_v17  ;;  %v2318_v36 = vadd.f32 %v6605_v30, %v2213_v13 }
 0x259   : > { %3356 = vmatprep.subr.mxu0 %v4387_v28  ;;  %3006 = vmatpush1.msra.mxu1 %v2947_v44 }
 0x25a   : > { %3357 = vmatpush1.msra.mxu0 %v4386_v57  ;;  %3007 = vmatprep.subr.mxu1 %v2946_v35 }
 0x25b   : > { %3358 = vmatprep.subr.mxu0 %v4385_v16  ;;  %3008 = vmatpush1.msra.mxu1 %v2945_v21 }
 0x25c   : > { %3359 = vmatpush1.msra.mxu0 %v4384_v1  ;;  %3158 = vmatprep.subr.mxu1 %v4383_v14 }
 0x25d   : > { %4591 = vmatprep.subr.mxu0 %v7418_v20  ;;  %v2217_v34 = vpop.f32.mrf.mxu1 }
 0x25e   : > { %v2706_v51 = vpop.f32.mrf.mxu0  ;;  %v2319_v44 = vadd.f32 %v6598_v43, %v2217_v34 }
 0x25f   : > { %v2219_v0 = vpop.f32.mrf.mxu1 }
 0x260   : > { %v2708_v52 = vpop.f32.mrf.mxu0  ;;  %v2320_v21 = vadd.f32 %v6605_v30, %v2219_v0 }
 0x262   : > { %v2712_v45 = vpop.f32.mrf.mxu0 }
 0x264   : > { %v2714_v40 = vpop.f32.mrf.mxu0 }
 0x265   : > { %v2223_v6 = vpop.f32.mrf.mxu1 }
 0x266   : > { %v2321_v37 = vadd.f32 %v6598_v43, %v2223_v6 }
 0x267   : > { %v6531_v29 = vpop.f32.mrf.mxu1 }
 0x268   : > { %v2322_v34 = vadd.f32 %v6605_v30, %v6531_v29 }
 0x26d   : > { %v6533_v50 = vpop.f32.mrf.mxu1 }
 0x26e   : > { %v2718_v15 = vpop.f32.mrf.mxu0 }
 0x26f   : > { %v6535_v8 = vpop.f32.mrf.mxu1 }
 0x270   : > { %v2720_v12 = vpop.f32.mrf.mxu0 }
 0x272   : > { %v6570_v3 = vpop.f32.mrf.mxu0 }
 0x274   : > { %v2726_v24 = vpop.f32.mrf.mxu0 }
 0x275   : > { %v6537_v46 = vpop.f32.mrf.mxu1 }
 0x277   : > { %v6542_v19 = vpop.f32.mrf.mxu1 }
 0x27d   : > { %v6544_v39 = vpop.f32.mrf.mxu1 }
 0x27e   : > { %v6576_v27 = vpop.f32.mrf.mxu0 }
 0x27f   : > { %v6546_v54 = vpop.f32.mrf.mxu1 }
 0x280   : > { %v6582_v4 = vpop.f32.mrf.mxu0 }
 0x282   : > { %v6586_v22 = vpop.f32.mrf.mxu0 }
 0x284   : > { %v6593_v33 = vpop.f32.mrf.mxu0 }
 0x285   : > { %v6548_v48 = vpop.f32.mrf.mxu1 }
 0x287   : > { %v6550_v9 = vpop.f32.mrf.mxu1 }
 0x28d   : > { %v6552_v11 = vpop.f32.mrf.mxu1 }
 0x28e   : > { %v6600_v5 = vpop.f32.mrf.mxu0 }
 0x28f   : > { %v6554_v53 = vpop.f32.mrf.mxu1 }
 0x290   : > { %v6610_v18 = vpop.f32.mrf.mxu0 }
 0x292   : > { %v6614_v35 = vpop.f32.mrf.mxu0 }
 0x295   : > { %v6556_v55 = vpop.f32.mrf.mxu1 }
 0x297   : > { %v6558_v38 = vpop.f32.mrf.mxu1 }
 0x29d   : > { %v6560_v59 = vpop.f32.mrf.mxu1 }
 0x29f   : > { %v6562_v58 = vpop.f32.mrf.mxu1 }
 0x2a5   : > { %v6564_v10 = vpop.f32.mrf.mxu1 }
 0x2a7   : > { %v6566_v62 = vpop.f32.mrf.mxu1 }
 0x2ad   : > { %v6568_v60 = vpop.f32.mrf.mxu1 }
 0x2af   : > { %v6572_v26 = vpop.f32.mrf.mxu1 }
 0x2b5   : > { %v6574_v2 = vpop.f32.mrf.mxu1 }
 0x2b7   : > { %v6578_v31 = vpop.f32.mrf.mxu1 }
 0x2bd   : > { %v6580_v63 = vpop.f32.mrf.mxu1 }
 0x2bf   : > { %v6584_v49 = vpop.f32.mrf.mxu1 }
 0x2c5   : > { %v6588_v23 = vpop.f32.mrf.mxu1 }
 0x2c7   : > { %v6595_v56 = vpop.f32.mrf.mxu1 }
 0x2cd   : > { %v6602_v7 = vpop.f32.mrf.mxu1 }
 0x2ce   : > { %7468 = vst [vmem:[#allocation13_spill] sm:$0xff] %v6602_v7  ;;  %v6618_v7 = vpop.f32.mrf.mxu0 }
 0x2cf   : > { %v6607_v25 = vpop.f32.mrf.mxu1 }
 0x2d0   : > { %7470 = vst [vmem:[#allocation34_spill] sm:$0xff] %v6607_v25 }
 0x2d1   : > { %v2464_v61 = vpop.f32.mrf.mxu1 }
 0x2d2   : > { %v2559_v17 = vadd.f32 %v2464_v61, %v2317_v47 }
 0x2d3   : > { %v2466_v28 = vpop.f32.mrf.mxu1 }
 0x2d4   : > { %v2560_v57 = vadd.f32 %v2466_v28, %v2318_v36  ;;  %v2801_v1 = vadd.f32 %v2706_v51, %v2559_v17  ;;  %v6622_v28 = vpop.f32.mrf.mxu0  ;;  %v2323_v51 = vadd.f32 %v6598_v43, %v6533_v50  ;;  %v2326_v50 = vadd.f32 %v6605_v30, %v6542_v19 }
 0x2d5   : > { %v2470_v16 = vpop.f32.mrf.mxu1 }
 0x2d6   : > { %v2802_v14 = vadd.f32 %v2708_v52, %v2560_v57  ;;  %v2561_v42 = vadd.f32 %v2470_v16, %v2319_v44 }
 0x2d7   : > { %v2472_v32 = vpop.f32.mrf.mxu1 }
 0x2d8   : > { %v2833_v41 = vmax.f32 %v2801_v1, %v2802_v14  ;;  %v2562_v25 = vadd.f32 %v2472_v32, %v2320_v21  ;;  %v2803_v47 = vadd.f32 %v2712_v45, %v2561_v42  ;;  %v2324_v32 = vadd.f32 %v6605_v30, %v6535_v8 }
 0x2d9   : > { %v2476_v13 = vpop.f32.mrf.mxu1  ;;  %v2327_v42 = vadd.f32 %v6598_v43, %v6544_v39  ;;  %v2329_v39 = vadd.f32 %v6598_v43, %v6548_v48  ;;  %v2331_v48 = vadd.f32 %v6598_v43, %v6552_v11  ;;  %v2333_v11 = vadd.f32 %v6598_v43, %v6556_v55 }
 0x2da   : > { %2849 = vst [vmem:[#allocation5] sm:$0xff] %v2833_v41  ;;  %v2804_v61 = vadd.f32 %v2714_v40, %v2562_v25  ;;  %v2563_v36 = vadd.f32 %v2476_v13, %v2321_v37  ;;  %v6628_v41 = vpop.f32.mrf.mxu0  ;;  %v2325_v40 = vadd.f32 %v6598_v43, %v6537_v46  ;;  %v2328_v46 = vadd.f32 %v6605_v30, %v6546_v54 }
 0x2db   : > { %v2478_v0 = vpop.f32.mrf.mxu1 }
 0x2dc   : > { %v2834_v52 = vmax.f32 %v2803_v47, %v2804_v61  ;;  %v2564_v6 = vadd.f32 %v2478_v0, %v2322_v34  ;;  %v2805_v44 = vadd.f32 %v2718_v15, %v2563_v36  ;;  %v6635_v15 = vpop.f32.mrf.mxu0 }
 0x2dd   : > { %v2482_v17 = vpop.f32.mrf.mxu1 }
 0x2de   : > { %2850 = vst [vmem:[#allocation5 + $0x8] sm:$0xff] %v2834_v52  ;;  %v2806_v57 = vadd.f32 %v2720_v12, %v2564_v6  ;;  %v2565_v29 = vadd.f32 %v2482_v17, %v2323_v51  ;;  %v6643_v0 = vpop.f32.mrf.mxu0 }
 0x2df   : > { %v2484_v45 = vpop.f32.mrf.mxu1 }
 0x2e0   : > { %v2835_v25 = vmax.f32 %v2805_v44, %v2806_v57  ;;  %v2566_v16 = vadd.f32 %v2484_v45, %v2324_v32  ;;  %v2807_v1 = vadd.f32 %v6570_v3, %v2565_v29  ;;  %v6649_v17 = vpop.f32.mrf.mxu0  ;;  %v2330_v44 = vadd.f32 %v6605_v30, %v6550_v9 }
 0x2e1   : > { %v2488_v21 = vpop.f32.mrf.mxu1 }
 0x2e2   : > { %2851 = vst [vmem:[#allocation5 + $0x10] sm:$0xff] %v2835_v25  ;;  %v2808_v8 = vadd.f32 %v2726_v24, %v2566_v16  ;;  %v2567_v14 = vadd.f32 %v2488_v21, %v2325_v40  ;;  %v2332_v25 = vadd.f32 %v6605_v30, %v6554_v53  ;;  %v6660_v16 = vpop.f32.mrf.mxu0  ;;  %v2334_v53 = vadd.f32 %v6605_v30, %v6558_v38  ;;  %v4381_v38 = vld [vmem:[%s7346_s5 + $0x1e8] sm:$0xff] }
 0x2e3   : > { %v2490_v12 = vpop.f32.mrf.mxu1 }
 0x2e4   : > { %v2836_v37 = vmax.f32 %v2807_v1, %v2808_v8  ;;  %v2568_v13 = vadd.f32 %v2490_v12, %v2326_v50  ;;  %v2809_v3 = vadd.f32 %v6576_v27, %v2567_v14 }
 0x2e5   : > { %v2865_v34 = vld [vmem:[#allocation5] ss:$2 sm:$0xff]  ;;  %v2881_v47 = vld [vmem:[#allocation5 + $0x1] ss:$2 sm:$0xff]  ;;  %v2494_v61 = vpop.f32.mrf.mxu1 }
 0x2e6   : > { %v2896_v19 = vmax.f32 %v2865_v34, %v2881_v47  ;;  %2852 = vst [vmem:[#allocation5 + $0x18] sm:$0xff] %v2836_v37  ;;  %v2810_v24 = vadd.f32 %v6582_v4, %v2568_v13  ;;  %v2569_v36 = vadd.f32 %v2494_v61, %v2327_v42  ;;  %v6670_v13 = vpop.f32.mrf.mxu0 }
 0x2e7   : > { %v2496_v51 = vpop.f32.mrf.mxu1 }
 0x2e8   : > { %v6647_v52 = vmax.f32 %v2896_v19, 0.0  ;;  %v2837_v6 = vmax.f32 %v2809_v3, %v2810_v24  ;;  %v2570_v54 = vadd.f32 %v2496_v51, %v2328_v46  ;;  %v2811_v27 = vadd.f32 %v6586_v22, %v2569_v36  ;;  %v4379_v36 = vld [vmem:[%s7346_s5 + $0x1d8] sm:$0xff] }
 0x2e9   : > { %v2500_v32 = vpop.f32.mrf.mxu1  ;;  %v2336_v51 = vadd.f32 %v6605_v30, %v6562_v58  ;;  %v4377_v58 = vld [vmem:[%s7346_s5 + $0x1c8] sm:$0xff] }
 0x2ea   : > { %2928 = vst [vmem:[#allocation6 + $0x1] sm:$0xff] %v6647_v52  ;;  %2853 = vst [vmem:[#allocation5 + $0x20] sm:$0xff] %v2837_v6  ;;  %v2812_v4 = vadd.f32 %v6593_v33, %v2570_v54  ;;  %v2571_v57 = vadd.f32 %v2500_v32, %v2329_v39  ;;  %v6693_v39 = vpop.f32.mrf.mxu0 }
 0x2eb   : > { %v2502_v29 = vpop.f32.mrf.mxu1 }
 0x2ec   : > { %v2838_v45 = vmax.f32 %v2811_v27, %v2812_v4  ;;  %v2572_v40 = vadd.f32 %v2502_v29, %v2330_v44  ;;  %v2813_v22 = vadd.f32 %v6600_v5, %v2571_v57  ;;  %v6703_v29 = vpop.f32.mrf.mxu0 }
 0x2ed   : > { %v2867_v9 = vld [vmem:[#allocation5 + $0x10] ss:$2 sm:$0xff]  ;;  %v2883_v21 = vld [vmem:[#allocation5 + $0x11] ss:$2 sm:$0xff]  ;;  %v2506_v50 = vpop.f32.mrf.mxu1 }
 0x2ee   : > { %2854 = vst [vmem:[#allocation5 + $0x28] sm:$0xff] %v2838_v45  ;;  %v2814_v33 = vadd.f32 %v6610_v18, %v2572_v40  ;;  %v2573_v1 = vadd.f32 %v2506_v50, %v2331_v48  ;;  %v2897_v8 = vmax.f32 %v2867_v9, %v2883_v21  ;;  %v4382_v18 = vld [vmem:[%s7346_s5 + $0x1f0] sm:$0xff]  ;;  %v2337_v45 = vadd.f32 %v6598_v43, %v6564_v10 }
 0x2ef   : > { %v2508_v14 = vpop.f32.mrf.mxu1 }
 0x2f0   : > { %v2839_v12 = vmax.f32 %v2813_v22, %v2814_v33  ;;  %v2574_v42 = vadd.f32 %v2508_v14, %v2332_v25  ;;  %v6666_v37 = vmax.f32 %v2897_v8, 0.0  ;;  %v2815_v47 = vadd.f32 %v6614_v35, %v2573_v1  ;;  %v4380_v35 = vld [vmem:[%s7346_s5 + $0x1e0] sm:$0xff]  ;;  %v6720_v8 = vpop.f32.mrf.mxu0 }
 0x2f1   : > { %v2512_v46 = vpop.f32.mrf.mxu1  ;;  %v2937_v34 = vld [vmem:[#allocation6] sm:$0xff] }
 0x2f2   : > { %v3287_v5 = vld [vmem:[#allocation6 + $0x2] sm:$0xff]  ;;  %2855 = vst [vmem:[#allocation5 + $0x30] sm:$0xff] %v2839_v12  ;;  %v2816_v55 = vadd.f32 %v6618_v7, %v2574_v42  ;;  %v2575_v61 = vadd.f32 %v2512_v46, %v2333_v11  ;;  %3042 = vmatmul.mubr.f32.vlgmr.msra.gmra.mxu1 %v2937_v34  ;;  %2929 = vst [vmem:[#allocation6 + $0x11] sm:$0xff] %v6666_v37  ;;  %v2335_v7 = vadd.f32 %v6598_v43, %v6560_v59  ;;  %v4378_v59 = vld [vmem:[%s7346_s5 + $0x1d0] sm:$0xff] }
 0x2f3   : > { %3393 = vmatmul.mubr.f32.vlgmr.msra.gmra.mxu0 %v3287_v5  ;;  %v2514_v19 = vpop.f32.mrf.mxu1  ;;  %3047 = vmatprep.mubr.f32.mxu1 %v7418_v20  ;;  %v4376_v22 = vld [vmem:[%s7346_s5 + $0x1c0] sm:$0xff]  ;;  %v4373_v42 = vld [vmem:[%s7346_s5 + $0x1a8] sm:$0xff] }
 0x2f4   : > { %3398 = vmatprep.mubr.f32.mxu0 %v7418_v20  ;;  %v2840_v3 = vmax.f32 %v2815_v47, %v2816_v55  ;;  %v2576_v24 = vadd.f32 %v2514_v19, %v2334_v53  ;;  %3159 = vmatpush1.msra.mxu1 %v4382_v18  ;;  %v2817_v44 = vadd.f32 %v6622_v28, %v2575_v61  ;;  %v4372_v18 = vld [vmem:[%s7346_s5 + $0x1a0] sm:$0xff] }
 0x2f5   : > { %v2869_v6 = vld [vmem:[#allocation5 + $0x20] ss:$2 sm:$0xff]  ;;  %v2885_v54 = vld [vmem:[#allocation5 + $0x21] ss:$2 sm:$0xff]  ;;  %v2518_v32 = vpop.f32.mrf.mxu1  ;;  %3160 = vmatprep.subr.mxu1 %v4381_v38  ;;  %v2338_v28 = vadd.f32 %v6605_v30, %v6566_v62  ;;  %v4375_v62 = vld [vmem:[%s7346_s5 + $0x1b8] sm:$0xff]  ;;  %v2340_v53 = vadd.f32 %v6605_v30, %v6572_v26  ;;  %v2784_v38 = vpop.f32.mrf.mxu0 }
 0x2f6   : > { %2856 = vst [vmem:[#allocation5 + $0x38] sm:$0xff] %v2840_v3  ;;  %v2818_v27 = vadd.f32 %v6628_v41, %v2576_v24  ;;  %v2577_v4 = vadd.f32 %v2518_v32, %v2335_v7  ;;  %v2898_v57 = vmax.f32 %v2869_v6, %v2885_v54  ;;  %3161 = vmatpush1.msra.mxu1 %v4380_v35  ;;  %v4371_v26 = vld [vmem:[%s7346_s5 + $0x198] sm:$0xff]  ;;  %v4370_v6 = vld [vmem:[%s7346_s5 + $0x190] sm:$0xff] }
 0x2f7   : > { %v2520_v48 = vpop.f32.mrf.mxu1  ;;  %3162 = vmatprep.subr.mxu1 %v4379_v36  ;;  %v2341_v35 = vadd.f32 %v6598_v43, %v6574_v2 }
 0x2f8   : > { %v2841_v40 = vmax.f32 %v2817_v44, %v2818_v27  ;;  %v2578_v25 = vadd.f32 %v2520_v48, %v2336_v51  ;;  %v6707_v9 = vmax.f32 %v2898_v57, 0.0  ;;  %3163 = vmatpush1.msra.mxu1 %v4378_v59  ;;  %v2819_v33 = vadd.f32 %v6635_v15, %v2577_v4  ;;  %v4374_v15 = vld [vmem:[%s7346_s5 + $0x1b0] sm:$0xff]  ;;  %v2786_v59 = vpop.f32.mrf.mxu0  ;;  %v4367_v57 = vld [vmem:[%s7346_s5 + $0x178] sm:$0xff] }
 0x2f9   : > { %v2524_v41 = vpop.f32.mrf.mxu1  ;;  %v2938_v21 = vld [vmem:[#allocation6 + $0x10] sm:$0xff]  ;;  %3164 = vmatprep.subr.mxu1 %v4377_v58  ;;  %v2344_v58 = vadd.f32 %v6605_v30, %v6584_v49  ;;  %v4365_v49 = vld [vmem:[%s7346_s5 + $0x168] sm:$0xff] }
 0x2fa   : > { %v3288_v50 = vld [vmem:[#allocation6 + $0x12] sm:$0xff]  ;;  %2857 = vst [vmem:[#allocation5 + $0x40] sm:$0xff] %v2841_v40  ;;  %v2820_v10 = vadd.f32 %v6643_v0, %v2578_v25  ;;  %v2579_v1 = vadd.f32 %v2524_v41, %v2337_v45  ;;  %3048 = vmatmul.mubr.f32.gmra.mxu1 %v2938_v21  ;;  %2930 = vst [vmem:[#allocation6 + $0x21] sm:$0xff] %v6707_v9  ;;  %v2339_v0 = vadd.f32 %v6598_v43, %v6568_v60  ;;  %v2790_v48 = vpop.f32.mrf.mxu0 }
 0x2fb   : > { %3399 = vmatmul.mubr.f32.gmra.mxu0 %v3288_v50  ;;  %v2526_v14 = vpop.f32.mrf.mxu1  ;;  %3053 = vmatprep.mubr.f32.mxu1 %v7418_v20 }
 0x2fc   : > { %3404 = vmatprep.mubr.f32.mxu0 %v7418_v20  ;;  %v2842_v11 = vmax.f32 %v2819_v33, %v2820_v10  ;;  %v2580_v12 = vadd.f32 %v2526_v14, %v2338_v28  ;;  %3165 = vmatpush1.msra.mxu1 %v4376_v22  ;;  %v2821_v60 = vadd.f32 %v6649_v17, %v2579_v1  ;;  %v4366_v28 = vld [vmem:[%s7346_s5 + $0x170] sm:$0xff] }
 0x2fd   : > { %v2871_v46 = vld [vmem:[#allocation5 + $0x30] ss:$2 sm:$0xff]  ;;  %v2887_v34 = vld [vmem:[#allocation5 + $0x31] ss:$2 sm:$0xff]  ;;  %v2530_v5 = vpop.f32.mrf.mxu1  ;;  %3166 = vmatprep.subr.mxu1 %v4375_v62  ;;  %v2342_v17 = vadd.f32 %v6605_v30, %v6578_v31  ;;  %v4369_v31 = vld [vmem:[%s7346_s5 + $0x188] sm:$0xff]  ;;  %v2345_v33 = vadd.f32 %v6598_v43, %v6588_v23 }
 0x2fe   : > { %2858 = vst [vmem:[#allocation5 + $0x48] sm:$0xff] %v2842_v11  ;;  %v2822_v47 = vadd.f32 %v6660_v16, %v2580_v12  ;;  %v2581_v55 = vadd.f32 %v2530_v5, %v2339_v0  ;;  %v2899_v61 = vmax.f32 %v2871_v46, %v2887_v34  ;;  %3167 = vmatpush1.msra.mxu1 %v4374_v15  ;;  %v4364_v11 = vld [vmem:[%s7346_s5 + $0x160] sm:$0xff]  ;;  %v4362_v46 = vld [vmem:[%s7346_s5 + $0x150] sm:$0xff] }
 0x2ff   : > { %v2532_v19 = vpop.f32.mrf.mxu1  ;;  %3168 = vmatprep.subr.mxu1 %v4373_v42  ;;  %v7471_v34 = vld [vmem:[#allocation13_spill] sm:$0xff] }
 0x300   : > { %v2843_v7 = vmax.f32 %v2821_v60, %v2822_v47  ;;  %v2582_v3 = vadd.f32 %v2532_v19, %v2340_v53  ;;  %v6744_v24 = vmax.f32 %v2899_v61, 0.0  ;;  %3169 = vmatpush1.msra.mxu1 %v4372_v18  ;;  %v2823_v54 = vadd.f32 %v6670_v13, %v2581_v55  ;;  %v4368_v13 = vld [vmem:[%s7346_s5 + $0x180] sm:$0xff]  ;;  %v4361_v47 = vld [vmem:[%s7346_s5 + $0x148] sm:$0xff]  ;;  %v7472_v55 = vld [vmem:[#allocation34_spill] sm:$0xff] }
 0x301   : > { %v2536_v16 = vpop.f32.mrf.mxu1  ;;  %v2939_v36 = vld [vmem:[#allocation6 + $0x20] sm:$0xff]  ;;  %3170 = vmatprep.subr.mxu1 %v4371_v26  ;;  %v2347_v5 = vadd.f32 %v6598_v43, %v7471_v34  ;;  %v2348_v61 = vadd.f32 %v6605_v30, %v7472_v55  ;;  %v3526_v55 = vld [vmem:[%s7348_s7 + $0x28] sm:$0xff] }
 0x302   : > { %v3289_v51 = vld [vmem:[#allocation6 + $0x22] sm:$0xff]  ;;  %2859 = vst [vmem:[#allocation5 + $0x50] sm:$0xff] %v2843_v7  ;;  %v2824_v2 = vadd.f32 %v6693_v39, %v2582_v3  ;;  %v2583_v32 = vadd.f32 %v2536_v16, %v2341_v35  ;;  %3054 = vmatmul.mubr.f32.gmra.mxu1 %v2939_v36  ;;  %2931 = vst [vmem:[#allocation6 + $0x31] sm:$0xff] %v6744_v24  ;;  %v2343_v39 = vadd.f32 %v6598_v43, %v6580_v63  ;;  %v4359_v36 = vld [vmem:[%s7346_s5 + $0x138] sm:$0xff] }
 0x303   : > { %3405 = vmatmul.mubr.f32.gmra.mxu0 %v3289_v51  ;;  %v2538_v44 = vpop.f32.mrf.mxu1  ;;  %3059 = vmatprep.mubr.f32.mxu1 %v7418_v20  ;;  %v4360_v7 = vld [vmem:[%s7346_s5 + $0x140] sm:$0xff] }
 0x304   : > { %3410 = vmatprep.mubr.f32.mxu0 %v7418_v20  ;;  %v2844_v27 = vmax.f32 %v2823_v54, %v2824_v2  ;;  %v2584_v4 = vadd.f32 %v2538_v44, %v2342_v17  ;;  %3171 = vmatpush1.msra.mxu1 %v4370_v6  ;;  %v2825_v63 = vadd.f32 %v6703_v29, %v2583_v32  ;;  %v4425_v34 = vld [vmem:[%s7348_s7 + $0xc0] sm:$0xff] }
 0x305   : > { %v2873_v45 = vld [vmem:[#allocation5 + $0x40] ss:$2 sm:$0xff]  ;;  %v2889_v40 = vld [vmem:[#allocation5 + $0x41] ss:$2 sm:$0xff]  ;;  %v2542_v25 = vpop.f32.mrf.mxu1  ;;  %3172 = vmatprep.subr.mxu1 %v4369_v31  ;;  %v2346_v29 = vadd.f32 %v6605_v30, %v6595_v56  ;;  %v4363_v56 = vld [vmem:[%s7346_s5 + $0x158] sm:$0xff] }
 0x306   : > { %2860 = vst [vmem:[#allocation5 + $0x58] sm:$0xff] %v2844_v27  ;;  %v2826_v41 = vadd.f32 %v6720_v8, %v2584_v4  ;;  %v2585_v21 = vadd.f32 %v2542_v25, %v2343_v39  ;;  %v2900_v50 = vmax.f32 %v2873_v45, %v2889_v40  ;;  %3173 = vmatpush1.msra.mxu1 %v4368_v13  ;;  %v2792_v8 = vpop.f32.mrf.mxu0  ;;  %v4357_v39 = vld [vmem:[%s7346_s5 + $0x128] sm:$0xff]  ;;  %v4356_v27 = vld [vmem:[%s7346_s5 + $0x120] sm:$0xff]  ;;  %v4354_v45 = vld [vmem:[%s7346_s5 + $0x110] sm:$0xff] }
 0x307   : > { %v2544_v22 = vpop.f32.mrf.mxu1  ;;  %3174 = vmatprep.subr.mxu1 %v4367_v57  ;;  %v4355_v57 = vld [vmem:[%s7346_s5 + $0x118] sm:$0xff]  ;;  %v4353_v25 = vld [vmem:[%s7346_s5 + $0x108] sm:$0xff] }
 0x308   : > { %v2845_v10 = vmax.f32 %v2825_v63, %v2826_v41  ;;  %v2586_v1 = vadd.f32 %v2544_v22, %v2344_v58  ;;  %v6779_v62 = vmax.f32 %v2900_v50, 0.0  ;;  %3175 = vmatpush1.msra.mxu1 %v4366_v28  ;;  %v2827_v12 = vadd.f32 %v2784_v38, %v2585_v21  ;;  %v2796_v26 = vpop.f32.mrf.mxu0  ;;  %v4352_v21 = vld [vmem:[%s7346_s5 + $0x100] sm:$0xff] }
 0x309   : > { %v2548_v14 = vpop.f32.mrf.mxu1  ;;  %v2940_v15 = vld [vmem:[#allocation6 + $0x30] sm:$0xff]  ;;  %3176 = vmatprep.subr.mxu1 %v4365_v49 }
 0x30a   : > { %v3290_v0 = vld [vmem:[#allocation6 + $0x32] sm:$0xff]  ;;  %2861 = vst [vmem:[#allocation5 + $0x60] sm:$0xff] %v2845_v10  ;;  %v2828_v23 = vadd.f32 %v2786_v59, %v2586_v1  ;;  %v2587_v42 = vadd.f32 %v2548_v14, %v2345_v33  ;;  %3060 = vmatmul.mubr.f32.gmra.mxu1 %v2940_v15  ;;  %2932 = vst [vmem:[#allocation6 + $0x41] sm:$0xff] %v6779_v62  ;;  %v2798_v2 = vpop.f32.mrf.mxu0  ;;  %v4430_v14 = vld [vmem:[%s7348_s7 + $0xe8] sm:$0xff] }
 0x30b   : > { %3411 = vmatmul.mubr.f32.gmra.mxu0 %v3290_v0  ;;  %v2550_v53 = vpop.f32.mrf.mxu1  ;;  %3065 = vmatprep.mubr.f32.mxu1 %v7418_v20  ;;  %v4358_v59 = vld [vmem:[%s7346_s5 + $0x130] sm:$0xff]  ;;  %v3533_v15 = vld [vmem:[%s7348_s7 + $0x60] sm:$0xff] }
 0x30c   : > { %3416 = vmatprep.mubr.f32.mxu0 %v7418_v20  ;;  %v2846_v18 = vmax.f32 %v2827_v12, %v2828_v23  ;;  %v2588_v60 = vadd.f32 %v2550_v53, %v2346_v29  ;;  %3177 = vmatpush1.msra.mxu1 %v4364_v11  ;;  %v2829_v43 = vadd.f32 %v2790_v48, %v2587_v42  ;;  %v4429_v0 = vld [vmem:[%s7348_s7 + $0xe0] sm:$0xff]  ;;  %v3532_v11 = vld [vmem:[%s7348_s7 + $0x58] sm:$0xff]  ;;  %v3531_v23 = vld [vmem:[%s7348_s7 + $0x50] sm:$0xff] }
 0x30d   : > { %v2875_v38 = vld [vmem:[#allocation5 + $0x50] ss:$2 sm:$0xff]  ;;  %v2891_v19 = vld [vmem:[#allocation5 + $0x51] ss:$2 sm:$0xff]  ;;  %v2554_v35 = vpop.f32.mrf.mxu1  ;;  %3178 = vmatprep.subr.mxu1 %v4363_v56  ;;  %v3530_v56 = vld [vmem:[%s7348_s7 + $0x48] sm:$0xff] }
 0x30e   : > { %2862 = vst [vmem:[#allocation5 + $0x68] sm:$0xff] %v2846_v18  ;;  %v2830_v3 = vadd.f32 %v2792_v8, %v2588_v60  ;;  %v2589_v17 = vadd.f32 %v2554_v35, %v2347_v5  ;;  %v2901_v16 = vmax.f32 %v2875_v38, %v2891_v19  ;;  %3179 = vmatpush1.msra.mxu1 %v4362_v46  ;;  %v4428_v12 = vld [vmem:[%s7348_s7 + $0xd8] sm:$0xff]  ;;  %v4427_v42 = vld [vmem:[%s7348_s7 + $0xd0] sm:$0xff]  ;;  %v4426_v53 = vld [vmem:[%s7348_s7 + $0xc8] sm:$0xff] }
 0x30f   : > { %v2556_v30 = vpop.f32.mrf.mxu1  ;;  %3180 = vmatprep.subr.mxu1 %v4361_v47  ;;  %v3529_v46 = vld [vmem:[%s7348_s7 + $0x40] sm:$0xff]  ;;  %v3528_v5 = vld [vmem:[%s7348_s7 + $0x38] sm:$0xff]  ;;  %v3527_v60 = vld [vmem:[%s7348_s7 + $0x30] sm:$0xff] }
 0x310   : > { %v2847_v51 = vmax.f32 %v2829_v43, %v2830_v3  ;;  %v2590_v6 = vadd.f32 %v2556_v30, %v2348_v61  ;;  %v6808_v54 = vmax.f32 %v2901_v16, 0.0  ;;  %3181 = vmatpush1.msra.mxu1 %v4360_v7  ;;  %v2831_v44 = vadd.f32 %v2796_v26, %v2589_v17  ;;  %v4424_v18 = vld [vmem:[%s7348_s7 + $0xb8] sm:$0xff]  ;;  %v4423_v47 = vld [vmem:[%s7348_s7 + $0xb0] sm:$0xff]  ;;  %v4422_v61 = vld [vmem:[%s7348_s7 + $0xa8] sm:$0xff] }
 0x311   : > { %v2941_v32 = vld [vmem:[#allocation6 + $0x40] sm:$0xff]  ;;  %3182 = vmatprep.subr.mxu1 %v4359_v36  ;;  %v3524_v19 = vld [vmem:[%s7348_s7 + $0x18] sm:$0xff]  ;;  %v3523_v7 = vld [vmem:[%s7348_s7 + $0x10] sm:$0xff] }
 0x312   : > { %v3291_v31 = vld [vmem:[#allocation6 + $0x42] sm:$0xff]  ;;  %2863 = vst [vmem:[#allocation5 + $0x70] sm:$0xff] %v2847_v51  ;;  %v2832_v13 = vadd.f32 %v2798_v2, %v2590_v6  ;;  %3066 = vmatmul.mubr.f32.gmra.mxu1 %v2941_v32  ;;  %2933 = vst [vmem:[#allocation6 + $0x51] sm:$0xff] %v6808_v54  ;;  %v4420_v35 = vld [vmem:[%s7348_s7 + $0x98] sm:$0xff] }
 0x313   : > { %3417 = vmatmul.mubr.f32.gmra.mxu0 %v3291_v31  ;;  %3071 = vmatprep.mubr.f32.mxu1 %v7418_v20  ;;  %v3525_v26 = vld [vmem:[%s7348_s7 + $0x20] sm:$0xff]  ;;  %v4419_v43 = vld [vmem:[%s7348_s7 + $0x90] sm:$0xff]  ;;  %v3522_v3 = vld [vmem:[%s7348_s7 + $0x8] sm:$0xff] }
 0x314   : > { %3422 = vmatprep.mubr.f32.mxu0 %v7418_v20  ;;  %v2848_v4 = vmax.f32 %v2831_v44, %v2832_v13  ;;  %3183 = vmatpush1.msra.mxu1 %v4358_v59  ;;  %v4421_v38 = vld [vmem:[%s7348_s7 + $0xa0] sm:$0xff]  ;;  %v4418_v17 = vld [vmem:[%s7348_s7 + $0x88] sm:$0xff] }
 0x315   : > { %v2877_v58 = vld [vmem:[#allocation5 + $0x60] ss:$2 sm:$0xff]  ;;  %v2893_v48 = vld [vmem:[#allocation5 + $0x61] ss:$2 sm:$0xff]  ;;  %3184 = vmatprep.subr.mxu1 %v4357_v39 }
 0x316   : > { %2864 = vst [vmem:[#allocation5 + $0x78] sm:$0xff] %v2848_v4  ;;  %v2902_v40 = vmax.f32 %v2877_v58, %v2893_v48  ;;  %3185 = vmatpush1.msra.mxu1 %v4356_v27  ;;  %v3521_v16 = vld [vmem:[%s7348_s7] sm:$0xff] }
 0x317   : > { %3186 = vmatprep.subr.mxu1 %v4355_v57  ;;  %v4417_v36 = vld [vmem:[%s7348_s7 + $0x80] sm:$0xff] }
 0x318   : > { %v2910_v28 = vmax.f32 %v2902_v40, 0.0  ;;  %3187 = vmatpush1.msra.mxu1 %v4354_v45  ;;  %v2936_v48 = vld [vmem:[%s7347_s6] sm:$0x3] }
 0x319   : > { %v2942_v63 = vld [vmem:[#allocation6 + $0x50] sm:$0xff]  ;;  %3188 = vmatprep.subr.mxu1 %v4353_v25  ;;  %v7473_v25 = vld [vmem:[#allocation52_spill] sm:$0xff] }
 0x31a   : > { %v3292_v41 = vld [vmem:[#allocation6 + $0x52] sm:$0xff]  ;;  %3072 = vmatmul.mubr.f32.gmra.mxu1 %v2942_v63  ;;  %2934 = vst [vmem:[#allocation6 + $0x61] sm:$0xff] %v2910_v28 }
 0x31b   : > { %3423 = vmatmul.mubr.f32.gmra.mxu0 %v3292_v41  ;;  %3077 = vmatprep.mubr.f32.mxu1 %v7418_v20 }
 0x31c   : > { %3428 = vmatprep.mubr.f32.mxu0 %v7418_v20  ;;  %3189 = vmatpush1.msra.mxu1 %v4352_v21  ;;  %v7474_v21 = vld [vmem:[#allocation53_spill] sm:$0xff] }
 0x31d   : > { %v2879_v50 = vld [vmem:[#allocation5 + $0x70] ss:$2 sm:$0xff]  ;;  %v2895_v49 = vld [vmem:[#allocation5 + $0x71] ss:$2 sm:$0xff]  ;;  %4556 = vmatprep.subr.mxu1 %v7418_v20 }
 0x31e   : > { %v2903_v22 = vmax.f32 %v2879_v50, %v2895_v49  ;;  %v7002_v50 = vrot.slane %v2936_v48, %v7474_v21 }
 0x320   : > { %v2911_v33 = vmax.f32 %v2903_v22, 0.0 }
 0x321   : > { %v2943_v10 = vld [vmem:[#allocation6 + $0x60] sm:$0xff] }
 0x322   : > { %v3293_v1 = vld [vmem:[#allocation6 + $0x62] sm:$0xff]  ;;  %3078 = vmatmul.mubr.f32.gmra.mxu1 %v2943_v10  ;;  %2935 = vst [vmem:[#allocation6 + $0x71] sm:$0xff] %v2911_v33 }
 0x323   : > { %3429 = vmatmul.mubr.f32.gmra.mxu0 %v3293_v1  ;;  %3083 = vmatprep.mubr.f32.mxu1 %v7418_v20 }
 0x324   : > { %3434 = vmatprep.mubr.f32.mxu0 %v7418_v20 }
 0x329   : > { %v2944_v29 = vld [vmem:[#allocation6 + $0x70] sm:$0xff] }
 0x32a   : > { %v3294_v8 = vld [vmem:[#allocation6 + $0x72] sm:$0xff]  ;;  %3084 = vmatmul.mubr.f32.gmra.mxu1 %v2944_v29 }
 0x32b   : > { %3435 = vmatmul.mubr.f32.gmra.mxu0 %v3294_v8  ;;  %3222 = vmatprep.mubr.f32.mxu1 %v7418_v20 }
 0x32c   : > { %4623 = vmatprep.mubr.msk.f32.mxu0 %vm4839_vm2, %v7418_v20 }
 0x32e   : > { %3223 = vmatmul.mubr.f32.vlgmr.msra.gmra.mxu1 %v6647_v52  ;;  %v3536_v52 = vld [vmem:[%s7348_s7 + $0x78] sm:$0xff] }
 0x32f   : > { %3228 = vmatprep.mubr.f32.mxu1 %v7418_v20  ;;  %4557 = vmatpush3.msra.mxu1 %v3536_v52 }
 0x330   : > { %4558 = vmatprep.subr.mxu1 %v7418_v20 }
 0x332   : > { %3229 = vmatmul.mubr.f32.gmra.mxu1 %v6666_v37  ;;  %v4432_v37 = vld [vmem:[%s7348_s7 + $0xf8] sm:$0xff] }
 0x333   : > { %3234 = vmatprep.mubr.f32.mxu1 %v7418_v20  ;;  %4592 = vmatpush3.msra.mxu0 %v4432_v37 }
 0x334   : > { %4593 = vmatprep.subr.mxu0 %v7418_v20 }
 0x336   : > { %3235 = vmatmul.mubr.f32.gmra.mxu1 %v6707_v9  ;;  %v3535_v9 = vld [vmem:[%s7348_s7 + $0x70] sm:$0xff] }
 0x337   : > { %3240 = vmatprep.mubr.f32.mxu1 %v7418_v20  ;;  %4559 = vmatpush3.msra.mxu1 %v3535_v9 }
 0x338   : > { %4560 = vmatprep.subr.mxu1 %v7418_v20 }
 0x33a   : > { %3241 = vmatmul.mubr.f32.gmra.mxu1 %v6744_v24  ;;  %v4431_v24 = vld [vmem:[%s7348_s7 + $0xf0] sm:$0xff] }
 0x33b   : > { %3246 = vmatprep.mubr.f32.mxu1 %v7418_v20  ;;  %4594 = vmatpush3.msra.mxu0 %v4431_v24 }
 0x33c   : > { %4595 = vmatprep.subr.mxu0 %v7418_v20 }
 0x33d   : > { %4596 = vmatpush3.msra.mxu0 %v4430_v14 }
 0x33e   : > { %3247 = vmatmul.mubr.f32.gmra.mxu1 %v6779_v62  ;;  %v3534_v62 = vld [vmem:[%s7348_s7 + $0x68] sm:$0xff]  ;;  %4597 = vmatprep.subr.mxu0 %v7418_v20 }
 0x33f   : > { %3252 = vmatprep.mubr.f32.mxu1 %v7418_v20  ;;  %4561 = vmatpush3.msra.mxu1 %v3534_v62 }
 0x340   : > { %4562 = vmatprep.subr.mxu1 %v7418_v20  ;;  %4598 = vmatpush3.msra.mxu0 %v4429_v0 }
 0x341   : > { %4563 = vmatpush3.msra.mxu1 %v3533_v15  ;;  %4599 = vmatprep.subr.mxu0 %v7418_v20 }
 0x342   : > { %3253 = vmatmul.mubr.f32.gmra.mxu1 %v6808_v54  ;;  %4564 = vmatprep.subr.mxu1 %v7418_v20 }
 0x343   : > { %3258 = vmatprep.mubr.f32.mxu1 %v7418_v20  ;;  %4565 = vmatpush3.msra.mxu1 %v3532_v11 }
 0x344   : > { %4600 = vmatpush3.msra.mxu0 %v4428_v12  ;;  %4566 = vmatprep.subr.mxu1 %v7418_v20 }
 0x345   : > { %4601 = vmatprep.subr.mxu0 %v7418_v20  ;;  %4567 = vmatpush3.msra.mxu1 %v3531_v23 }
 0x346   : > { %3259 = vmatmul.mubr.f32.gmra.mxu1 %v2910_v28  ;;  %4602 = vmatpush3.msra.mxu0 %v4427_v42  ;;  %v6997_v28 = vrot.slane %v2936_v48, %v7473_v25 }
 0x347   : > { %3264 = vmatprep.mubr.f32.mxu1 %v7418_v20  ;;  %4568 = vmatprep.subr.mxu1 %v7418_v20 }
 0x348   : > { %4603 = vmatprep.subr.mxu0 %v7418_v20  ;;  %4569 = vmatpush3.msra.mxu1 %v3530_v56 }
 0x349   : > { %4604 = vmatpush3.msra.mxu0 %v4426_v53  ;;  %4570 = vmatprep.subr.mxu1 %v7418_v20 }
 0x34a   : > { %3265 = vmatmul.mubr.f32.gmra.mxu1 %v2911_v33  ;;  %4605 = vmatprep.subr.mxu0 %v7418_v20 }
 0x34b   : > { %4571 = vmatpush3.msra.mxu1 %v3529_v46  ;;  %4606 = vmatpush3.msra.mxu0 %v4425_v34 }
 0x34c   : > { %4572 = vmatprep.subr.mxu1 %v7418_v20  ;;  %4607 = vmatprep.subr.mxu0 %v7418_v20 }
 0x34d   : > { %4573 = vmatpush3.msra.mxu1 %v3528_v5  ;;  %4608 = vmatpush3.msra.mxu0 %v4424_v18 }
 0x34e   : > { %4574 = vmatprep.subr.mxu1 %v7418_v20  ;;  %4609 = vmatprep.subr.mxu0 %v7418_v20 }
 0x34f   : > { %4575 = vmatpush3.msra.mxu1 %v3527_v60  ;;  %4610 = vmatpush3.msra.mxu0 %v4423_v47 }
 0x350   : > { %4576 = vmatprep.subr.mxu1 %v7418_v20  ;;  %4611 = vmatprep.subr.mxu0 %v7418_v20 }
 0x351   : > { %4577 = vmatpush3.msra.mxu1 %v3526_v55  ;;  %4612 = vmatpush3.msra.mxu0 %v4422_v61 }
 0x352   : > { %4578 = vmatprep.subr.mxu1 %v7418_v20  ;;  %4613 = vmatprep.subr.mxu0 %v7418_v20 }
 0x353   : > { %4579 = vmatpush3.msra.mxu1 %v3525_v26  ;;  %4614 = vmatpush3.msra.mxu0 %v4421_v38 }
 0x354   : > { %4580 = vmatprep.subr.mxu1 %v7418_v20  ;;  %4615 = vmatprep.subr.mxu0 %v7418_v20 }
 0x355   : > { %4581 = vmatpush3.msra.mxu1 %v3524_v19  ;;  %4616 = vmatpush3.msra.mxu0 %v4420_v35 }
 0x356   : > { %4582 = vmatprep.subr.mxu1 %v7418_v20  ;;  %4617 = vmatprep.subr.mxu0 %v7418_v20 }
 0x357   : > { %4583 = vmatpush3.msra.mxu1 %v3523_v7  ;;  %4618 = vmatpush3.msra.mxu0 %v4419_v43 }
 0x358   : > { %4584 = vmatprep.subr.mxu1 %v7418_v20  ;;  %4619 = vmatprep.subr.mxu0 %v7418_v20 }
 0x359   : > { %4585 = vmatpush3.msra.mxu1 %v3522_v3  ;;  %4620 = vmatpush3.msra.mxu0 %v4418_v17 }
 0x35a   : > { %4586 = vmatprep.subr.mxu1 %v7418_v20  ;;  %4621 = vmatprep.subr.mxu0 %v7418_v20 }
 0x35b   : > { %4587 = vmatpush3.msra.mxu1 %v3521_v16  ;;  %4622 = vmatpush3.msra.mxu0 %v4417_v36 }
 0x35c   : > { %4588 = vmatprep.mubr.msk.f32.mxu1 %vm4839_vm2, %v7418_v20  ;;  %4626 = vmatprep.subr.mxu1 %v7418_v20 }
 0x35d   : > { %4661 = vmatprep.subr.mxu0 %v7418_v20 }
 0x3b2   : > { %v3043_v30 = vpop.f32.mrf.mxu1 }
 0x3b3   : > { %v3394_v27 = vpop.f32.mrf.mxu0  ;;  %v3101_v33 = vadd.f32 %v6997_v28, %v3043_v30 }
 0x3b4   : > { %v3045_v51 = vpop.f32.mrf.mxu1 }
 0x3b5   : > { %v3396_v57 = vpop.f32.mrf.mxu0  ;;  %v3102_v1 = vadd.f32 %v7002_v50, %v3045_v51 }
 0x3ba   : > { %v3049_v6 = vpop.f32.mrf.mxu1 }
 0x3bb   : > { %v3400_v45 = vpop.f32.mrf.mxu0  ;;  %v3103_v37 = vadd.f32 %v6997_v28, %v3049_v6 }
 0x3bc   : > { %v3051_v54 = vpop.f32.mrf.mxu1 }
 0x3bd   : > { %v3402_v63 = vpop.f32.mrf.mxu0  ;;  %v3104_v14 = vadd.f32 %v7002_v50, %v3051_v54 }
 0x3c2   : > { %v3055_v2 = vpop.f32.mrf.mxu1 }
 0x3c3   : > { %v3406_v49 = vpop.f32.mrf.mxu0  ;;  %v3105_v23 = vadd.f32 %v6997_v28, %v3055_v2 }
 0x3c4   : > { %v3057_v32 = vpop.f32.mrf.mxu1 }
 0x3c5   : > { %v3408_v8 = vpop.f32.mrf.mxu0  ;;  %v3106_v34 = vadd.f32 %v7002_v50, %v3057_v32 }
 0x3ca   : > { %v3061_v31 = vpop.f32.mrf.mxu1 }
 0x3cb   : > { %v3412_v24 = vpop.f32.mrf.mxu0  ;;  %v3107_v61 = vadd.f32 %v6997_v28, %v3061_v31 }
 0x3cc   : > { %v3063_v59 = vpop.f32.mrf.mxu1 }
 0x3cd   : > { %v3414_v53 = vpop.f32.mrf.mxu0  ;;  %v3108_v35 = vadd.f32 %v7002_v50, %v3063_v59 }
 0x3d2   : > { %v3067_v44 = vpop.f32.mrf.mxu1 }
 0x3d3   : > { %v3418_v47 = vpop.f32.mrf.mxu0  ;;  %v3109_v36 = vadd.f32 %v6997_v28, %v3067_v44 }
 0x3d4   : > { %v3069_v13 = vpop.f32.mrf.mxu1 }
 0x3d5   : > { %v3420_v17 = vpop.f32.mrf.mxu0  ;;  %v3110_v2 = vadd.f32 %v7002_v50, %v3069_v13 }
 0x3da   : > { %v6985_v39 = vpop.f32.mrf.mxu1 }
 0x3db   : > { %v3424_v6 = vpop.f32.mrf.mxu0  ;;  %v3111_v59 = vadd.f32 %v6997_v28, %v6985_v39 }
 0x3dc   : > { %v6987_v4 = vpop.f32.mrf.mxu1 }
 0x3dd   : > { %v3426_v25 = vpop.f32.mrf.mxu0  ;;  %v3112_v44 = vadd.f32 %v7002_v50, %v6987_v4 }
 0x3e2   : > { %v6989_v58 = vpop.f32.mrf.mxu1 }
 0x3e3   : > { %v3430_v13 = vpop.f32.mrf.mxu0 }
 0x3e4   : > { %v6994_v40 = vpop.f32.mrf.mxu1 }
 0x3e5   : > { %v3114_v39 = vadd.f32 %v7002_v50, %v6994_v40  ;;  %v3432_v4 = vpop.f32.mrf.mxu0 }
 0x3ea   : > { %v6999_v41 = vpop.f32.mrf.mxu1 }
 0x3ec   : > { %v7004_v22 = vpop.f32.mrf.mxu1 }
 0x3ee   : > { %v3224_v10 = vpop.f32.mrf.mxu1 }
 0x3ef   : > { %v3271_v29 = vadd.f32 %v3224_v10, %v3101_v33 }
 0x3f0   : > { %v3226_v52 = vpop.f32.mrf.mxu1 }
 0x3f1   : > { %v3272_v9 = vadd.f32 %v3226_v52, %v3102_v1  ;;  %v3441_v15 = vadd.f32 %v3394_v27, %v3271_v29  ;;  %v3113_v1 = vadd.f32 %v6997_v28, %v6989_v58  ;;  %v3116_v58 = vadd.f32 %v7002_v50, %v7004_v22 }
 0x3f2   : > { %v3230_v62 = vpop.f32.mrf.mxu1 }
 0x3f3   : > { %v3442_v0 = vadd.f32 %v3396_v57, %v3272_v9  ;;  %v3273_v11 = vadd.f32 %v3230_v62, %v3103_v37 }
 0x3f4   : > { %v3232_v12 = vpop.f32.mrf.mxu1 }
 0x3f5   : > { %v3457_v42 = vmax.f32 %v3441_v15, %v3442_v0  ;;  %v3274_v56 = vadd.f32 %v3232_v12, %v3104_v14  ;;  %v3443_v5 = vadd.f32 %v3400_v45, %v3273_v11  ;;  %v3115_v14 = vadd.f32 %v6997_v28, %v6999_v41  ;;  %v3436_v11 = vpop.f32.mrf.mxu0 }
 0x3f6   : > { %v3236_v46 = vpop.f32.mrf.mxu1 }
 0x3f7   : > { %3465 = vst [vmem:[#allocation7] sm:$0xff] %v3457_v42  ;;  %v3444_v18 = vadd.f32 %v3402_v63, %v3274_v56  ;;  %v3275_v60 = vadd.f32 %v3236_v46, %v3105_v23 }
 0x3f8   : > { %v3238_v55 = vpop.f32.mrf.mxu1 }
 0x3f9   : > { %v3458_v26 = vmax.f32 %v3443_v5, %v3444_v18  ;;  %v3276_v38 = vadd.f32 %v3238_v55, %v3106_v34  ;;  %v3445_v7 = vadd.f32 %v3406_v49, %v3275_v60 }
 0x3fa   : > { %v3242_v19 = vpop.f32.mrf.mxu1 }
 0x3fb   : > { %3466 = vst [vmem:[#allocation7 + $0x8] sm:$0xff] %v3458_v26  ;;  %v3446_v43 = vadd.f32 %v3408_v8, %v3276_v38  ;;  %v3277_v3 = vadd.f32 %v3242_v19, %v3107_v61  ;;  %v3438_v61 = vpop.f32.mrf.mxu0 }
 0x3fc   : > { %v3244_v16 = vpop.f32.mrf.mxu1 }
 0x3fd   : > { %v3459_v30 = vmax.f32 %v3445_v7, %v3446_v43  ;;  %v3278_v51 = vadd.f32 %v3244_v16, %v3108_v35  ;;  %v3447_v32 = vadd.f32 %v3412_v24, %v3277_v3 }
 0x3fe   : > { %v3248_v54 = vpop.f32.mrf.mxu1  ;;  %v3473_v56 = vld [vmem:[#allocation7] ss:$2 sm:$0xf]  ;;  %v3489_v46 = vld [vmem:[#allocation7 + $0x1] ss:$2 sm:$0xf] }
 0x3ff   : > { %3467 = vst [vmem:[#allocation7 + $0x10] sm:$0xff] %v3459_v30  ;;  %v3448_v31 = vadd.f32 %v3414_v53, %v3278_v51  ;;  %v3279_v27 = vadd.f32 %v3248_v54, %v3109_v36  ;;  %v3504_v35 = vmax.f32 %v3473_v56, %v3489_v46  ;;  %v4448_v46 = vld [vmem:[%s7348_s7 + $0x178] sm:$0xff] }
 0x400   : > { %v3250_v57 = vpop.f32.mrf.mxu1 }
 0x401   : > { %v3460_v48 = vmax.f32 %v3447_v32, %v3448_v31  ;;  %v3280_v45 = vadd.f32 %v3250_v57, %v3110_v2  ;;  %v3449_v21 = vadd.f32 %v3418_v47, %v3279_v27 }
 0x402   : > { %v3254_v63 = vpop.f32.mrf.mxu1  ;;  %v3475_v53 = vld [vmem:[#allocation7 + $0x8] ss:$2 sm:$0xf]  ;;  %v3491_v34 = vld [vmem:[#allocation7 + $0x9] ss:$2 sm:$0xf] }
 0x403   : > { %3468 = vst [vmem:[#allocation7 + $0x18] sm:$0xff] %v3460_v48  ;;  %v3450_v49 = vadd.f32 %v3420_v17, %v3280_v45  ;;  %v3281_v33 = vadd.f32 %v3254_v63, %v3111_v59  ;;  %v3505_v19 = vmax.f32 %v3475_v53, %v3491_v34  ;;  %v4464_v34 = vld [vmem:[%s7348_s7 + $0x1f8] sm:$0xff] }
 0x404   : > { %v3256_v10 = vpop.f32.mrf.mxu1 }
 0x405   : > { %v3461_v29 = vmax.f32 %v3449_v21, %v3450_v49  ;;  %v3282_v8 = vadd.f32 %v3256_v10, %v3112_v44  ;;  %v3451_v37 = vadd.f32 %v3424_v6, %v3281_v33  ;;  %v7028_v51 = vmax.f32 %v3505_v19, 0.0  ;;  %v4442_v19 = vld [vmem:[%s7348_s7 + $0x148] sm:$0xff] }
 0x406   : > { %v3260_v52 = vpop.f32.mrf.mxu1  ;;  %v3477_v18 = vld [vmem:[#allocation7 + $0x10] ss:$2 sm:$0xf]  ;;  %v3493_v60 = vld [vmem:[#allocation7 + $0x11] ss:$2 sm:$0xf] }
 0x407   : > { %3469 = vst [vmem:[#allocation7 + $0x20] sm:$0xff] %v3461_v29  ;;  %v3452_v9 = vadd.f32 %v3426_v25, %v3282_v8  ;;  %v3283_v24 = vadd.f32 %v3260_v52, %v3113_v1  ;;  %v3506_v7 = vmax.f32 %v3477_v18, %v3493_v60  ;;  %v7030_v6 = vmax.f32 %v3504_v35, 0.0  ;;  %v4447_v60 = vld [vmem:[%s7348_s7 + $0x170] sm:$0xff]  ;;  %v4458_v35 = vld [vmem:[%s7348_s7 + $0x1c8] sm:$0xff] }
 0x408   : > { %v3262_v62 = vpop.f32.mrf.mxu1  ;;  %v3545_v48 = vrot.slane %v7028_v51, 7 }
 0x409   : > { %v3462_v15 = vmax.f32 %v3451_v37, %v3452_v9  ;;  %v3284_v0 = vadd.f32 %v3262_v62, %v3114_v39  ;;  %v3453_v23 = vadd.f32 %v3430_v13, %v3283_v24  ;;  %v7032_v54 = vmax.f32 %v3506_v7, 0.0  ;;  %v4441_v7 = vld [vmem:[%s7348_s7 + $0x140] sm:$0xff] }
 0x40a   : > { %v3266_v12 = vpop.f32.mrf.mxu1  ;;  %v3479_v41 = vld [vmem:[#allocation7 + $0x18] ss:$2 sm:$0xf]  ;;  %v3495_v55 = vld [vmem:[#allocation7 + $0x19] ss:$2 sm:$0xf]  ;;  %v3547_v52 = vsel %vm3546_vm3, %v3545_v48, %v7030_v6 }
 0x40b   : > { %3470 = vst [vmem:[#allocation7 + $0x28] sm:$0xff] %v3462_v15  ;;  %v3454_v42 = vadd.f32 %v3432_v4, %v3284_v0  ;;  %v3285_v40 = vadd.f32 %v3266_v12, %v3115_v14  ;;  %v3507_v43 = vmax.f32 %v3479_v41, %v3495_v55  ;;  %v3548_v45 = vrot.slane %v7032_v54, 6  ;;  %v4462_v41 = vld [vmem:[%s7348_s7 + $0x1e8] sm:$0xff]  ;;  %v4445_v55 = vld [vmem:[%s7348_s7 + $0x160] sm:$0xff] }
 0x40c   : > { %v3268_v5 = vpop.f32.mrf.mxu1  ;;  %v3661_v63 = vrot.slane %v7030_v6, 1  ;;  %v3663_v44 = vrot.slane %v7032_v54, 7  ;;  %v3765_v48 = vrot.slane %v7028_v51, 1 }
 0x40d   : > { %v3463_v47 = vmax.f32 %v3453_v23, %v3454_v42  ;;  %v3286_v28 = vadd.f32 %v3268_v5, %v3116_v58  ;;  %v3455_v50 = vadd.f32 %v3436_v11, %v3285_v40  ;;  %v7034_v2 = vmax.f32 %v3507_v43, 0.0  ;;  %v4457_v43 = vld [vmem:[%s7348_s7 + $0x1c0] sm:$0xff] }
 0x40e   : > { %v3481_v26 = vld [vmem:[#allocation7 + $0x20] ss:$2 sm:$0xf]  ;;  %v3497_v38 = vld [vmem:[#allocation7 + $0x21] ss:$2 sm:$0xf]  ;;  %v3662_v29 = vsel %vm3546_vm3, %v7028_v51, %v3661_v63  ;;  %v3550_v9 = vsel %vm3549_vm4, %v3548_v45, %v3547_v52 }
 0x40f   : > { %3471 = vst [vmem:[#allocation7 + $0x30] sm:$0xff] %v3463_v47  ;;  %v3456_v22 = vadd.f32 %v3438_v61, %v3286_v28  ;;  %v3508_v17 = vmax.f32 %v3481_v26, %v3497_v38  ;;  %v3551_v25 = vrot.slane %v7034_v2, 5  ;;  %v3665_v33 = vrot.slane %v7034_v2, 6  ;;  %v4463_v47 = vld [vmem:[%s7348_s7 + $0x1f0] sm:$0xff]  ;;  %v4446_v28 = vld [vmem:[%s7348_s7 + $0x168] sm:$0xff]  ;;  %v4461_v61 = vld [vmem:[%s7348_s7 + $0x1e0] sm:$0xff] }
 0x410   : > { %v3664_v4 = vsel %vm3549_vm4, %v3663_v44, %v3662_v29  ;;  %v4444_v26 = vld [vmem:[%s7348_s7 + $0x158] sm:$0xff]  ;;  %v3868_v45 = vrot.slane %v7028_v51, 2  ;;  %v3867_v51 = vrot.slane %v7030_v6, 3 }
 0x411   : > { %v3464_v3 = vmax.f32 %v3455_v50, %v3456_v22  ;;  %v7036_v32 = vmax.f32 %v3508_v17, 0.0  ;;  %v3553_v15 = vsel %vm3552_vm5, %v3551_v25, %v3550_v9  ;;  %v3666_v0 = vsel %vm3552_vm5, %v3665_v33, %v3664_v4  ;;  %v4460_v38 = vld [vmem:[%s7348_s7 + $0x1d8] sm:$0xff]  ;;  %v4443_v50 = vld [vmem:[%s7348_s7 + $0x150] sm:$0xff] }
 0x412   : > { %v3483_v16 = vld [vmem:[#allocation7 + $0x28] ss:$2 sm:$0xf]  ;;  %v3499_v36 = vld [vmem:[#allocation7 + $0x29] ss:$2 sm:$0xf] }
 0x413   : > { %3472 = vst [vmem:[#allocation7 + $0x38] sm:$0xff] %v3464_v3  ;;  %v3509_v30 = vmax.f32 %v3483_v16, %v3499_v36  ;;  %v3554_v49 = vrot.slane %v7036_v32, 4  ;;  %v3667_v13 = vrot.slane %v7036_v32, 5  ;;  %v4459_v22 = vld [vmem:[%s7348_s7 + $0x1d0] sm:$0xff]  ;;  %v4440_v3 = vld [vmem:[%s7348_s7 + $0x138] sm:$0xff]  ;;  %v3870_v25 = vrot.slane %v7032_v54, 1 }
 0x414   : > { %v4456_v17 = vld [vmem:[%s7348_s7 + $0x1b8] sm:$0xff]  ;;  %v4439_v16 = vld [vmem:[%s7348_s7 + $0x130] sm:$0xff]  ;;  %v3770_v29 = vrot.slane %v7036_v32, 6  ;;  %v3873_v52 = vrot.slane %v7036_v32, 7 }
 0x415   : > { %v7038_v59 = vmax.f32 %v3509_v30, 0.0  ;;  %v3556_v11 = vsel %vm3555_vm6, %v3554_v49, %v3553_v15  ;;  %v3668_v12 = vsel %vm3555_vm6, %v3667_v13, %v3666_v0  ;;  %v4455_v36 = vld [vmem:[%s7348_s7 + $0x1b0] sm:$0xff]  ;;  %v4438_v30 = vld [vmem:[%s7348_s7 + $0x128] sm:$0xff]  ;;  %v4436_v63 = vld [vmem:[%s7348_s7 + $0x118] sm:$0xff]  ;;  %v3764_v49 = vrot.slane %v7030_v6, 2 }
 0x416   : > { %v3485_v31 = vld [vmem:[#allocation7 + $0x30] ss:$2 sm:$0xf]  ;;  %v3501_v27 = vld [vmem:[#allocation7 + $0x31] ss:$2 sm:$0xf]  ;;  %v3869_v6 = vsel %vm3546_vm3, %v3868_v45, %v3867_v51 }
 0x417   : > { %v3510_v57 = vmax.f32 %v3485_v31, %v3501_v27  ;;  %v3557_v39 = vrot.slane %v7038_v59, 3  ;;  %v3669_v37 = vrot.slane %v7038_v59, 4  ;;  %v4454_v31 = vld [vmem:[%s7348_s7 + $0x1a8] sm:$0xff]  ;;  %v4437_v27 = vld [vmem:[%s7348_s7 + $0x120] sm:$0xff]  ;;  %v4452_v44 = vld [vmem:[%s7348_s7 + $0x198] sm:$0xff]  ;;  %v3772_v9 = vrot.slane %v7038_v59, 5 }
 0x418   : > { %v4435_v33 = vld [vmem:[%s7348_s7 + $0x110] sm:$0xff]  ;;  %v4433_v15 = vld [vmem:[%s7348_s7 + $0x100] sm:$0xff] }
 0x419   : > { %v7045_v21 = vmax.f32 %v3510_v57, 0.0  ;;  %v3559_v58 = vsel %vm3558_vm7, %v3557_v39, %v3556_v11  ;;  %v3670_v42 = vsel %vm3558_vm7, %v3669_v37, %v3668_v12  ;;  %v4453_v57 = vld [vmem:[%s7348_s7 + $0x1a0] sm:$0xff]  ;;  %v4451_v13 = vld [vmem:[%s7348_s7 + $0x190] sm:$0xff]  ;;  %v4434_v39 = vld [vmem:[%s7348_s7 + $0x108] sm:$0xff] }
 0x41a   : > { %v3487_v10 = vld [vmem:[#allocation7 + $0x38] ss:$2 sm:$0xf]  ;;  %v3503_v1 = vld [vmem:[#allocation7 + $0x39] ss:$2 sm:$0xf] }
 0x41b   : > { %v3511_v8 = vmax.f32 %v3487_v10, %v3503_v1  ;;  %v3560_v24 = vrot.slane %v7045_v21, 2  ;;  %v3671_v62 = vrot.slane %v7045_v21, 3  ;;  %v3766_v10 = vsel %vm3546_vm3, %v3765_v48, %v3764_v49  ;;  %v4450_v37 = vld [vmem:[%s7348_s7 + $0x188] sm:$0xff] }
 0x41c   : > { %v3768_v1 = vrot.slane %v7034_v2, 7  ;;  %v3767_v32 = vsel %vm3549_vm4, %v7032_v54, %v3766_v10  ;;  %v3774_v4 = vrot.slane %v7045_v21, 4 }
 0x41d   : > { %v7060_v14 = vmax.f32 %v3511_v8, 0.0  ;;  %v3562_v56 = vsel %vm3561_vm8, %v3560_v24, %v3559_v58  ;;  %v3672_v53 = vsel %vm3561_vm8, %v3671_v62, %v3670_v42  ;;  %v3871_v8 = vsel %vm3549_vm4, %v3870_v25, %v3869_v6 }
 0x41e   : > { %v3875_v24 = vrot.slane %v7038_v59, 6  ;;  %v3877_v62 = vrot.slane %v7045_v21, 5  ;;  %v3769_v0 = vsel %vm3552_vm5, %v3768_v1, %v3767_v32  ;;  %v3872_v11 = vsel %vm3552_vm5, %v7034_v2, %v3871_v8  ;;  %v4449_v21 = vld [vmem:[%s7348_s7 + $0x180] sm:$0xff] }
 0x41f   : > { %v3563_v23 = vrot.slane %v7060_v14, 1  ;;  %v3673_v40 = vrot.slane %v7060_v14, 2  ;;  %v3776_v59 = vrot.slane %v7060_v14, 3  ;;  %v3879_v54 = vrot.slane %v7060_v14, 4 }
 0x420   : > { %v3771_v12 = vsel %vm3555_vm6, %v3770_v29, %v3769_v0  ;;  %v3874_v58 = vsel %vm3555_vm6, %v3873_v52, %v3872_v11  ;;  %v7475_v25 = vlaneseq }
 0x421   : > { %v3565_v5 = vsel %vm3564_vm9, %v3563_v23, %v3562_v56  ;;  %v3674_v18 = vsel %vm3564_vm9, %v3673_v40, %v3672_v53  ;;  %v3773_v23 = vsel %vm3558_vm7, %v3772_v9, %v3771_v12  ;;  %v3876_v2 = vsel %vm3558_vm7, %v3875_v24, %v3874_v58  ;;  %v3969_v53 = vld [vmem:[%s7350_s9 + $0x78] sm:$0xff] }
 0x422   : > { %4589 = vmatmul.mubr.f32.vlgmr.msra.gmra.mxu1 %v3565_v5  ;;  %4624 = vmatmul.mubr.f32.vlgmr.msra.gmra.mxu0 %v3674_v18  ;;  %v3775_v14 = vsel %vm3561_vm8, %v3774_v4, %v3773_v23  ;;  %v3878_v42 = vsel %vm3561_vm8, %v3877_v62, %v3876_v2  ;;  %v3966_v5 = vld [vmem:[%s7350_s9 + $0x60] sm:$0xff]  ;;  %v3965_v18 = vld [vmem:[%s7350_s9 + $0x58] sm:$0xff] }
 0x423   : > { %4627 = vmatpush3.msra.mxu1 %v4448_v46  ;;  %4662 = vmatpush3.msra.mxu0 %v4464_v34  ;;  %v3777_v40 = vsel %vm3564_vm9, %v3776_v59, %v3775_v14  ;;  %v3880_v56 = vsel %vm3564_vm9, %v3879_v54, %v3878_v42  ;;  %v3968_v46 = vld [vmem:[%s7350_s9 + $0x70] sm:$0xff]  ;;  %v3967_v34 = vld [vmem:[%s7350_s9 + $0x68] sm:$0xff] }
 0x424   : > { %4628 = vmatprep.subr.mxu1 %v7418_v20  ;;  %4663 = vmatprep.subr.mxu0 %v7418_v20 }
 0x425   : > { %4629 = vmatpush3.msra.mxu1 %v4447_v60  ;;  %4664 = vmatpush3.msra.mxu0 %v4463_v47  ;;  %v3964_v60 = vld [vmem:[%s7350_s9 + $0x50] sm:$0xff]  ;;  %v3963_v47 = vld [vmem:[%s7350_s9 + $0x48] sm:$0xff] }
 0x426   : > { %4630 = vmatprep.subr.mxu1 %v7418_v20  ;;  %4665 = vmatprep.subr.mxu0 %v7418_v20 }
 0x427   : > { %4631 = vmatpush3.msra.mxu1 %v4446_v28  ;;  %4666 = vmatpush3.msra.mxu0 %v4462_v41  ;;  %v3962_v28 = vld [vmem:[%s7350_s9 + $0x40] sm:$0xff]  ;;  %v3961_v41 = vld [vmem:[%s7350_s9 + $0x38] sm:$0xff] }
 0x428   : > { %4632 = vmatprep.subr.mxu1 %v7418_v20  ;;  %4667 = vmatprep.subr.mxu0 %v7418_v20 }
 0x429   : > { %4633 = vmatpush3.msra.mxu1 %v4445_v55  ;;  %4668 = vmatpush3.msra.mxu0 %v4461_v61  ;;  %v3960_v55 = vld [vmem:[%s7350_s9 + $0x30] sm:$0xff]  ;;  %v3959_v61 = vld [vmem:[%s7350_s9 + $0x28] sm:$0xff] }
 0x42a   : > { %4634 = vmatprep.subr.mxu1 %v7418_v20  ;;  %4669 = vmatprep.subr.mxu0 %v7418_v20 }
 0x42b   : > { %4635 = vmatpush3.msra.mxu1 %v4444_v26  ;;  %4670 = vmatpush3.msra.mxu0 %v4460_v38  ;;  %v3958_v26 = vld [vmem:[%s7350_s9 + $0x20] sm:$0xff]  ;;  %v3957_v38 = vld [vmem:[%s7350_s9 + $0x18] sm:$0xff] }
 0x42c   : > { %4636 = vmatprep.subr.mxu1 %v7418_v20  ;;  %4671 = vmatprep.subr.mxu0 %v7418_v20 }
 0x42d   : > { %4637 = vmatpush3.msra.mxu1 %v4443_v50  ;;  %4672 = vmatpush3.msra.mxu0 %v4459_v22  ;;  %v3956_v50 = vld [vmem:[%s7350_s9 + $0x10] sm:$0xff]  ;;  %v3955_v22 = vld [vmem:[%s7350_s9 + $0x8] sm:$0xff] }
 0x42e   : > { %4638 = vmatprep.subr.mxu1 %v7418_v20  ;;  %4673 = vmatprep.subr.mxu0 %v7418_v20 }
 0x42f   : > { %4639 = vmatpush3.msra.mxu1 %v4442_v19  ;;  %4674 = vmatpush3.msra.mxu0 %v4458_v35  ;;  %v3954_v19 = vld [vmem:[%s7350_s9] sm:$0xff] }
 0x430   : > { %4640 = vmatprep.subr.mxu1 %v7418_v20  ;;  %4675 = vmatprep.subr.mxu0 %v7418_v20 }
 0x431   : > { %4641 = vmatpush3.msra.mxu1 %v4441_v7  ;;  %4676 = vmatpush3.msra.mxu0 %v4457_v43 }
 0x432   : > { %4642 = vmatprep.subr.mxu1 %v7418_v20  ;;  %4677 = vmatprep.subr.mxu0 %v7418_v20 }
 0x433   : > { %4643 = vmatpush3.msra.mxu1 %v4440_v3  ;;  %4678 = vmatpush3.msra.mxu0 %v4456_v17  ;;  %v4416_v17 = vld [vmem:[%s7349_s8] ss:$0 sm:$0xff] }
 0x434   : > { %4644 = vmatprep.subr.mxu1 %v7418_v20  ;;  %4679 = vmatprep.subr.mxu0 %v7418_v20 }
 0x435   : > { %4645 = vmatpush3.msra.mxu1 %v4439_v16  ;;  %4680 = vmatpush3.msra.mxu0 %v4455_v36 }
 0x436   : > { %4646 = vmatprep.subr.mxu1 %v7418_v20  ;;  %4681 = vmatprep.subr.mxu0 %v7418_v20 }
 0x437   : > { %4647 = vmatpush3.msra.mxu1 %v4438_v30  ;;  %4682 = vmatpush3.msra.mxu0 %v4454_v31 }
 0x438   : > { %4648 = vmatprep.subr.mxu1 %v7418_v20  ;;  %4683 = vmatprep.subr.mxu0 %v7418_v20 }
 0x439   : > { %4649 = vmatpush3.msra.mxu1 %v4437_v27  ;;  %4684 = vmatpush3.msra.mxu0 %v4453_v57 }
 0x43a   : > { %4650 = vmatprep.subr.mxu1 %v7418_v20  ;;  %4685 = vmatprep.subr.mxu0 %v7418_v20 }
 0x43b   : > { %4651 = vmatpush3.msra.mxu1 %v4436_v63  ;;  %4686 = vmatpush3.msra.mxu0 %v4452_v44  ;;  %v4048_v63 = vand.u32 127, %v7475_v25  ;;  %v4465_v44 = vld [vmem:[%s7351_s10] ss:$0 sm:$0xff] }
 0x43c   : > { %4652 = vmatprep.subr.mxu1 %v7418_v20  ;;  %4687 = vmatprep.subr.mxu0 %v7418_v20 }
 0x43d   : > { %4653 = vmatpush3.msra.mxu1 %v4435_v33  ;;  %4688 = vmatpush3.msra.mxu0 %v4451_v13  ;;  %vm4049_vm10 = vcmp.lt.s32.totalorder %v4048_v63, 10 }
 0x43e   : > { %4654 = vmatprep.subr.mxu1 %v7418_v20  ;;  %4689 = vmatprep.subr.mxu0 %v7418_v20 }
 0x43f   : > { %4655 = vmatpush3.msra.mxu1 %v4434_v39  ;;  %4690 = vmatpush3.msra.mxu0 %v4450_v37 }
 0x440   : > { %4656 = vmatprep.subr.mxu1 %v7418_v20  ;;  %4691 = vmatprep.subr.mxu0 %v7418_v20 }
 0x441   : > { %4657 = vmatpush3.msra.mxu1 %v4433_v15  ;;  %4658 = vmatprep.mubr.msk.f32.mxu1 %vm4839_vm2, %v7418_v20 }
 0x442   : > { %4692 = vmatpush3.msra.mxu0 %v4449_v21  ;;  %4693 = vmatprep.mubr.msk.f32.mxu0 %vm4839_vm2, %v7418_v20 }
 0x443   : > { %4659 = vmatmul.mubr.f32.vlgmr.msra.gmra.mxu1 %v3777_v40  ;;  %4694 = vmatmul.mubr.f32.vlgmr.msra.gmra.mxu0 %v3880_v56 }
 0x444   : > { %4696 = vmatprep.subr.mxu1 %v7418_v20  ;;  %4728 = vmatprep.mubr.msk.f32.mxu1 %vm4839_vm2, %v7418_v20 }
 0x445   : > { %4697 = vmatpush3.msra.mxu1 %v3969_v53 }
 0x446   : > { %4698 = vmatprep.subr.mxu1 %v7418_v20 }
 0x447   : > { %4699 = vmatpush3.msra.mxu1 %v3968_v46 }
 0x448   : > { %4700 = vmatprep.subr.mxu1 %v7418_v20 }
 0x449   : > { %4701 = vmatpush3.msra.mxu1 %v3967_v34 }
 0x44a   : > { %4702 = vmatprep.subr.mxu1 %v7418_v20 }
 0x44b   : > { %4703 = vmatpush3.msra.mxu1 %v3966_v5 }
 0x44c   : > { %4704 = vmatprep.subr.mxu1 %v7418_v20 }
 0x44d   : > { %4705 = vmatpush3.msra.mxu1 %v3965_v18 }
 0x44e   : > { %4706 = vmatprep.subr.mxu1 %v7418_v20 }
 0x44f   : > { %4707 = vmatpush3.msra.mxu1 %v3964_v60 }
 0x450   : > { %4708 = vmatprep.subr.mxu1 %v7418_v20 }
 0x451   : > { %4709 = vmatpush3.msra.mxu1 %v3963_v47 }
 0x452   : > { %4710 = vmatprep.subr.mxu1 %v7418_v20 }
 0x453   : > { %4711 = vmatpush3.msra.mxu1 %v3962_v28 }
 0x454   : > { %4712 = vmatprep.subr.mxu1 %v7418_v20 }
 0x455   : > { %4713 = vmatpush3.msra.mxu1 %v3961_v41 }
 0x456   : > { %4714 = vmatprep.subr.mxu1 %v7418_v20 }
 0x457   : > { %4715 = vmatpush3.msra.mxu1 %v3960_v55 }
 0x458   : > { %4716 = vmatprep.subr.mxu1 %v7418_v20 }
 0x459   : > { %4717 = vmatpush3.msra.mxu1 %v3959_v61 }
 0x45a   : > { %4718 = vmatprep.subr.mxu1 %v7418_v20 }
 0x45b   : > { %4719 = vmatpush3.msra.mxu1 %v3958_v26 }
 0x45c   : > { %4720 = vmatprep.subr.mxu1 %v7418_v20 }
 0x45d   : > { %4721 = vmatpush3.msra.mxu1 %v3957_v38 }
 0x45e   : > { %4722 = vmatprep.subr.mxu1 %v7418_v20 }
 0x45f   : > { %4723 = vmatpush3.msra.mxu1 %v3956_v50 }
 0x460   : > { %4724 = vmatprep.subr.mxu1 %v7418_v20 }
 0x461   : > { %4725 = vmatpush3.msra.mxu1 %v3955_v22 }
 0x462   : > { %4726 = vmatprep.subr.mxu1 %v7418_v20 }
 0x463   : > { %4727 = vmatpush3.msra.mxu1 %v3954_v19 }
 0x4e2   : > { %v3633_v35 = vpop.f32.mrf.mxu1  ;;  %v3742_v7 = vpop.f32.mrf.mxu0 }
 0x4e3   : > { %v3643_v16 = vadd.f32 %v4416_v17, %v3633_v35 }
 0x4e4   : > { %v4590_v43 = vpop.f32.mrf.mxu1  ;;  %v4625_v3 = vpop.f32.mrf.mxu0 }
 0x4e5   : > { %v3746_v36 = vadd.f32 %v3742_v7, %v3643_v16 }
 0x503   : > { %v3845_v30 = vpop.f32.mrf.mxu1  ;;  %v3948_v31 = vpop.f32.mrf.mxu0 }
 0x504   : > { %v3849_v27 = vadd.f32 %v3845_v30, %v3746_v36 }
 0x505   : > { %v4660_v57 = vpop.f32.mrf.mxu1  ;;  %v4695_v20 = vpop.f32.mrf.mxu0 }
 0x506   : > { %v3952_v48 = vadd.f32 %v3948_v31, %v3849_v27 }
 0x508   : > { %v3953_v45 = vmax.f32 %v3952_v48, 0.0 }
 0x50a   : > { %4729 = vmatmul.mubr.f32.vlgmr.msra.gmra.mxu1 %v3953_v45 }
 0x5ca   : > { %v4043_v49 = vpop.f32.mrf.mxu1 }
 0x5cb   : > { %v4044_v51 = vadd.f32 %v4465_v44, %v4043_v49 }
 0x5cc   : > { %v4730_v33 = vpop.f32.mrf.mxu1 }
 0x5cd   : > { %v4050_v13 = vsel %vm4049_vm10, %v4044_v51, -1e+30 }
 0x5ce   : > { %4051 = vmax.xlane.f32.xlu0 %v4050_v13 }
 0x657   : > { %v4052_v10 = vpop.xlane.xlu0 %4051 }
 0x658   : > { %v4053_v1 = vsub.f32 %v4050_v13, %v4052_v10 }
 0x65a   : > { %v4054_v6 = vmul.f32 1.442695, %v4053_v1 }
 0x65c   : > { %4772 = vpow2.f32 %v4054_v6 }
 0x669   : > { %v4773_v29 = vpop.eup %4772 }
 0x66a   : > { %4056 = vadd.xlane.f32.xlu0 %v4773_v29 }
 0x6f3   : > { %v4057_v8 = vpop.xlane.xlu0 %4056 }
 0x6f4   : > { %4774 = vlog2.f32 %v4057_v8 }
 0x701   : > { %v4775_v52 = vpop.eup %4774 }
 0x702   : > { %v4059_v39 = vmul.f32 0.6931472, %v4775_v52 }
 0x704   : > { %v4060_v37 = vadd.f32 %v4059_v39, %v4052_v10 }
 0x706   : > { %v4061_v9 = vsub.f32 %v4050_v13, %v4060_v37 }
 0x708   : > { %4062 = vst [vmem:[%s382_s14] sm:$0xff] %v4061_v9 }
 0x709   : > { %4789 = shalt.err (!%p4786_p3)
}
 0x70a   : > { %s4790_s12 = scalar_lea.hbm %s4075_s26, 128  ;;  %s4794_s14 = scalar_lea.hbm %s7352_s11, 256 }
 0x70b   : > { %p4791_p4 = scmp.ne.s32.totalorder %s4075_s26, %s4790_s12  ;;  %p4795_p9 = scmp.lt.s32.totalorder %s4075_s26, %s7352_s11 }
 0x70c   : > { %p4796_p10 = scmp.lt.s32.totalorder %s4794_s14, %s4790_s12 }
 0x70d   : > { %p4792_p7 = pnand %p4791_p4, %p4939_p5 }
 0x70e   : > { %p4797_p11 = por %p4796_p10, %p4795_p9 }
 0x70f   : > { %p4793_p8 = pneg %p4792_p7 }
 0x711   : > { %p4798_p12 = pnand %p4797_p11, %p4793_p8 }
 0x713   : > { %4801 = shalt.err (!%p4798_p12)
}
 0x714   : > { %4731 = dma.vmem_to_hbm [thread:$0]  (%p4939_p5), %s4078_s15, 128, %s4075_s26, %s4064_s24  }
 0x715 PF: > { %p4737_p13 = scmp.ge.s32.totalorder %s4836_s20, 2  ;;  %s4089_s25 = sand.u32 1, %s4824_s17  }
 0x716   : > { %s4090_s19 = scalar_lea.sflag [#allocation9], %s4089_s25 }
 0x717   : > { %p4734_p0 = pnand %p4737_p13, %p4943_p6 }
 0x719   : > { %p4735_p1 = pneg %p4734_p0 }
 0x71b   : > { %4819 = dma.done.wait (%p4735_p1), %s4090_s19, 128  }
 0x71c   : > { %4821 = vsyncadd (%p4735_p1), %s4090_s19, 4294967168  ;;  %s7476_s29 = sld [smem:[#allocation11_spill]]  ;;  %p21_p2 = scmp.ge.s32.totalorder %s4926_s23, 4  }
 0x71d   : > { %s7477_s19 = sld [smem:[#allocation12_spill]]  ;;  %s7478_s17 = smov %s4828_s18 }
 0x71e   : > { %s7480_s20 = smov %s4926_s23  ;;  %23 = sbr.rel (!%p21_p2) target bundleno = 3 (0x3), region = 169 }
 0x722   : > { %s7479_s18 = smov %s7476_s29 }
 0x723   :  { %4095 = vsyncpa [#allocation9], 1 }
 0x724   :  { %4097 = vsyncpa [#allocation9 + $0x1], 1 }

</bundles_post_ra>
